<compile_context>
chip_gen: v7x
topology: tpu7x:2x2x1
jax: 0.10.0
libtpu: 0.0.40
codegen_flags: <defaults>
</compile_context>

<pallas_src>
import jax
import jax.numpy as jnp
import numpy as np
from jax import lax
from jax.experimental import pallas as pl
from jax.experimental.pallas import tpu as pltpu

WORD_VECTOR_LENGTH = 300   # GRU input size (layer 0)
HIDDEN_SIZE = 50
NUM_LAYERS = 3
LANE = 128


def _round_up(n, m):
    return (n + m - 1) // m * m


HP = _round_up(HIDDEN_SIZE, LANE)   # padded hidden width (128), lane-dense


# ---------------------------------------------------------------------------
# Fully fused DECODER kernel (single invocation, everything VMEM-resident).
#   x_ref     : (S*B, D)     bf16  embedded inputs, time-major, flattened
#   h0_ref    : (L*B, HP)    f32   initial hidden (padded lanes MUST be zero)
#   per layer : wih (Din,3HP) bf16, whh (HP,3HP) bf16, bgi (1,3HP) f32,
#               bgh (1,3HP) f32   (gate order [r, z, n] along the lane axis)
#   wout_ref  : (HP, VP)     bf16  output projection (zero-padded)
#   bout_ref  : (1, VP)      f32
# outputs:
#   logits_ref: (S*B, VP)    f32
#   hf_ref    : (L*B, HP)    f32   final hidden per layer
# scratch:
#   ybuf0/1   : (S*B, HP)    f32   inter-layer activations (ping-pong)
# ---------------------------------------------------------------------------
def decoder_fused_kernel(x_ref, h0_ref,
                         wih0_ref, whh0_ref, bgi0_ref, bgh0_ref,
                         wih1_ref, whh1_ref, bgi1_ref, bgh1_ref,
                         wih2_ref, whh2_ref, bgi2_ref, bgh2_ref,
                         wout_ref, bout_ref,
                         logits_ref, hf_ref,
                         ybuf0, ybuf1):
    Hp = h0_ref.shape[-1]
    B = h0_ref.shape[0] // NUM_LAYERS
    S = x_ref.shape[0] // B

    def run_gru_layer(in_ref, out_ref, wih_ref, whh_ref, bgi_ref, bgh_ref, layer):
        # ---- Hoisted input-gate matmul: ONE (S*B, Din) x (Din, 3*Hp) matmul
        # feeds every timestep; it is off the serial h->h dependence chain.
        x_all = in_ref[...]
        if x_all.dtype != jnp.bfloat16:
            x_all = x_all.astype(jnp.bfloat16)
        gi_all = jnp.dot(x_all, wih_ref[...],
                         preferred_element_type=jnp.float32) + bgi_ref[...]

        whh = whh_ref[...]                     # (Hp, 3*Hp) bf16, VMEM resident
        bgh = bgh_ref[...]                     # (1, 3*Hp)  f32  (0 | 0 | b_hn)
        h = h0_ref[layer * B:(layer + 1) * B, :]   # (B, Hp) f32

        # Fully unrolled recurrence with static row offsets (S is small).
        for t in range(S):
            gi = gi_all[t * B:(t + 1) * B, :]                        # (B, 3*Hp)
            gh = jnp.dot(h.astype(jnp.bfloat16), whh,
                         preferred_element_type=jnp.float32) + bgh   # (B, 3*Hp)
            r = jax.nn.sigmoid(gi[:, 0:Hp] + gh[:, 0:Hp])
            z = jax.nn.sigmoid(gi[:, Hp:2 * Hp] + gh[:, Hp:2 * Hp])
            n = jnp.tanh(gi[:, 2 * Hp:3 * Hp] + r * gh[:, 2 * Hp:3 * Hp])
            h = (1.0 - z) * n + z * h                                # (B, Hp) f32
            out_ref[t * B:(t + 1) * B, :] = h

        hf_ref[layer * B:(layer + 1) * B, :] = h

    run_gru_layer(x_ref, ybuf0, wih0_ref, whh0_ref, bgi0_ref, bgh0_ref, 0)
    run_gru_layer(ybuf0, ybuf1, wih1_ref, whh1_ref, bgi1_ref, bgh1_ref, 1)
    run_gru_layer(ybuf1, ybuf0, wih2_ref, whh2_ref, bgi2_ref, bgh2_ref, 2)

    # Output projection, fused: 2D zero-copy LHS, lane-dense VP output.
    y = ybuf0[...].astype(jnp.bfloat16)                              # (S*B, Hp)
    logits_ref[...] = (jnp.dot(y, wout_ref[...],
                               preferred_element_type=jnp.float32)
                       + bout_ref[...])


# ---------------------------------------------------------------------------
# One-time host-side parameter fusion / padding (gate order [r, z, n]).
# Called ONCE, outside the jitted per-call path.
# ---------------------------------------------------------------------------
def prepare_decoder_params(params):
    D, H = WORD_VECTOR_LENGTH, HIDDEN_SIZE
    V = params["w_out"].shape[1]
    VP = _round_up(V, LANE)

    layers = []
    for l in range(NUM_LAYERS):
        d_in = D if l == 0 else H
        d_pad = D if l == 0 else HP
        w_ih = params["w_ih"][l]    # (3, d_in, H)
        w_hh = params["w_hh"][l]    # (3, H, H)
        b_ih = params["b_ih"][l]    # (3, 1, H)
        b_hh = params["b_hh"][l]    # (3, 1, H)

        wih_f = jnp.zeros((d_pad, 3 * HP), jnp.float32)
        whh_f = jnp.zeros((HP, 3 * HP), jnp.float32)
        for g in range(3):
            wih_f = wih_f.at[:d_in, g * HP:g * HP + H].set(w_ih[g])
            whh_f = whh_f.at[:H, g * HP:g * HP + H].set(w_hh[g])

        bgi = jnp.zeros((1, 3 * HP), jnp.float32)
        bgh = jnp.zeros((1, 3 * HP), jnp.float32)
        bgi = bgi.at[0, 0 * HP:0 * HP + H].set(b_ih[0, 0] + b_hh[0, 0])  # r
        bgi = bgi.at[0, 1 * HP:1 * HP + H].set(b_ih[1, 0] + b_hh[1, 0])  # z
        bgi = bgi.at[0, 2 * HP:2 * HP + H].set(b_ih[2, 0])               # n (input)
        bgh = bgh.at[0, 2 * HP:2 * HP + H].set(b_hh[2, 0])               # n (hidden)

        layers.append((jax.device_put(wih_f.astype(jnp.bfloat16)),
                       jax.device_put(whh_f.astype(jnp.bfloat16)),
                       jax.device_put(bgi), jax.device_put(bgh)))

    wout_p = jnp.zeros((HP, VP), jnp.float32)
    wout_p = wout_p.at[:H, :V].set(params["w_out"]).astype(jnp.bfloat16)
    bout_p = jnp.zeros((1, VP), jnp.float32).at[0, :V].set(params["b_out"])

    return {
        "embedding": params["embedding"],
        "layers": layers,
        "w_out": jax.device_put(wout_p),
        "b_out": jax.device_put(bout_p),
        "vocab_size": V,
    }


# ---------------------------------------------------------------------------
# Full DECODER forward (prep is closed over / passed as prepared constants).
# ---------------------------------------------------------------------------
def decoder_forward(prep, x_ids, hidden):
    """x_ids: (B, S) int32, hidden: (L, B, H)  ->  (logits (B,S,V), hidden (L,B,H))."""
    B, S = x_ids.shape
    H = HIDDEN_SIZE
    V = prep["vocab_size"]
    VP = prep["w_out"].shape[1]

    # Embedding lookup (gather) kept in plain JAX.
    emb = jnp.take(prep["embedding"], x_ids, axis=0)                 # (B, S, D)
    x_seq = jnp.transpose(emb, (1, 0, 2)).reshape(S * B, WORD_VECTOR_LENGTH)
    x_seq = x_seq.astype(jnp.bfloat16)                               # (S*B, D)

    # Padded lanes of the initial hidden MUST be zero (kernel invariant).
    h0p = jnp.zeros((NUM_LAYERS * B, HP), jnp.float32)
    h0p = h0p.at[:, :H].set(hidden.reshape(NUM_LAYERS * B, H))

    flat_w = []
    for wih_f, whh_f, bgi, bgh in prep["layers"]:
        flat_w += [wih_f, whh_f, bgi, bgh]

    logits_p, hf_p = pl.pallas_call(
        decoder_fused_kernel,
        out_shape=(jax.ShapeDtypeStruct((S * B, VP), jnp.float32),
                   jax.ShapeDtypeStruct((NUM_LAYERS * B, HP), jnp.float32)),
        scratch_shapes=[pltpu.VMEM((S * B, HP), jnp.float32),
                        pltpu.VMEM((S * B, HP), jnp.float32)],
    )(x_seq, h0p, *flat_w, prep["w_out"], prep["b_out"])

    logits = logits_p.reshape(S, B, VP).transpose(1, 0, 2)[:, :, :V]  # (B, S, V)
    hidden_out = hf_p.reshape(NUM_LAYERS, B, HP)[:, :, :H]            # (L, B, H)
    return logits, hidden_out


# ---------------------------------------------------------------------------
# Pure-JAX reference (for correctness check)
# ---------------------------------------------------------------------------
def gru_layer_ref(x_seq, h0, w_ih, w_hh, b_ih, b_hh):
    def step(h, x):
        gi = jnp.einsum("bd,gdh->gbh", x, w_ih) + b_ih
        gh = jnp.einsum("bh,ghk->gbk", h, w_hh) + b_hh
        r = jax.nn.sigmoid(gi[0] + gh[0])
        z = jax.nn.sigmoid(gi[1] + gh[1])
        n = jnp.tanh(gi[2] + r * gh[2])
        h_new = (1.0 - z) * n + z * h
        return h_new, h_new
    hf, ys = lax.scan(step, h0, x_seq)
    return ys, hf


def decoder_forward_ref(params, x_ids, hidden):
    emb = jnp.take(params["embedding"], x_ids, axis=0)
    x_seq = jnp.transpose(emb, (1, 0, 2))
    h_finals = []
    for l in range(NUM_LAYERS):
        x_seq, hf = gru_layer_ref(x_seq, hidden[l],
                                  params["w_ih"][l], params["w_hh"][l],
                                  params["b_ih"][l], params["b_hh"][l])
        h_finals.append(hf)
    hidden_out = jnp.stack(h_finals, axis=0)
    out_bt = jnp.transpose(x_seq, (1, 0, 2))
    logits = out_bt @ params["w_out"] + params["b_out"]
    return logits, hidden_out


# ---------------------------------------------------------------------------
# Deterministic parameter construction (synthetic; gate order [r, z, n])
# ---------------------------------------------------------------------------
def make_params(key, vocab_size):
    D, H = WORD_VECTOR_LENGTH, HIDDEN_SIZE
    ks = jax.random.split(key, 3 + 4 * NUM_LAYERS)
    scale = 1.0 / np.sqrt(H)
    params = {
        "embedding": jax.random.normal(ks[0], (vocab_size, D), jnp.float32) * 0.1,
        "w_out": jax.random.uniform(ks[1], (H, vocab_size), jnp.float32,
                                    -scale, scale),
        "b_out": jax.random.uniform(ks[2], (vocab_size,), jnp.float32,
                                    -scale, scale),
        "w_ih": [], "w_hh": [], "b_ih": [], "b_hh": [],
    }
    for l in range(NUM_LAYERS):
        d_in = D if l == 0 else H
        k0, k1, k2, k3 = ks[3 + 4 * l: 3 + 4 * (l + 1)]
        params["w_ih"].append(
            jax.random.uniform(k0, (3, d_in, H), jnp.float32, -scale, scale))
        params["w_hh"].append(
            jax.random.uniform(k1, (3, H, H), jnp.float32, -scale, scale))
        params["b_ih"].append(
            jax.random.uniform(k2, (3, 1, H), jnp.float32, -scale, scale))
        params["b_hh"].append(
            jax.random.uniform(k3, (3, 1, H), jnp.float32, -scale, scale))
    return params


if __name__ == "__main__":
    B, S, VOCAB = 2, 8, 64

    key = jax.random.PRNGKey(0)
    k_param, k_x, k_h = jax.random.split(key, 3)

    params = make_params(k_param, VOCAB)
    x_ids = jax.random.randint(k_x, (B, S), 0, VOCAB, dtype=jnp.int32)
    hidden0 = jax.random.normal(k_h, (NUM_LAYERS, B, HIDDEN_SIZE), jnp.float32) * 0.1

    # Weight fusion / padding happens ONCE, outside the jitted per-call path.
    prep = prepare_decoder_params(params)
    fwd = jax.jit(lambda xs, h: decoder_forward(prep, xs, h))

    logits, hidden_out = fwd(x_ids, hidden0)
    logits = jax.block_until_ready(logits)
    hidden_out = jax.block_until_ready(hidden_out)

    assert logits.shape == (B, S, VOCAB)
    assert hidden_out.shape == (NUM_LAYERS, B, HIDDEN_SIZE)

    # Correctness check against a pure-JAX f32 reference (bf16 matmul operands
    # with f32 accumulation -> loose tolerance).
    logits_ref, hidden_ref = decoder_forward_ref(params, x_ids, hidden0)
    assert np.allclose(np.asarray(logits), np.asarray(logits_ref),
                       rtol=2e-2, atol=2e-2)
    assert np.allclose(np.asarray(hidden_out), np.asarray(hidden_ref),
                       rtol=2e-2, atol=2e-2)

    print("KERNEL_OK")
</pallas_src>

<mosaic_0001>
module attributes {stable_mosaic.version = 11 : i64} {
  func.func @decoder_fused_kernel(%arg0: memref<16x300xbf16, #tpu.memory_space<vmem>>, %arg1: memref<6x128xf32, #tpu.memory_space<vmem>>, %arg2: memref<300x384xbf16, #tpu.memory_space<vmem>>, %arg3: memref<128x384xbf16, #tpu.memory_space<vmem>>, %arg4: memref<1x384xf32, #tpu.memory_space<vmem>>, %arg5: memref<1x384xf32, #tpu.memory_space<vmem>>, %arg6: memref<128x384xbf16, #tpu.memory_space<vmem>>, %arg7: memref<128x384xbf16, #tpu.memory_space<vmem>>, %arg8: memref<1x384xf32, #tpu.memory_space<vmem>>, %arg9: memref<1x384xf32, #tpu.memory_space<vmem>>, %arg10: memref<128x384xbf16, #tpu.memory_space<vmem>>, %arg11: memref<128x384xbf16, #tpu.memory_space<vmem>>, %arg12: memref<1x384xf32, #tpu.memory_space<vmem>>, %arg13: memref<1x384xf32, #tpu.memory_space<vmem>>, %arg14: memref<128x128xbf16, #tpu.memory_space<vmem>>, %arg15: memref<1x128xf32, #tpu.memory_space<vmem>>, %arg16: memref<16x128xf32, #tpu.memory_space<vmem>>, %arg17: memref<6x128xf32, #tpu.memory_space<vmem>>, %arg18: memref<16x128xf32, #tpu.memory_space<vmem>>, %arg19: memref<16x128xf32, #tpu.memory_space<vmem>>) attributes {dimension_semantics = [], scalar_prefetch = 0 : i64, scratch_operands = 2 : i64, tpu.core_type = #tpu.core_type<tc>} {
    %c0 = arith.constant 0 : index
    %c0_0 = arith.constant 0 : index
    %0 = vector.load %arg0[%c0, %c0_0] : memref<16x300xbf16, #tpu.memory_space<vmem>>, vector<16x300xbf16>
    %c0_1 = arith.constant 0 : index
    %c0_2 = arith.constant 0 : index
    %1 = vector.load %arg2[%c0_1, %c0_2] : memref<300x384xbf16, #tpu.memory_space<vmem>>, vector<300x384xbf16>
    %cst = arith.constant dense<0.000000e+00> : vector<16x384xf32>
    %2 = tpu.matmul %0, %1, %cst {dimension_numbers = #tpu.dot_dimension_numbers<[1], [0], [0], [1], [0, 0, 1, 1], [], []>} : vector<16x300xbf16>, vector<300x384xbf16>, vector<16x384xf32> -> vector<16x384xf32>
    %c0_3 = arith.constant 0 : index
    %c0_4 = arith.constant 0 : index
    %3 = vector.load %arg4[%c0_3, %c0_4] : memref<1x384xf32, #tpu.memory_space<vmem>>, vector<1x384xf32>
    %4 = vector.broadcast %3 : vector<1x384xf32> to vector<16x384xf32>
    %5 = arith.addf %2, %4 : vector<16x384xf32>
    %c0_5 = arith.constant 0 : index
    %c0_6 = arith.constant 0 : index
    %6 = vector.load %arg3[%c0_5, %c0_6] : memref<128x384xbf16, #tpu.memory_space<vmem>>, vector<128x384xbf16>
    %c0_7 = arith.constant 0 : index
    %c0_8 = arith.constant 0 : index
    %7 = vector.load %arg5[%c0_7, %c0_8] : memref<1x384xf32, #tpu.memory_space<vmem>>, vector<1x384xf32>
    %c0_9 = arith.constant 0 : index
    %c0_10 = arith.constant 0 : index
    %8 = vector.load %arg1[%c0_9, %c0_10] : memref<6x128xf32, #tpu.memory_space<vmem>>, vector<2x128xf32>
    %9 = vector.extract_strided_slice %5 {offsets = [0, 0], sizes = [2, 384], strides = [1, 1]} : vector<16x384xf32> to vector<2x384xf32>
    %10 = arith.truncf %8 : vector<2x128xf32> to vector<2x128xbf16>
    %cst_11 = arith.constant dense<0.000000e+00> : vector<2x384xf32>
    %11 = tpu.matmul %10, %6, %cst_11 {dimension_numbers = #tpu.dot_dimension_numbers<[1], [0], [0], [1], [0, 0, 1, 1], [], []>} : vector<2x128xbf16>, vector<128x384xbf16>, vector<2x384xf32> -> vector<2x384xf32>
    %12 = vector.broadcast %7 : vector<1x384xf32> to vector<2x384xf32>
    %13 = arith.addf %11, %12 : vector<2x384xf32>
    %14 = vector.extract_strided_slice %9 {offsets = [0, 0], sizes = [2, 128], strides = [1, 1]} : vector<2x384xf32> to vector<2x128xf32>
    %15 = vector.extract_strided_slice %13 {offsets = [0, 0], sizes = [2, 128], strides = [1, 1]} : vector<2x384xf32> to vector<2x128xf32>
    %16 = arith.addf %14, %15 : vector<2x128xf32>
    %17 = arith.negf %16 : vector<2x128xf32>
    %18 = math.exp %17 : vector<2x128xf32>
    %cst_12 = arith.constant 1.000000e+00 : f32
    %19 = vector.broadcast %cst_12 : f32 to vector<2x128xf32>
    %20 = arith.addf %19, %18 : vector<2x128xf32>
    %21 = arith.divf %19, %20 : vector<2x128xf32>
    %22 = vector.extract_strided_slice %9 {offsets = [0, 128], sizes = [2, 128], strides = [1, 1]} : vector<2x384xf32> to vector<2x128xf32>
    %23 = vector.extract_strided_slice %13 {offsets = [0, 128], sizes = [2, 128], strides = [1, 1]} : vector<2x384xf32> to vector<2x128xf32>
    %24 = arith.addf %22, %23 : vector<2x128xf32>
    %25 = arith.negf %24 : vector<2x128xf32>
    %26 = math.exp %25 : vector<2x128xf32>
    %cst_13 = arith.constant 1.000000e+00 : f32
    %27 = vector.broadcast %cst_13 : f32 to vector<2x128xf32>
    %28 = arith.addf %27, %26 : vector<2x128xf32>
    %29 = arith.divf %27, %28 : vector<2x128xf32>
    %30 = vector.extract_strided_slice %9 {offsets = [0, 256], sizes = [2, 128], strides = [1, 1]} : vector<2x384xf32> to vector<2x128xf32>
    %31 = vector.extract_strided_slice %13 {offsets = [0, 256], sizes = [2, 128], strides = [1, 1]} : vector<2x384xf32> to vector<2x128xf32>
    %32 = arith.mulf %21, %31 : vector<2x128xf32>
    %33 = arith.addf %30, %32 : vector<2x128xf32>
    %34 = math.tanh %33 : vector<2x128xf32>
    %cst_14 = arith.constant 1.000000e+00 : f32
    %35 = vector.broadcast %cst_14 : f32 to vector<2x128xf32>
    %36 = arith.subf %35, %29 : vector<2x128xf32>
    %37 = arith.mulf %36, %34 : vector<2x128xf32>
    %38 = arith.mulf %29, %8 : vector<2x128xf32>
    %39 = arith.addf %37, %38 : vector<2x128xf32>
    %c0_15 = arith.constant 0 : index
    %c0_16 = arith.constant 0 : index
    %40 = vector.load %arg18[%c0_15, %c0_16] : memref<16x128xf32, #tpu.memory_space<vmem>>, vector<2x128xf32>
    tpu.vector_store %arg18[%c0_15, %c0_16], %39 {strides = array<i32>} : memref<16x128xf32, #tpu.memory_space<vmem>>, vector<2x128xf32>,
    %41 = vector.extract_strided_slice %5 {offsets = [2, 0], sizes = [2, 384], strides = [1, 1]} : vector<16x384xf32> to vector<2x384xf32>
    %42 = arith.truncf %39 : vector<2x128xf32> to vector<2x128xbf16>
    %cst_17 = arith.constant dense<0.000000e+00> : vector<2x384xf32>
    %43 = tpu.matmul %42, %6, %cst_17 {dimension_numbers = #tpu.dot_dimension_numbers<[1], [0], [0], [1], [0, 0, 1, 1], [], []>} : vector<2x128xbf16>, vector<128x384xbf16>, vector<2x384xf32> -> vector<2x384xf32>
    %44 = vector.broadcast %7 : vector<1x384xf32> to vector<2x384xf32>
    %45 = arith.addf %43, %44 : vector<2x384xf32>
    %46 = vector.extract_strided_slice %41 {offsets = [0, 0], sizes = [2, 128], strides = [1, 1]} : vector<2x384xf32> to vector<2x128xf32>
    %47 = vector.extract_strided_slice %45 {offsets = [0, 0], sizes = [2, 128], strides = [1, 1]} : vector<2x384xf32> to vector<2x128xf32>
    %48 = arith.addf %46, %47 : vector<2x128xf32>
    %49 = arith.negf %48 : vector<2x128xf32>
    %50 = math.exp %49 : vector<2x128xf32>
    %cst_18 = arith.constant 1.000000e+00 : f32
    %51 = vector.broadcast %cst_18 : f32 to vector<2x128xf32>
    %52 = arith.addf %51, %50 : vector<2x128xf32>
    %53 = arith.divf %51, %52 : vector<2x128xf32>
    %54 = vector.extract_strided_slice %41 {offsets = [0, 128], sizes = [2, 128], strides = [1, 1]} : vector<2x384xf32> to vector<2x128xf32>
    %55 = vector.extract_strided_slice %45 {offsets = [0, 128], sizes = [2, 128], strides = [1, 1]} : vector<2x384xf32> to vector<2x128xf32>
    %56 = arith.addf %54, %55 : vector<2x128xf32>
    %57 = arith.negf %56 : vector<2x128xf32>
    %58 = math.exp %57 : vector<2x128xf32>
    %cst_19 = arith.constant 1.000000e+00 : f32
    %59 = vector.broadcast %cst_19 : f32 to vector<2x128xf32>
    %60 = arith.addf %59, %58 : vector<2x128xf32>
    %61 = arith.divf %59, %60 : vector<2x128xf32>
    %62 = vector.extract_strided_slice %41 {offsets = [0, 256], sizes = [2, 128], strides = [1, 1]} : vector<2x384xf32> to vector<2x128xf32>
    %63 = vector.extract_strided_slice %45 {offsets = [0, 256], sizes = [2, 128], strides = [1, 1]} : vector<2x384xf32> to vector<2x128xf32>
    %64 = arith.mulf %53, %63 : vector<2x128xf32>
    %65 = arith.addf %62, %64 : vector<2x128xf32>
    %66 = math.tanh %65 : vector<2x128xf32>
    %cst_20 = arith.constant 1.000000e+00 : f32
    %67 = vector.broadcast %cst_20 : f32 to vector<2x128xf32>
    %68 = arith.subf %67, %61 : vector<2x128xf32>
    %69 = arith.mulf %68, %66 : vector<2x128xf32>
    %70 = arith.mulf %61, %39 : vector<2x128xf32>
    %71 = arith.addf %69, %70 : vector<2x128xf32>
    %c2 = arith.constant 2 : index
    %c0_21 = arith.constant 0 : index
    %72 = vector.load %arg18[%c2, %c0_21] : memref<16x128xf32, #tpu.memory_space<vmem>>, vector<2x128xf32>
    tpu.vector_store %arg18[%c2, %c0_21], %71 {strides = array<i32>} : memref<16x128xf32, #tpu.memory_space<vmem>>, vector<2x128xf32>,
    %73 = vector.extract_strided_slice %5 {offsets = [4, 0], sizes = [2, 384], strides = [1, 1]} : vector<16x384xf32> to vector<2x384xf32>
    %74 = arith.truncf %71 : vector<2x128xf32> to vector<2x128xbf16>
    %cst_22 = arith.constant dense<0.000000e+00> : vector<2x384xf32>
    %75 = tpu.matmul %74, %6, %cst_22 {dimension_numbers = #tpu.dot_dimension_numbers<[1], [0], [0], [1], [0, 0, 1, 1], [], []>} : vector<2x128xbf16>, vector<128x384xbf16>, vector<2x384xf32> -> vector<2x384xf32>
    %76 = vector.broadcast %7 : vector<1x384xf32> to vector<2x384xf32>
    %77 = arith.addf %75, %76 : vector<2x384xf32>
    %78 = vector.extract_strided_slice %73 {offsets = [0, 0], sizes = [2, 128], strides = [1, 1]} : vector<2x384xf32> to vector<2x128xf32>
    %79 = vector.extract_strided_slice %77 {offsets = [0, 0], sizes = [2, 128], strides = [1, 1]} : vector<2x384xf32> to vector<2x128xf32>
    %80 = arith.addf %78, %79 : vector<2x128xf32>
    %81 = arith.negf %80 : vector<2x128xf32>
    %82 = math.exp %81 : vector<2x128xf32>
    %cst_23 = arith.constant 1.000000e+00 : f32
    %83 = vector.broadcast %cst_23 : f32 to vector<2x128xf32>
    %84 = arith.addf %83, %82 : vector<2x128xf32>
    %85 = arith.divf %83, %84 : vector<2x128xf32>
    %86 = vector.extract_strided_slice %73 {offsets = [0, 128], sizes = [2, 128], strides = [1, 1]} : vector<2x384xf32> to vector<2x128xf32>
    %87 = vector.extract_strided_slice %77 {offsets = [0, 128], sizes = [2, 128], strides = [1, 1]} : vector<2x384xf32> to vector<2x128xf32>
    %88 = arith.addf %86, %87 : vector<2x128xf32>
    %89 = arith.negf %88 : vector<2x128xf32>
    %90 = math.exp %89 : vector<2x128xf32>
    %cst_24 = arith.constant 1.000000e+00 : f32
    %91 = vector.broadcast %cst_24 : f32 to vector<2x128xf32>
    %92 = arith.addf %91, %90 : vector<2x128xf32>
    %93 = arith.divf %91, %92 : vector<2x128xf32>
    %94 = vector.extract_strided_slice %73 {offsets = [0, 256], sizes = [2, 128], strides = [1, 1]} : vector<2x384xf32> to vector<2x128xf32>
    %95 = vector.extract_strided_slice %77 {offsets = [0, 256], sizes = [2, 128], strides = [1, 1]} : vector<2x384xf32> to vector<2x128xf32>
    %96 = arith.mulf %85, %95 : vector<2x128xf32>
    %97 = arith.addf %94, %96 : vector<2x128xf32>
    %98 = math.tanh %97 : vector<2x128xf32>
    %cst_25 = arith.constant 1.000000e+00 : f32
    %99 = vector.broadcast %cst_25 : f32 to vector<2x128xf32>
    %100 = arith.subf %99, %93 : vector<2x128xf32>
    %101 = arith.mulf %100, %98 : vector<2x128xf32>
    %102 = arith.mulf %93, %71 : vector<2x128xf32>
    %103 = arith.addf %101, %102 : vector<2x128xf32>
    %c4 = arith.constant 4 : index
    %c0_26 = arith.constant 0 : index
    %104 = vector.load %arg18[%c4, %c0_26] : memref<16x128xf32, #tpu.memory_space<vmem>>, vector<2x128xf32>
    tpu.vector_store %arg18[%c4, %c0_26], %103 {strides = array<i32>} : memref<16x128xf32, #tpu.memory_space<vmem>>, vector<2x128xf32>,
    %105 = vector.extract_strided_slice %5 {offsets = [6, 0], sizes = [2, 384], strides = [1, 1]} : vector<16x384xf32> to vector<2x384xf32>
    %106 = arith.truncf %103 : vector<2x128xf32> to vector<2x128xbf16>
    %cst_27 = arith.constant dense<0.000000e+00> : vector<2x384xf32>
    %107 = tpu.matmul %106, %6, %cst_27 {dimension_numbers = #tpu.dot_dimension_numbers<[1], [0], [0], [1], [0, 0, 1, 1], [], []>} : vector<2x128xbf16>, vector<128x384xbf16>, vector<2x384xf32> -> vector<2x384xf32>
    %108 = vector.broadcast %7 : vector<1x384xf32> to vector<2x384xf32>
    %109 = arith.addf %107, %108 : vector<2x384xf32>
    %110 = vector.extract_strided_slice %105 {offsets = [0, 0], sizes = [2, 128], strides = [1, 1]} : vector<2x384xf32> to vector<2x128xf32>
    %111 = vector.extract_strided_slice %109 {offsets = [0, 0], sizes = [2, 128], strides = [1, 1]} : vector<2x384xf32> to vector<2x128xf32>
    %112 = arith.addf %110, %111 : vector<2x128xf32>
    %113 = arith.negf %112 : vector<2x128xf32>
    %114 = math.exp %113 : vector<2x128xf32>
    %cst_28 = arith.constant 1.000000e+00 : f32
    %115 = vector.broadcast %cst_28 : f32 to vector<2x128xf32>
    %116 = arith.addf %115, %114 : vector<2x128xf32>
    %117 = arith.divf %115, %116 : vector<2x128xf32>
    %118 = vector.extract_strided_slice %105 {offsets = [0, 128], sizes = [2, 128], strides = [1, 1]} : vector<2x384xf32> to vector<2x128xf32>
    %119 = vector.extract_strided_slice %109 {offsets = [0, 128], sizes = [2, 128], strides = [1, 1]} : vector<2x384xf32> to vector<2x128xf32>
    %120 = arith.addf %118, %119 : vector<2x128xf32>
    %121 = arith.negf %120 : vector<2x128xf32>
    %122 = math.exp %121 : vector<2x128xf32>
    %cst_29 = arith.constant 1.000000e+00 : f32
    %123 = vector.broadcast %cst_29 : f32 to vector<2x128xf32>
    %124 = arith.addf %123, %122 : vector<2x128xf32>
    %125 = arith.divf %123, %124 : vector<2x128xf32>
    %126 = vector.extract_strided_slice %105 {offsets = [0, 256], sizes = [2, 128], strides = [1, 1]} : vector<2x384xf32> to vector<2x128xf32>
    %127 = vector.extract_strided_slice %109 {offsets = [0, 256], sizes = [2, 128], strides = [1, 1]} : vector<2x384xf32> to vector<2x128xf32>
    %128 = arith.mulf %117, %127 : vector<2x128xf32>
    %129 = arith.addf %126, %128 : vector<2x128xf32>
    %130 = math.tanh %129 : vector<2x128xf32>
    %cst_30 = arith.constant 1.000000e+00 : f32
    %131 = vector.broadcast %cst_30 : f32 to vector<2x128xf32>
    %132 = arith.subf %131, %125 : vector<2x128xf32>
    %133 = arith.mulf %132, %130 : vector<2x128xf32>
    %134 = arith.mulf %125, %103 : vector<2x128xf32>
    %135 = arith.addf %133, %134 : vector<2x128xf32>
    %c6 = arith.constant 6 : index
    %c0_31 = arith.constant 0 : index
    %136 = vector.load %arg18[%c6, %c0_31] : memref<16x128xf32, #tpu.memory_space<vmem>>, vector<2x128xf32>
    tpu.vector_store %arg18[%c6, %c0_31], %135 {strides = array<i32>} : memref<16x128xf32, #tpu.memory_space<vmem>>, vector<2x128xf32>,
    %137 = vector.extract_strided_slice %5 {offsets = [8, 0], sizes = [2, 384], strides = [1, 1]} : vector<16x384xf32> to vector<2x384xf32>
    %138 = arith.truncf %135 : vector<2x128xf32> to vector<2x128xbf16>
    %cst_32 = arith.constant dense<0.000000e+00> : vector<2x384xf32>
    %139 = tpu.matmul %138, %6, %cst_32 {dimension_numbers = #tpu.dot_dimension_numbers<[1], [0], [0], [1], [0, 0, 1, 1], [], []>} : vector<2x128xbf16>, vector<128x384xbf16>, vector<2x384xf32> -> vector<2x384xf32>
    %140 = vector.broadcast %7 : vector<1x384xf32> to vector<2x384xf32>
    %141 = arith.addf %139, %140 : vector<2x384xf32>
    %142 = vector.extract_strided_slice %137 {offsets = [0, 0], sizes = [2, 128], strides = [1, 1]} : vector<2x384xf32> to vector<2x128xf32>
    %143 = vector.extract_strided_slice %141 {offsets = [0, 0], sizes = [2, 128], strides = [1, 1]} : vector<2x384xf32> to vector<2x128xf32>
    %144 = arith.addf %142, %143 : vector<2x128xf32>
    %145 = arith.negf %144 : vector<2x128xf32>
    %146 = math.exp %145 : vector<2x128xf32>
    %cst_33 = arith.constant 1.000000e+00 : f32
    %147 = vector.broadcast %cst_33 : f32 to vector<2x128xf32>
    %148 = arith.addf %147, %146 : vector<2x128xf32>
    %149 = arith.divf %147, %148 : vector<2x128xf32>
    %150 = vector.extract_strided_slice %137 {offsets = [0, 128], sizes = [2, 128], strides = [1, 1]} : vector<2x384xf32> to vector<2x128xf32>
    %151 = vector.extract_strided_slice %141 {offsets = [0, 128], sizes = [2, 128], strides = [1, 1]} : vector<2x384xf32> to vector<2x128xf32>
    %152 = arith.addf %150, %151 : vector<2x128xf32>
    %153 = arith.negf %152 : vector<2x128xf32>
    %154 = math.exp %153 : vector<2x128xf32>
    %cst_34 = arith.constant 1.000000e+00 : f32
    %155 = vector.broadcast %cst_34 : f32 to vector<2x128xf32>
    %156 = arith.addf %155, %154 : vector<2x128xf32>
    %157 = arith.divf %155, %156 : vector<2x128xf32>
    %158 = vector.extract_strided_slice %137 {offsets = [0, 256], sizes = [2, 128], strides = [1, 1]} : vector<2x384xf32> to vector<2x128xf32>
    %159 = vector.extract_strided_slice %141 {offsets = [0, 256], sizes = [2, 128], strides = [1, 1]} : vector<2x384xf32> to vector<2x128xf32>
    %160 = arith.mulf %149, %159 : vector<2x128xf32>
    %161 = arith.addf %158, %160 : vector<2x128xf32>
    %162 = math.tanh %161 : vector<2x128xf32>
    %cst_35 = arith.constant 1.000000e+00 : f32
    %163 = vector.broadcast %cst_35 : f32 to vector<2x128xf32>
    %164 = arith.subf %163, %157 : vector<2x128xf32>
    %165 = arith.mulf %164, %162 : vector<2x128xf32>
    %166 = arith.mulf %157, %135 : vector<2x128xf32>
    %167 = arith.addf %165, %166 : vector<2x128xf32>
    %c8 = arith.constant 8 : index
    %c0_36 = arith.constant 0 : index
    %168 = vector.load %arg18[%c8, %c0_36] : memref<16x128xf32, #tpu.memory_space<vmem>>, vector<2x128xf32>
    tpu.vector_store %arg18[%c8, %c0_36], %167 {strides = array<i32>} : memref<16x128xf32, #tpu.memory_space<vmem>>, vector<2x128xf32>,
    %169 = vector.extract_strided_slice %5 {offsets = [10, 0], sizes = [2, 384], strides = [1, 1]} : vector<16x384xf32> to vector<2x384xf32>
    %170 = arith.truncf %167 : vector<2x128xf32> to vector<2x128xbf16>
    %cst_37 = arith.constant dense<0.000000e+00> : vector<2x384xf32>
    %171 = tpu.matmul %170, %6, %cst_37 {dimension_numbers = #tpu.dot_dimension_numbers<[1], [0], [0], [1], [0, 0, 1, 1], [], []>} : vector<2x128xbf16>, vector<128x384xbf16>, vector<2x384xf32> -> vector<2x384xf32>
    %172 = vector.broadcast %7 : vector<1x384xf32> to vector<2x384xf32>
    %173 = arith.addf %171, %172 : vector<2x384xf32>
    %174 = vector.extract_strided_slice %169 {offsets = [0, 0], sizes = [2, 128], strides = [1, 1]} : vector<2x384xf32> to vector<2x128xf32>
    %175 = vector.extract_strided_slice %173 {offsets = [0, 0], sizes = [2, 128], strides = [1, 1]} : vector<2x384xf32> to vector<2x128xf32>
    %176 = arith.addf %174, %175 : vector<2x128xf32>
    %177 = arith.negf %176 : vector<2x128xf32>
    %178 = math.exp %177 : vector<2x128xf32>
    %cst_38 = arith.constant 1.000000e+00 : f32
    %179 = vector.broadcast %cst_38 : f32 to vector<2x128xf32>
    %180 = arith.addf %179, %178 : vector<2x128xf32>
    %181 = arith.divf %179, %180 : vector<2x128xf32>
    %182 = vector.extract_strided_slice %169 {offsets = [0, 128], sizes = [2, 128], strides = [1, 1]} : vector<2x384xf32> to vector<2x128xf32>
    %183 = vector.extract_strided_slice %173 {offsets = [0, 128], sizes = [2, 128], strides = [1, 1]} : vector<2x384xf32> to vector<2x128xf32>
    %184 = arith.addf %182, %183 : vector<2x128xf32>
    %185 = arith.negf %184 : vector<2x128xf32>
    %186 = math.exp %185 : vector<2x128xf32>
    %cst_39 = arith.constant 1.000000e+00 : f32
    %187 = vector.broadcast %cst_39 : f32 to vector<2x128xf32>
    %188 = arith.addf %187, %186 : vector<2x128xf32>
    %189 = arith.divf %187, %188 : vector<2x128xf32>
    %190 = vector.extract_strided_slice %169 {offsets = [0, 256], sizes = [2, 128], strides = [1, 1]} : vector<2x384xf32> to vector<2x128xf32>
    %191 = vector.extract_strided_slice %173 {offsets = [0, 256], sizes = [2, 128], strides = [1, 1]} : vector<2x384xf32> to vector<2x128xf32>
    %192 = arith.mulf %181, %191 : vector<2x128xf32>
    %193 = arith.addf %190, %192 : vector<2x128xf32>
    %194 = math.tanh %193 : vector<2x128xf32>
    %cst_40 = arith.constant 1.000000e+00 : f32
    %195 = vector.broadcast %cst_40 : f32 to vector<2x128xf32>
    %196 = arith.subf %195, %189 : vector<2x128xf32>
    %197 = arith.mulf %196, %194 : vector<2x128xf32>
    %198 = arith.mulf %189, %167 : vector<2x128xf32>
    %199 = arith.addf %197, %198 : vector<2x128xf32>
    %c10 = arith.constant 10 : index
    %c0_41 = arith.constant 0 : index
    %200 = vector.load %arg18[%c10, %c0_41] : memref<16x128xf32, #tpu.memory_space<vmem>>, vector<2x128xf32>
    tpu.vector_store %arg18[%c10, %c0_41], %199 {strides = array<i32>} : memref<16x128xf32, #tpu.memory_space<vmem>>, vector<2x128xf32>,
    %201 = vector.extract_strided_slice %5 {offsets = [12, 0], sizes = [2, 384], strides = [1, 1]} : vector<16x384xf32> to vector<2x384xf32>
    %202 = arith.truncf %199 : vector<2x128xf32> to vector<2x128xbf16>
    %cst_42 = arith.constant dense<0.000000e+00> : vector<2x384xf32>
    %203 = tpu.matmul %202, %6, %cst_42 {dimension_numbers = #tpu.dot_dimension_numbers<[1], [0], [0], [1], [0, 0, 1, 1], [], []>} : vector<2x128xbf16>, vector<128x384xbf16>, vector<2x384xf32> -> vector<2x384xf32>
    %204 = vector.broadcast %7 : vector<1x384xf32> to vector<2x384xf32>
    %205 = arith.addf %203, %204 : vector<2x384xf32>
    %206 = vector.extract_strided_slice %201 {offsets = [0, 0], sizes = [2, 128], strides = [1, 1]} : vector<2x384xf32> to vector<2x128xf32>
    %207 = vector.extract_strided_slice %205 {offsets = [0, 0], sizes = [2, 128], strides = [1, 1]} : vector<2x384xf32> to vector<2x128xf32>
    %208 = arith.addf %206, %207 : vector<2x128xf32>
    %209 = arith.negf %208 : vector<2x128xf32>
    %210 = math.exp %209 : vector<2x128xf32>
    %cst_43 = arith.constant 1.000000e+00 : f32
    %211 = vector.broadcast %cst_43 : f32 to vector<2x128xf32>
    %212 = arith.addf %211, %210 : vector<2x128xf32>
    %213 = arith.divf %211, %212 : vector<2x128xf32>
    %214 = vector.extract_strided_slice %201 {offsets = [0, 128], sizes = [2, 128], strides = [1, 1]} : vector<2x384xf32> to vector<2x128xf32>
    %215 = vector.extract_strided_slice %205 {offsets = [0, 128], sizes = [2, 128], strides = [1, 1]} : vector<2x384xf32> to vector<2x128xf32>
    %216 = arith.addf %214, %215 : vector<2x128xf32>
    %217 = arith.negf %216 : vector<2x128xf32>
    %218 = math.exp %217 : vector<2x128xf32>
    %cst_44 = arith.constant 1.000000e+00 : f32
    %219 = vector.broadcast %cst_44 : f32 to vector<2x128xf32>
    %220 = arith.addf %219, %218 : vector<2x128xf32>
    %221 = arith.divf %219, %220 : vector<2x128xf32>
    %222 = vector.extract_strided_slice %201 {offsets = [0, 256], sizes = [2, 128], strides = [1, 1]} : vector<2x384xf32> to vector<2x128xf32>
    %223 = vector.extract_strided_slice %205 {offsets = [0, 256], sizes = [2, 128], strides = [1, 1]} : vector<2x384xf32> to vector<2x128xf32>
    %224 = arith.mulf %213, %223 : vector<2x128xf32>
    %225 = arith.addf %222, %224 : vector<2x128xf32>
    %226 = math.tanh %225 : vector<2x128xf32>
    %cst_45 = arith.constant 1.000000e+00 : f32
    %227 = vector.broadcast %cst_45 : f32 to vector<2x128xf32>
    %228 = arith.subf %227, %221 : vector<2x128xf32>
    %229 = arith.mulf %228, %226 : vector<2x128xf32>
    %230 = arith.mulf %221, %199 : vector<2x128xf32>
    %231 = arith.addf %229, %230 : vector<2x128xf32>
    %c12 = arith.constant 12 : index
    %c0_46 = arith.constant 0 : index
    %232 = vector.load %arg18[%c12, %c0_46] : memref<16x128xf32, #tpu.memory_space<vmem>>, vector<2x128xf32>
    tpu.vector_store %arg18[%c12, %c0_46], %231 {strides = array<i32>} : memref<16x128xf32, #tpu.memory_space<vmem>>, vector<2x128xf32>,
    %233 = vector.extract_strided_slice %5 {offsets = [14, 0], sizes = [2, 384], strides = [1, 1]} : vector<16x384xf32> to vector<2x384xf32>
    %234 = arith.truncf %231 : vector<2x128xf32> to vector<2x128xbf16>
    %cst_47 = arith.constant dense<0.000000e+00> : vector<2x384xf32>
    %235 = tpu.matmul %234, %6, %cst_47 {dimension_numbers = #tpu.dot_dimension_numbers<[1], [0], [0], [1], [0, 0, 1, 1], [], []>} : vector<2x128xbf16>, vector<128x384xbf16>, vector<2x384xf32> -> vector<2x384xf32>
    %236 = vector.broadcast %7 : vector<1x384xf32> to vector<2x384xf32>
    %237 = arith.addf %235, %236 : vector<2x384xf32>
    %238 = vector.extract_strided_slice %233 {offsets = [0, 0], sizes = [2, 128], strides = [1, 1]} : vector<2x384xf32> to vector<2x128xf32>
    %239 = vector.extract_strided_slice %237 {offsets = [0, 0], sizes = [2, 128], strides = [1, 1]} : vector<2x384xf32> to vector<2x128xf32>
    %240 = arith.addf %238, %239 : vector<2x128xf32>
    %241 = arith.negf %240 : vector<2x128xf32>
    %242 = math.exp %241 : vector<2x128xf32>
    %cst_48 = arith.constant 1.000000e+00 : f32
    %243 = vector.broadcast %cst_48 : f32 to vector<2x128xf32>
    %244 = arith.addf %243, %242 : vector<2x128xf32>
    %245 = arith.divf %243, %244 : vector<2x128xf32>
    %246 = vector.extract_strided_slice %233 {offsets = [0, 128], sizes = [2, 128], strides = [1, 1]} : vector<2x384xf32> to vector<2x128xf32>
    %247 = vector.extract_strided_slice %237 {offsets = [0, 128], sizes = [2, 128], strides = [1, 1]} : vector<2x384xf32> to vector<2x128xf32>
    %248 = arith.addf %246, %247 : vector<2x128xf32>
    %249 = arith.negf %248 : vector<2x128xf32>
    %250 = math.exp %249 : vector<2x128xf32>
    %cst_49 = arith.constant 1.000000e+00 : f32
    %251 = vector.broadcast %cst_49 : f32 to vector<2x128xf32>
    %252 = arith.addf %251, %250 : vector<2x128xf32>
    %253 = arith.divf %251, %252 : vector<2x128xf32>
    %254 = vector.extract_strided_slice %233 {offsets = [0, 256], sizes = [2, 128], strides = [1, 1]} : vector<2x384xf32> to vector<2x128xf32>
    %255 = vector.extract_strided_slice %237 {offsets = [0, 256], sizes = [2, 128], strides = [1, 1]} : vector<2x384xf32> to vector<2x128xf32>
    %256 = arith.mulf %245, %255 : vector<2x128xf32>
    %257 = arith.addf %254, %256 : vector<2x128xf32>
    %258 = math.tanh %257 : vector<2x128xf32>
    %cst_50 = arith.constant 1.000000e+00 : f32
    %259 = vector.broadcast %cst_50 : f32 to vector<2x128xf32>
    %260 = arith.subf %259, %253 : vector<2x128xf32>
    %261 = arith.mulf %260, %258 : vector<2x128xf32>
    %262 = arith.mulf %253, %231 : vector<2x128xf32>
    %263 = arith.addf %261, %262 : vector<2x128xf32>
    %c14 = arith.constant 14 : index
    %c0_51 = arith.constant 0 : index
    %264 = vector.load %arg18[%c14, %c0_51] : memref<16x128xf32, #tpu.memory_space<vmem>>, vector<2x128xf32>
    tpu.vector_store %arg18[%c14, %c0_51], %263 {strides = array<i32>} : memref<16x128xf32, #tpu.memory_space<vmem>>, vector<2x128xf32>,
    %c0_52 = arith.constant 0 : index
    %c0_53 = arith.constant 0 : index
    %265 = vector.load %arg17[%c0_52, %c0_53] : memref<6x128xf32, #tpu.memory_space<vmem>>, vector<2x128xf32>
    tpu.vector_store %arg17[%c0_52, %c0_53], %263 {strides = array<i32>} : memref<6x128xf32, #tpu.memory_space<vmem>>, vector<2x128xf32>,
    %c0_54 = arith.constant 0 : index
    %c0_55 = arith.constant 0 : index
    %266 = vector.load %arg18[%c0_54, %c0_55] : memref<16x128xf32, #tpu.memory_space<vmem>>, vector<16x128xf32>
    %267 = arith.truncf %266 : vector<16x128xf32> to vector<16x128xbf16>
    %c0_56 = arith.constant 0 : index
    %c0_57 = arith.constant 0 : index
    %268 = vector.load %arg6[%c0_56, %c0_57] : memref<128x384xbf16, #tpu.memory_space<vmem>>, vector<128x384xbf16>
    %cst_58 = arith.constant dense<0.000000e+00> : vector<16x384xf32>
    %269 = tpu.matmul %267, %268, %cst_58 {dimension_numbers = #tpu.dot_dimension_numbers<[1], [0], [0], [1], [0, 0, 1, 1], [], []>} : vector<16x128xbf16>, vector<128x384xbf16>, vector<16x384xf32> -> vector<16x384xf32>
    %c0_59 = arith.constant 0 : index
    %c0_60 = arith.constant 0 : index
    %270 = vector.load %arg8[%c0_59, %c0_60] : memref<1x384xf32, #tpu.memory_space<vmem>>, vector<1x384xf32>
    %271 = vector.broadcast %270 : vector<1x384xf32> to vector<16x384xf32>
    %272 = arith.addf %269, %271 : vector<16x384xf32>
    %c0_61 = arith.constant 0 : index
    %c0_62 = arith.constant 0 : index
    %273 = vector.load %arg7[%c0_61, %c0_62] : memref<128x384xbf16, #tpu.memory_space<vmem>>, vector<128x384xbf16>
    %c0_63 = arith.constant 0 : index
    %c0_64 = arith.constant 0 : index
    %274 = vector.load %arg9[%c0_63, %c0_64] : memref<1x384xf32, #tpu.memory_space<vmem>>, vector<1x384xf32>
    %c2_65 = arith.constant 2 : index
    %c0_66 = arith.constant 0 : index
    %275 = vector.load %arg1[%c2_65, %c0_66] : memref<6x128xf32, #tpu.memory_space<vmem>>, vector<2x128xf32>
    %276 = vector.extract_strided_slice %272 {offsets = [0, 0], sizes = [2, 384], strides = [1, 1]} : vector<16x384xf32> to vector<2x384xf32>
    %277 = arith.truncf %275 : vector<2x128xf32> to vector<2x128xbf16>
    %cst_67 = arith.constant dense<0.000000e+00> : vector<2x384xf32>
    %278 = tpu.matmul %277, %273, %cst_67 {dimension_numbers = #tpu.dot_dimension_numbers<[1], [0], [0], [1], [0, 0, 1, 1], [], []>} : vector<2x128xbf16>, vector<128x384xbf16>, vector<2x384xf32> -> vector<2x384xf32>
    %279 = vector.broadcast %274 : vector<1x384xf32> to vector<2x384xf32>
    %280 = arith.addf %278, %279 : vector<2x384xf32>
    %281 = vector.extract_strided_slice %276 {offsets = [0, 0], sizes = [2, 128], strides = [1, 1]} : vector<2x384xf32> to vector<2x128xf32>
    %282 = vector.extract_strided_slice %280 {offsets = [0, 0], sizes = [2, 128], strides = [1, 1]} : vector<2x384xf32> to vector<2x128xf32>
    %283 = arith.addf %281, %282 : vector<2x128xf32>
    %284 = arith.negf %283 : vector<2x128xf32>
    %285 = math.exp %284 : vector<2x128xf32>
    %cst_68 = arith.constant 1.000000e+00 : f32
    %286 = vector.broadcast %cst_68 : f32 to vector<2x128xf32>
    %287 = arith.addf %286, %285 : vector<2x128xf32>
    %288 = arith.divf %286, %287 : vector<2x128xf32>
    %289 = vector.extract_strided_slice %276 {offsets = [0, 128], sizes = [2, 128], strides = [1, 1]} : vector<2x384xf32> to vector<2x128xf32>
    %290 = vector.extract_strided_slice %280 {offsets = [0, 128], sizes = [2, 128], strides = [1, 1]} : vector<2x384xf32> to vector<2x128xf32>
    %291 = arith.addf %289, %290 : vector<2x128xf32>
    %292 = arith.negf %291 : vector<2x128xf32>
    %293 = math.exp %292 : vector<2x128xf32>
    %cst_69 = arith.constant 1.000000e+00 : f32
    %294 = vector.broadcast %cst_69 : f32 to vector<2x128xf32>
    %295 = arith.addf %294, %293 : vector<2x128xf32>
    %296 = arith.divf %294, %295 : vector<2x128xf32>
    %297 = vector.extract_strided_slice %276 {offsets = [0, 256], sizes = [2, 128], strides = [1, 1]} : vector<2x384xf32> to vector<2x128xf32>
    %298 = vector.extract_strided_slice %280 {offsets = [0, 256], sizes = [2, 128], strides = [1, 1]} : vector<2x384xf32> to vector<2x128xf32>
    %299 = arith.mulf %288, %298 : vector<2x128xf32>
    %300 = arith.addf %297, %299 : vector<2x128xf32>
    %301 = math.tanh %300 : vector<2x128xf32>
    %cst_70 = arith.constant 1.000000e+00 : f32
    %302 = vector.broadcast %cst_70 : f32 to vector<2x128xf32>
    %303 = arith.subf %302, %296 : vector<2x128xf32>
    %304 = arith.mulf %303, %301 : vector<2x128xf32>
    %305 = arith.mulf %296, %275 : vector<2x128xf32>
    %306 = arith.addf %304, %305 : vector<2x128xf32>
    %c0_71 = arith.constant 0 : index
    %c0_72 = arith.constant 0 : index
    %307 = vector.load %arg19[%c0_71, %c0_72] : memref<16x128xf32, #tpu.memory_space<vmem>>, vector<2x128xf32>
    tpu.vector_store %arg19[%c0_71, %c0_72], %306 {strides = array<i32>} : memref<16x128xf32, #tpu.memory_space<vmem>>, vector<2x128xf32>,
    %308 = vector.extract_strided_slice %272 {offsets = [2, 0], sizes = [2, 384], strides = [1, 1]} : vector<16x384xf32> to vector<2x384xf32>
    %309 = arith.truncf %306 : vector<2x128xf32> to vector<2x128xbf16>
    %cst_73 = arith.constant dense<0.000000e+00> : vector<2x384xf32>
    %310 = tpu.matmul %309, %273, %cst_73 {dimension_numbers = #tpu.dot_dimension_numbers<[1], [0], [0], [1], [0, 0, 1, 1], [], []>} : vector<2x128xbf16>, vector<128x384xbf16>, vector<2x384xf32> -> vector<2x384xf32>
    %311 = vector.broadcast %274 : vector<1x384xf32> to vector<2x384xf32>
    %312 = arith.addf %310, %311 : vector<2x384xf32>
    %313 = vector.extract_strided_slice %308 {offsets = [0, 0], sizes = [2, 128], strides = [1, 1]} : vector<2x384xf32> to vector<2x128xf32>
    %314 = vector.extract_strided_slice %312 {offsets = [0, 0], sizes = [2, 128], strides = [1, 1]} : vector<2x384xf32> to vector<2x128xf32>
    %315 = arith.addf %313, %314 : vector<2x128xf32>
    %316 = arith.negf %315 : vector<2x128xf32>
    %317 = math.exp %316 : vector<2x128xf32>
    %cst_74 = arith.constant 1.000000e+00 : f32
    %318 = vector.broadcast %cst_74 : f32 to vector<2x128xf32>
    %319 = arith.addf %318, %317 : vector<2x128xf32>
    %320 = arith.divf %318, %319 : vector<2x128xf32>
    %321 = vector.extract_strided_slice %308 {offsets = [0, 128], sizes = [2, 128], strides = [1, 1]} : vector<2x384xf32> to vector<2x128xf32>
    %322 = vector.extract_strided_slice %312 {offsets = [0, 128], sizes = [2, 128], strides = [1, 1]} : vector<2x384xf32> to vector<2x128xf32>
    %323 = arith.addf %321, %322 : vector<2x128xf32>
    %324 = arith.negf %323 : vector<2x128xf32>
    %325 = math.exp %324 : vector<2x128xf32>
    %cst_75 = arith.constant 1.000000e+00 : f32
    %326 = vector.broadcast %cst_75 : f32 to vector<2x128xf32>
    %327 = arith.addf %326, %325 : vector<2x128xf32>
    %328 = arith.divf %326, %327 : vector<2x128xf32>
    %329 = vector.extract_strided_slice %308 {offsets = [0, 256], sizes = [2, 128], strides = [1, 1]} : vector<2x384xf32> to vector<2x128xf32>
    %330 = vector.extract_strided_slice %312 {offsets = [0, 256], sizes = [2, 128], strides = [1, 1]} : vector<2x384xf32> to vector<2x128xf32>
    %331 = arith.mulf %320, %330 : vector<2x128xf32>
    %332 = arith.addf %329, %331 : vector<2x128xf32>
    %333 = math.tanh %332 : vector<2x128xf32>
    %cst_76 = arith.constant 1.000000e+00 : f32
    %334 = vector.broadcast %cst_76 : f32 to vector<2x128xf32>
    %335 = arith.subf %334, %328 : vector<2x128xf32>
    %336 = arith.mulf %335, %333 : vector<2x128xf32>
    %337 = arith.mulf %328, %306 : vector<2x128xf32>
    %338 = arith.addf %336, %337 : vector<2x128xf32>
    %c2_77 = arith.constant 2 : index
    %c0_78 = arith.constant 0 : index
    %339 = vector.load %arg19[%c2_77, %c0_78] : memref<16x128xf32, #tpu.memory_space<vmem>>, vector<2x128xf32>
    tpu.vector_store %arg19[%c2_77, %c0_78], %338 {strides = array<i32>} : memref<16x128xf32, #tpu.memory_space<vmem>>, vector<2x128xf32>,
    %340 = vector.extract_strided_slice %272 {offsets = [4, 0], sizes = [2, 384], strides = [1, 1]} : vector<16x384xf32> to vector<2x384xf32>
    %341 = arith.truncf %338 : vector<2x128xf32> to vector<2x128xbf16>
    %cst_79 = arith.constant dense<0.000000e+00> : vector<2x384xf32>
    %342 = tpu.matmul %341, %273, %cst_79 {dimension_numbers = #tpu.dot_dimension_numbers<[1], [0], [0], [1], [0, 0, 1, 1], [], []>} : vector<2x128xbf16>, vector<128x384xbf16>, vector<2x384xf32> -> vector<2x384xf32>
    %343 = vector.broadcast %274 : vector<1x384xf32> to vector<2x384xf32>
    %344 = arith.addf %342, %343 : vector<2x384xf32>
    %345 = vector.extract_strided_slice %340 {offsets = [0, 0], sizes = [2, 128], strides = [1, 1]} : vector<2x384xf32> to vector<2x128xf32>
    %346 = vector.extract_strided_slice %344 {offsets = [0, 0], sizes = [2, 128], strides = [1, 1]} : vector<2x384xf32> to vector<2x128xf32>
    %347 = arith.addf %345, %346 : vector<2x128xf32>
    %348 = arith.negf %347 : vector<2x128xf32>
    %349 = math.exp %348 : vector<2x128xf32>
    %cst_80 = arith.constant 1.000000e+00 : f32
    %350 = vector.broadcast %cst_80 : f32 to vector<2x128xf32>
    %351 = arith.addf %350, %349 : vector<2x128xf32>
    %352 = arith.divf %350, %351 : vector<2x128xf32>
    %353 = vector.extract_strided_slice %340 {offsets = [0, 128], sizes = [2, 128], strides = [1, 1]} : vector<2x384xf32> to vector<2x128xf32>
    %354 = vector.extract_strided_slice %344 {offsets = [0, 128], sizes = [2, 128], strides = [1, 1]} : vector<2x384xf32> to vector<2x128xf32>
    %355 = arith.addf %353, %354 : vector<2x128xf32>
    %356 = arith.negf %355 : vector<2x128xf32>
    %357 = math.exp %356 : vector<2x128xf32>
    %cst_81 = arith.constant 1.000000e+00 : f32
    %358 = vector.broadcast %cst_81 : f32 to vector<2x128xf32>
    %359 = arith.addf %358, %357 : vector<2x128xf32>
    %360 = arith.divf %358, %359 : vector<2x128xf32>
    %361 = vector.extract_strided_slice %340 {offsets = [0, 256], sizes = [2, 128], strides = [1, 1]} : vector<2x384xf32> to vector<2x128xf32>
    %362 = vector.extract_strided_slice %344 {offsets = [0, 256], sizes = [2, 128], strides = [1, 1]} : vector<2x384xf32> to vector<2x128xf32>
    %363 = arith.mulf %352, %362 : vector<2x128xf32>
    %364 = arith.addf %361, %363 : vector<2x128xf32>
    %365 = math.tanh %364 : vector<2x128xf32>
    %cst_82 = arith.constant 1.000000e+00 : f32
    %366 = vector.broadcast %cst_82 : f32 to vector<2x128xf32>
    %367 = arith.subf %366, %360 : vector<2x128xf32>
    %368 = arith.mulf %367, %365 : vector<2x128xf32>
    %369 = arith.mulf %360, %338 : vector<2x128xf32>
    %370 = arith.addf %368, %369 : vector<2x128xf32>
    %c4_83 = arith.constant 4 : index
    %c0_84 = arith.constant 0 : index
    %371 = vector.load %arg19[%c4_83, %c0_84] : memref<16x128xf32, #tpu.memory_space<vmem>>, vector<2x128xf32>
    tpu.vector_store %arg19[%c4_83, %c0_84], %370 {strides = array<i32>} : memref<16x128xf32, #tpu.memory_space<vmem>>, vector<2x128xf32>,
    %372 = vector.extract_strided_slice %272 {offsets = [6, 0], sizes = [2, 384], strides = [1, 1]} : vector<16x384xf32> to vector<2x384xf32>
    %373 = arith.truncf %370 : vector<2x128xf32> to vector<2x128xbf16>
    %cst_85 = arith.constant dense<0.000000e+00> : vector<2x384xf32>
    %374 = tpu.matmul %373, %273, %cst_85 {dimension_numbers = #tpu.dot_dimension_numbers<[1], [0], [0], [1], [0, 0, 1, 1], [], []>} : vector<2x128xbf16>, vector<128x384xbf16>, vector<2x384xf32> -> vector<2x384xf32>
    %375 = vector.broadcast %274 : vector<1x384xf32> to vector<2x384xf32>
    %376 = arith.addf %374, %375 : vector<2x384xf32>
    %377 = vector.extract_strided_slice %372 {offsets = [0, 0], sizes = [2, 128], strides = [1, 1]} : vector<2x384xf32> to vector<2x128xf32>
    %378 = vector.extract_strided_slice %376 {offsets = [0, 0], sizes = [2, 128], strides = [1, 1]} : vector<2x384xf32> to vector<2x128xf32>
    %379 = arith.addf %377, %378 : vector<2x128xf32>
    %380 = arith.negf %379 : vector<2x128xf32>
    %381 = math.exp %380 : vector<2x128xf32>
    %cst_86 = arith.constant 1.000000e+00 : f32
    %382 = vector.broadcast %cst_86 : f32 to vector<2x128xf32>
    %383 = arith.addf %382, %381 : vector<2x128xf32>
    %384 = arith.divf %382, %383 : vector<2x128xf32>
    %385 = vector.extract_strided_slice %372 {offsets = [0, 128], sizes = [2, 128], strides = [1, 1]} : vector<2x384xf32> to vector<2x128xf32>
    %386 = vector.extract_strided_slice %376 {offsets = [0, 128], sizes = [2, 128], strides = [1, 1]} : vector<2x384xf32> to vector<2x128xf32>
    %387 = arith.addf %385, %386 : vector<2x128xf32>
    %388 = arith.negf %387 : vector<2x128xf32>
    %389 = math.exp %388 : vector<2x128xf32>
    %cst_87 = arith.constant 1.000000e+00 : f32
    %390 = vector.broadcast %cst_87 : f32 to vector<2x128xf32>
    %391 = arith.addf %390, %389 : vector<2x128xf32>
    %392 = arith.divf %390, %391 : vector<2x128xf32>
    %393 = vector.extract_strided_slice %372 {offsets = [0, 256], sizes = [2, 128], strides = [1, 1]} : vector<2x384xf32> to vector<2x128xf32>
    %394 = vector.extract_strided_slice %376 {offsets = [0, 256], sizes = [2, 128], strides = [1, 1]} : vector<2x384xf32> to vector<2x128xf32>
    %395 = arith.mulf %384, %394 : vector<2x128xf32>
    %396 = arith.addf %393, %395 : vector<2x128xf32>
    %397 = math.tanh %396 : vector<2x128xf32>
    %cst_88 = arith.constant 1.000000e+00 : f32
    %398 = vector.broadcast %cst_88 : f32 to vector<2x128xf32>
    %399 = arith.subf %398, %392 : vector<2x128xf32>
    %400 = arith.mulf %399, %397 : vector<2x128xf32>
    %401 = arith.mulf %392, %370 : vector<2x128xf32>
    %402 = arith.addf %400, %401 : vector<2x128xf32>
    %c6_89 = arith.constant 6 : index
    %c0_90 = arith.constant 0 : index
    %403 = vector.load %arg19[%c6_89, %c0_90] : memref<16x128xf32, #tpu.memory_space<vmem>>, vector<2x128xf32>
    tpu.vector_store %arg19[%c6_89, %c0_90], %402 {strides = array<i32>} : memref<16x128xf32, #tpu.memory_space<vmem>>, vector<2x128xf32>,
    %404 = vector.extract_strided_slice %272 {offsets = [8, 0], sizes = [2, 384], strides = [1, 1]} : vector<16x384xf32> to vector<2x384xf32>
    %405 = arith.truncf %402 : vector<2x128xf32> to vector<2x128xbf16>
    %cst_91 = arith.constant dense<0.000000e+00> : vector<2x384xf32>
    %406 = tpu.matmul %405, %273, %cst_91 {dimension_numbers = #tpu.dot_dimension_numbers<[1], [0], [0], [1], [0, 0, 1, 1], [], []>} : vector<2x128xbf16>, vector<128x384xbf16>, vector<2x384xf32> -> vector<2x384xf32>
    %407 = vector.broadcast %274 : vector<1x384xf32> to vector<2x384xf32>
    %408 = arith.addf %406, %407 : vector<2x384xf32>
    %409 = vector.extract_strided_slice %404 {offsets = [0, 0], sizes = [2, 128], strides = [1, 1]} : vector<2x384xf32> to vector<2x128xf32>
    %410 = vector.extract_strided_slice %408 {offsets = [0, 0], sizes = [2, 128], strides = [1, 1]} : vector<2x384xf32> to vector<2x128xf32>
    %411 = arith.addf %409, %410 : vector<2x128xf32>
    %412 = arith.negf %411 : vector<2x128xf32>
    %413 = math.exp %412 : vector<2x128xf32>
    %cst_92 = arith.constant 1.000000e+00 : f32
    %414 = vector.broadcast %cst_92 : f32 to vector<2x128xf32>
    %415 = arith.addf %414, %413 : vector<2x128xf32>
    %416 = arith.divf %414, %415 : vector<2x128xf32>
    %417 = vector.extract_strided_slice %404 {offsets = [0, 128], sizes = [2, 128], strides = [1, 1]} : vector<2x384xf32> to vector<2x128xf32>
    %418 = vector.extract_strided_slice %408 {offsets = [0, 128], sizes = [2, 128], strides = [1, 1]} : vector<2x384xf32> to vector<2x128xf32>
    %419 = arith.addf %417, %418 : vector<2x128xf32>
    %420 = arith.negf %419 : vector<2x128xf32>
    %421 = math.exp %420 : vector<2x128xf32>
    %cst_93 = arith.constant 1.000000e+00 : f32
    %422 = vector.broadcast %cst_93 : f32 to vector<2x128xf32>
    %423 = arith.addf %422, %421 : vector<2x128xf32>
    %424 = arith.divf %422, %423 : vector<2x128xf32>
    %425 = vector.extract_strided_slice %404 {offsets = [0, 256], sizes = [2, 128], strides = [1, 1]} : vector<2x384xf32> to vector<2x128xf32>
    %426 = vector.extract_strided_slice %408 {offsets = [0, 256], sizes = [2, 128], strides = [1, 1]} : vector<2x384xf32> to vector<2x128xf32>
    %427 = arith.mulf %416, %426 : vector<2x128xf32>
    %428 = arith.addf %425, %427 : vector<2x128xf32>
    %429 = math.tanh %428 : vector<2x128xf32>
    %cst_94 = arith.constant 1.000000e+00 : f32
    %430 = vector.broadcast %cst_94 : f32 to vector<2x128xf32>
    %431 = arith.subf %430, %424 : vector<2x128xf32>
    %432 = arith.mulf %431, %429 : vector<2x128xf32>
    %433 = arith.mulf %424, %402 : vector<2x128xf32>
    %434 = arith.addf %432, %433 : vector<2x128xf32>
    %c8_95 = arith.constant 8 : index
    %c0_96 = arith.constant 0 : index
    %435 = vector.load %arg19[%c8_95, %c0_96] : memref<16x128xf32, #tpu.memory_space<vmem>>, vector<2x128xf32>
    tpu.vector_store %arg19[%c8_95, %c0_96], %434 {strides = array<i32>} : memref<16x128xf32, #tpu.memory_space<vmem>>, vector<2x128xf32>,
    %436 = vector.extract_strided_slice %272 {offsets = [10, 0], sizes = [2, 384], strides = [1, 1]} : vector<16x384xf32> to vector<2x384xf32>
    %437 = arith.truncf %434 : vector<2x128xf32> to vector<2x128xbf16>
    %cst_97 = arith.constant dense<0.000000e+00> : vector<2x384xf32>
    %438 = tpu.matmul %437, %273, %cst_97 {dimension_numbers = #tpu.dot_dimension_numbers<[1], [0], [0], [1], [0, 0, 1, 1], [], []>} : vector<2x128xbf16>, vector<128x384xbf16>, vector<2x384xf32> -> vector<2x384xf32>
    %439 = vector.broadcast %274 : vector<1x384xf32> to vector<2x384xf32>
    %440 = arith.addf %438, %439 : vector<2x384xf32>
    %441 = vector.extract_strided_slice %436 {offsets = [0, 0], sizes = [2, 128], strides = [1, 1]} : vector<2x384xf32> to vector<2x128xf32>
    %442 = vector.extract_strided_slice %440 {offsets = [0, 0], sizes = [2, 128], strides = [1, 1]} : vector<2x384xf32> to vector<2x128xf32>
    %443 = arith.addf %441, %442 : vector<2x128xf32>
    %444 = arith.negf %443 : vector<2x128xf32>
    %445 = math.exp %444 : vector<2x128xf32>
    %cst_98 = arith.constant 1.000000e+00 : f32
    %446 = vector.broadcast %cst_98 : f32 to vector<2x128xf32>
    %447 = arith.addf %446, %445 : vector<2x128xf32>
    %448 = arith.divf %446, %447 : vector<2x128xf32>
    %449 = vector.extract_strided_slice %436 {offsets = [0, 128], sizes = [2, 128], strides = [1, 1]} : vector<2x384xf32> to vector<2x128xf32>
    %450 = vector.extract_strided_slice %440 {offsets = [0, 128], sizes = [2, 128], strides = [1, 1]} : vector<2x384xf32> to vector<2x128xf32>
    %451 = arith.addf %449, %450 : vector<2x128xf32>
    %452 = arith.negf %451 : vector<2x128xf32>
    %453 = math.exp %452 : vector<2x128xf32>
    %cst_99 = arith.constant 1.000000e+00 : f32
    %454 = vector.broadcast %cst_99 : f32 to vector<2x128xf32>
    %455 = arith.addf %454, %453 : vector<2x128xf32>
    %456 = arith.divf %454, %455 : vector<2x128xf32>
    %457 = vector.extract_strided_slice %436 {offsets = [0, 256], sizes = [2, 128], strides = [1, 1]} : vector<2x384xf32> to vector<2x128xf32>
    %458 = vector.extract_strided_slice %440 {offsets = [0, 256], sizes = [2, 128], strides = [1, 1]} : vector<2x384xf32> to vector<2x128xf32>
    %459 = arith.mulf %448, %458 : vector<2x128xf32>
    %460 = arith.addf %457, %459 : vector<2x128xf32>
    %461 = math.tanh %460 : vector<2x128xf32>
    %cst_100 = arith.constant 1.000000e+00 : f32
    %462 = vector.broadcast %cst_100 : f32 to vector<2x128xf32>
    %463 = arith.subf %462, %456 : vector<2x128xf32>
    %464 = arith.mulf %463, %461 : vector<2x128xf32>
    %465 = arith.mulf %456, %434 : vector<2x128xf32>
    %466 = arith.addf %464, %465 : vector<2x128xf32>
    %c10_101 = arith.constant 10 : index
    %c0_102 = arith.constant 0 : index
    %467 = vector.load %arg19[%c10_101, %c0_102] : memref<16x128xf32, #tpu.memory_space<vmem>>, vector<2x128xf32>
    tpu.vector_store %arg19[%c10_101, %c0_102], %466 {strides = array<i32>} : memref<16x128xf32, #tpu.memory_space<vmem>>, vector<2x128xf32>,
    %468 = vector.extract_strided_slice %272 {offsets = [12, 0], sizes = [2, 384], strides = [1, 1]} : vector<16x384xf32> to vector<2x384xf32>
    %469 = arith.truncf %466 : vector<2x128xf32> to vector<2x128xbf16>
    %cst_103 = arith.constant dense<0.000000e+00> : vector<2x384xf32>
    %470 = tpu.matmul %469, %273, %cst_103 {dimension_numbers = #tpu.dot_dimension_numbers<[1], [0], [0], [1], [0, 0, 1, 1], [], []>} : vector<2x128xbf16>, vector<128x384xbf16>, vector<2x384xf32> -> vector<2x384xf32>
    %471 = vector.broadcast %274 : vector<1x384xf32> to vector<2x384xf32>
    %472 = arith.addf %470, %471 : vector<2x384xf32>
    %473 = vector.extract_strided_slice %468 {offsets = [0, 0], sizes = [2, 128], strides = [1, 1]} : vector<2x384xf32> to vector<2x128xf32>
    %474 = vector.extract_strided_slice %472 {offsets = [0, 0], sizes = [2, 128], strides = [1, 1]} : vector<2x384xf32> to vector<2x128xf32>
    %475 = arith.addf %473, %474 : vector<2x128xf32>
    %476 = arith.negf %475 : vector<2x128xf32>
    %477 = math.exp %476 : vector<2x128xf32>
    %cst_104 = arith.constant 1.000000e+00 : f32
    %478 = vector.broadcast %cst_104 : f32 to vector<2x128xf32>
    %479 = arith.addf %478, %477 : vector<2x128xf32>
    %480 = arith.divf %478, %479 : vector<2x128xf32>
    %481 = vector.extract_strided_slice %468 {offsets = [0, 128], sizes = [2, 128], strides = [1, 1]} : vector<2x384xf32> to vector<2x128xf32>
    %482 = vector.extract_strided_slice %472 {offsets = [0, 128], sizes = [2, 128], strides = [1, 1]} : vector<2x384xf32> to vector<2x128xf32>
    %483 = arith.addf %481, %482 : vector<2x128xf32>
    %484 = arith.negf %483 : vector<2x128xf32>
    %485 = math.exp %484 : vector<2x128xf32>
    %cst_105 = arith.constant 1.000000e+00 : f32
    %486 = vector.broadcast %cst_105 : f32 to vector<2x128xf32>
    %487 = arith.addf %486, %485 : vector<2x128xf32>
    %488 = arith.divf %486, %487 : vector<2x128xf32>
    %489 = vector.extract_strided_slice %468 {offsets = [0, 256], sizes = [2, 128], strides = [1, 1]} : vector<2x384xf32> to vector<2x128xf32>
    %490 = vector.extract_strided_slice %472 {offsets = [0, 256], sizes = [2, 128], strides = [1, 1]} : vector<2x384xf32> to vector<2x128xf32>
    %491 = arith.mulf %480, %490 : vector<2x128xf32>
    %492 = arith.addf %489, %491 : vector<2x128xf32>
    %493 = math.tanh %492 : vector<2x128xf32>
    %cst_106 = arith.constant 1.000000e+00 : f32
    %494 = vector.broadcast %cst_106 : f32 to vector<2x128xf32>
    %495 = arith.subf %494, %488 : vector<2x128xf32>
    %496 = arith.mulf %495, %493 : vector<2x128xf32>
    %497 = arith.mulf %488, %466 : vector<2x128xf32>
    %498 = arith.addf %496, %497 : vector<2x128xf32>
    %c12_107 = arith.constant 12 : index
    %c0_108 = arith.constant 0 : index
    %499 = vector.load %arg19[%c12_107, %c0_108] : memref<16x128xf32, #tpu.memory_space<vmem>>, vector<2x128xf32>
    tpu.vector_store %arg19[%c12_107, %c0_108], %498 {strides = array<i32>} : memref<16x128xf32, #tpu.memory_space<vmem>>, vector<2x128xf32>,
    %500 = vector.extract_strided_slice %272 {offsets = [14, 0], sizes = [2, 384], strides = [1, 1]} : vector<16x384xf32> to vector<2x384xf32>
    %501 = arith.truncf %498 : vector<2x128xf32> to vector<2x128xbf16>
    %cst_109 = arith.constant dense<0.000000e+00> : vector<2x384xf32>
    %502 = tpu.matmul %501, %273, %cst_109 {dimension_numbers = #tpu.dot_dimension_numbers<[1], [0], [0], [1], [0, 0, 1, 1], [], []>} : vector<2x128xbf16>, vector<128x384xbf16>, vector<2x384xf32> -> vector<2x384xf32>
    %503 = vector.broadcast %274 : vector<1x384xf32> to vector<2x384xf32>
    %504 = arith.addf %502, %503 : vector<2x384xf32>
    %505 = vector.extract_strided_slice %500 {offsets = [0, 0], sizes = [2, 128], strides = [1, 1]} : vector<2x384xf32> to vector<2x128xf32>
    %506 = vector.extract_strided_slice %504 {offsets = [0, 0], sizes = [2, 128], strides = [1, 1]} : vector<2x384xf32> to vector<2x128xf32>
    %507 = arith.addf %505, %506 : vector<2x128xf32>
    %508 = arith.negf %507 : vector<2x128xf32>
    %509 = math.exp %508 : vector<2x128xf32>
    %cst_110 = arith.constant 1.000000e+00 : f32
    %510 = vector.broadcast %cst_110 : f32 to vector<2x128xf32>
    %511 = arith.addf %510, %509 : vector<2x128xf32>
    %512 = arith.divf %510, %511 : vector<2x128xf32>
    %513 = vector.extract_strided_slice %500 {offsets = [0, 128], sizes = [2, 128], strides = [1, 1]} : vector<2x384xf32> to vector<2x128xf32>
    %514 = vector.extract_strided_slice %504 {offsets = [0, 128], sizes = [2, 128], strides = [1, 1]} : vector<2x384xf32> to vector<2x128xf32>
    %515 = arith.addf %513, %514 : vector<2x128xf32>
    %516 = arith.negf %515 : vector<2x128xf32>
    %517 = math.exp %516 : vector<2x128xf32>
    %cst_111 = arith.constant 1.000000e+00 : f32
    %518 = vector.broadcast %cst_111 : f32 to vector<2x128xf32>
    %519 = arith.addf %518, %517 : vector<2x128xf32>
    %520 = arith.divf %518, %519 : vector<2x128xf32>
    %521 = vector.extract_strided_slice %500 {offsets = [0, 256], sizes = [2, 128], strides = [1, 1]} : vector<2x384xf32> to vector<2x128xf32>
    %522 = vector.extract_strided_slice %504 {offsets = [0, 256], sizes = [2, 128], strides = [1, 1]} : vector<2x384xf32> to vector<2x128xf32>
    %523 = arith.mulf %512, %522 : vector<2x128xf32>
    %524 = arith.addf %521, %523 : vector<2x128xf32>
    %525 = math.tanh %524 : vector<2x128xf32>
    %cst_112 = arith.constant 1.000000e+00 : f32
    %526 = vector.broadcast %cst_112 : f32 to vector<2x128xf32>
    %527 = arith.subf %526, %520 : vector<2x128xf32>
    %528 = arith.mulf %527, %525 : vector<2x128xf32>
    %529 = arith.mulf %520, %498 : vector<2x128xf32>
    %530 = arith.addf %528, %529 : vector<2x128xf32>
    %c14_113 = arith.constant 14 : index
    %c0_114 = arith.constant 0 : index
    %531 = vector.load %arg19[%c14_113, %c0_114] : memref<16x128xf32, #tpu.memory_space<vmem>>, vector<2x128xf32>
    tpu.vector_store %arg19[%c14_113, %c0_114], %530 {strides = array<i32>} : memref<16x128xf32, #tpu.memory_space<vmem>>, vector<2x128xf32>,
    %c2_115 = arith.constant 2 : index
    %c0_116 = arith.constant 0 : index
    %532 = vector.load %arg17[%c2_115, %c0_116] : memref<6x128xf32, #tpu.memory_space<vmem>>, vector<2x128xf32>
    tpu.vector_store %arg17[%c2_115, %c0_116], %530 {strides = array<i32>} : memref<6x128xf32, #tpu.memory_space<vmem>>, vector<2x128xf32>,
    %c0_117 = arith.constant 0 : index
    %c0_118 = arith.constant 0 : index
    %533 = vector.load %arg19[%c0_117, %c0_118] : memref<16x128xf32, #tpu.memory_space<vmem>>, vector<16x128xf32>
    %534 = arith.truncf %533 : vector<16x128xf32> to vector<16x128xbf16>
    %c0_119 = arith.constant 0 : index
    %c0_120 = arith.constant 0 : index
    %535 = vector.load %arg10[%c0_119, %c0_120] : memref<128x384xbf16, #tpu.memory_space<vmem>>, vector<128x384xbf16>
    %cst_121 = arith.constant dense<0.000000e+00> : vector<16x384xf32>
    %536 = tpu.matmul %534, %535, %cst_121 {dimension_numbers = #tpu.dot_dimension_numbers<[1], [0], [0], [1], [0, 0, 1, 1], [], []>} : vector<16x128xbf16>, vector<128x384xbf16>, vector<16x384xf32> -> vector<16x384xf32>
    %c0_122 = arith.constant 0 : index
    %c0_123 = arith.constant 0 : index
    %537 = vector.load %arg12[%c0_122, %c0_123] : memref<1x384xf32, #tpu.memory_space<vmem>>, vector<1x384xf32>
    %538 = vector.broadcast %537 : vector<1x384xf32> to vector<16x384xf32>
    %539 = arith.addf %536, %538 : vector<16x384xf32>
    %c0_124 = arith.constant 0 : index
    %c0_125 = arith.constant 0 : index
    %540 = vector.load %arg11[%c0_124, %c0_125] : memref<128x384xbf16, #tpu.memory_space<vmem>>, vector<128x384xbf16>
    %c0_126 = arith.constant 0 : index
    %c0_127 = arith.constant 0 : index
    %541 = vector.load %arg13[%c0_126, %c0_127] : memref<1x384xf32, #tpu.memory_space<vmem>>, vector<1x384xf32>
    %c4_128 = arith.constant 4 : index
    %c0_129 = arith.constant 0 : index
    %542 = vector.load %arg1[%c4_128, %c0_129] : memref<6x128xf32, #tpu.memory_space<vmem>>, vector<2x128xf32>
    %543 = vector.extract_strided_slice %539 {offsets = [0, 0], sizes = [2, 384], strides = [1, 1]} : vector<16x384xf32> to vector<2x384xf32>
    %544 = arith.truncf %542 : vector<2x128xf32> to vector<2x128xbf16>
    %cst_130 = arith.constant dense<0.000000e+00> : vector<2x384xf32>
    %545 = tpu.matmul %544, %540, %cst_130 {dimension_numbers = #tpu.dot_dimension_numbers<[1], [0], [0], [1], [0, 0, 1, 1], [], []>} : vector<2x128xbf16>, vector<128x384xbf16>, vector<2x384xf32> -> vector<2x384xf32>
    %546 = vector.broadcast %541 : vector<1x384xf32> to vector<2x384xf32>
    %547 = arith.addf %545, %546 : vector<2x384xf32>
    %548 = vector.extract_strided_slice %543 {offsets = [0, 0], sizes = [2, 128], strides = [1, 1]} : vector<2x384xf32> to vector<2x128xf32>
    %549 = vector.extract_strided_slice %547 {offsets = [0, 0], sizes = [2, 128], strides = [1, 1]} : vector<2x384xf32> to vector<2x128xf32>
    %550 = arith.addf %548, %549 : vector<2x128xf32>
    %551 = arith.negf %550 : vector<2x128xf32>
    %552 = math.exp %551 : vector<2x128xf32>
    %cst_131 = arith.constant 1.000000e+00 : f32
    %553 = vector.broadcast %cst_131 : f32 to vector<2x128xf32>
    %554 = arith.addf %553, %552 : vector<2x128xf32>
    %555 = arith.divf %553, %554 : vector<2x128xf32>
    %556 = vector.extract_strided_slice %543 {offsets = [0, 128], sizes = [2, 128], strides = [1, 1]} : vector<2x384xf32> to vector<2x128xf32>
    %557 = vector.extract_strided_slice %547 {offsets = [0, 128], sizes = [2, 128], strides = [1, 1]} : vector<2x384xf32> to vector<2x128xf32>
    %558 = arith.addf %556, %557 : vector<2x128xf32>
    %559 = arith.negf %558 : vector<2x128xf32>
    %560 = math.exp %559 : vector<2x128xf32>
    %cst_132 = arith.constant 1.000000e+00 : f32
    %561 = vector.broadcast %cst_132 : f32 to vector<2x128xf32>
    %562 = arith.addf %561, %560 : vector<2x128xf32>
    %563 = arith.divf %561, %562 : vector<2x128xf32>
    %564 = vector.extract_strided_slice %543 {offsets = [0, 256], sizes = [2, 128], strides = [1, 1]} : vector<2x384xf32> to vector<2x128xf32>
    %565 = vector.extract_strided_slice %547 {offsets = [0, 256], sizes = [2, 128], strides = [1, 1]} : vector<2x384xf32> to vector<2x128xf32>
    %566 = arith.mulf %555, %565 : vector<2x128xf32>
    %567 = arith.addf %564, %566 : vector<2x128xf32>
    %568 = math.tanh %567 : vector<2x128xf32>
    %cst_133 = arith.constant 1.000000e+00 : f32
    %569 = vector.broadcast %cst_133 : f32 to vector<2x128xf32>
    %570 = arith.subf %569, %563 : vector<2x128xf32>
    %571 = arith.mulf %570, %568 : vector<2x128xf32>
    %572 = arith.mulf %563, %542 : vector<2x128xf32>
    %573 = arith.addf %571, %572 : vector<2x128xf32>
    %c0_134 = arith.constant 0 : index
    %c0_135 = arith.constant 0 : index
    %574 = vector.load %arg18[%c0_134, %c0_135] : memref<16x128xf32, #tpu.memory_space<vmem>>, vector<2x128xf32>
    tpu.vector_store %arg18[%c0_134, %c0_135], %573 {strides = array<i32>} : memref<16x128xf32, #tpu.memory_space<vmem>>, vector<2x128xf32>,
    %575 = vector.extract_strided_slice %539 {offsets = [2, 0], sizes = [2, 384], strides = [1, 1]} : vector<16x384xf32> to vector<2x384xf32>
    %576 = arith.truncf %573 : vector<2x128xf32> to vector<2x128xbf16>
    %cst_136 = arith.constant dense<0.000000e+00> : vector<2x384xf32>
    %577 = tpu.matmul %576, %540, %cst_136 {dimension_numbers = #tpu.dot_dimension_numbers<[1], [0], [0], [1], [0, 0, 1, 1], [], []>} : vector<2x128xbf16>, vector<128x384xbf16>, vector<2x384xf32> -> vector<2x384xf32>
    %578 = vector.broadcast %541 : vector<1x384xf32> to vector<2x384xf32>
    %579 = arith.addf %577, %578 : vector<2x384xf32>
    %580 = vector.extract_strided_slice %575 {offsets = [0, 0], sizes = [2, 128], strides = [1, 1]} : vector<2x384xf32> to vector<2x128xf32>
    %581 = vector.extract_strided_slice %579 {offsets = [0, 0], sizes = [2, 128], strides = [1, 1]} : vector<2x384xf32> to vector<2x128xf32>
    %582 = arith.addf %580, %581 : vector<2x128xf32>
    %583 = arith.negf %582 : vector<2x128xf32>
    %584 = math.exp %583 : vector<2x128xf32>
    %cst_137 = arith.constant 1.000000e+00 : f32
    %585 = vector.broadcast %cst_137 : f32 to vector<2x128xf32>
    %586 = arith.addf %585, %584 : vector<2x128xf32>
    %587 = arith.divf %585, %586 : vector<2x128xf32>
    %588 = vector.extract_strided_slice %575 {offsets = [0, 128], sizes = [2, 128], strides = [1, 1]} : vector<2x384xf32> to vector<2x128xf32>
    %589 = vector.extract_strided_slice %579 {offsets = [0, 128], sizes = [2, 128], strides = [1, 1]} : vector<2x384xf32> to vector<2x128xf32>
    %590 = arith.addf %588, %589 : vector<2x128xf32>
    %591 = arith.negf %590 : vector<2x128xf32>
    %592 = math.exp %591 : vector<2x128xf32>
    %cst_138 = arith.constant 1.000000e+00 : f32
    %593 = vector.broadcast %cst_138 : f32 to vector<2x128xf32>
    %594 = arith.addf %593, %592 : vector<2x128xf32>
    %595 = arith.divf %593, %594 : vector<2x128xf32>
    %596 = vector.extract_strided_slice %575 {offsets = [0, 256], sizes = [2, 128], strides = [1, 1]} : vector<2x384xf32> to vector<2x128xf32>
    %597 = vector.extract_strided_slice %579 {offsets = [0, 256], sizes = [2, 128], strides = [1, 1]} : vector<2x384xf32> to vector<2x128xf32>
    %598 = arith.mulf %587, %597 : vector<2x128xf32>
    %599 = arith.addf %596, %598 : vector<2x128xf32>
    %600 = math.tanh %599 : vector<2x128xf32>
    %cst_139 = arith.constant 1.000000e+00 : f32
    %601 = vector.broadcast %cst_139 : f32 to vector<2x128xf32>
    %602 = arith.subf %601, %595 : vector<2x128xf32>
    %603 = arith.mulf %602, %600 : vector<2x128xf32>
    %604 = arith.mulf %595, %573 : vector<2x128xf32>
    %605 = arith.addf %603, %604 : vector<2x128xf32>
    %c2_140 = arith.constant 2 : index
    %c0_141 = arith.constant 0 : index
    %606 = vector.load %arg18[%c2_140, %c0_141] : memref<16x128xf32, #tpu.memory_space<vmem>>, vector<2x128xf32>
    tpu.vector_store %arg18[%c2_140, %c0_141], %605 {strides = array<i32>} : memref<16x128xf32, #tpu.memory_space<vmem>>, vector<2x128xf32>,
    %607 = vector.extract_strided_slice %539 {offsets = [4, 0], sizes = [2, 384], strides = [1, 1]} : vector<16x384xf32> to vector<2x384xf32>
    %608 = arith.truncf %605 : vector<2x128xf32> to vector<2x128xbf16>
    %cst_142 = arith.constant dense<0.000000e+00> : vector<2x384xf32>
    %609 = tpu.matmul %608, %540, %cst_142 {dimension_numbers = #tpu.dot_dimension_numbers<[1], [0], [0], [1], [0, 0, 1, 1], [], []>} : vector<2x128xbf16>, vector<128x384xbf16>, vector<2x384xf32> -> vector<2x384xf32>
    %610 = vector.broadcast %541 : vector<1x384xf32> to vector<2x384xf32>
    %611 = arith.addf %609, %610 : vector<2x384xf32>
    %612 = vector.extract_strided_slice %607 {offsets = [0, 0], sizes = [2, 128], strides = [1, 1]} : vector<2x384xf32> to vector<2x128xf32>
    %613 = vector.extract_strided_slice %611 {offsets = [0, 0], sizes = [2, 128], strides = [1, 1]} : vector<2x384xf32> to vector<2x128xf32>
    %614 = arith.addf %612, %613 : vector<2x128xf32>
    %615 = arith.negf %614 : vector<2x128xf32>
    %616 = math.exp %615 : vector<2x128xf32>
    %cst_143 = arith.constant 1.000000e+00 : f32
    %617 = vector.broadcast %cst_143 : f32 to vector<2x128xf32>
    %618 = arith.addf %617, %616 : vector<2x128xf32>
    %619 = arith.divf %617, %618 : vector<2x128xf32>
    %620 = vector.extract_strided_slice %607 {offsets = [0, 128], sizes = [2, 128], strides = [1, 1]} : vector<2x384xf32> to vector<2x128xf32>
    %621 = vector.extract_strided_slice %611 {offsets = [0, 128], sizes = [2, 128], strides = [1, 1]} : vector<2x384xf32> to vector<2x128xf32>
    %622 = arith.addf %620, %621 : vector<2x128xf32>
    %623 = arith.negf %622 : vector<2x128xf32>
    %624 = math.exp %623 : vector<2x128xf32>
    %cst_144 = arith.constant 1.000000e+00 : f32
    %625 = vector.broadcast %cst_144 : f32 to vector<2x128xf32>
    %626 = arith.addf %625, %624 : vector<2x128xf32>
    %627 = arith.divf %625, %626 : vector<2x128xf32>
    %628 = vector.extract_strided_slice %607 {offsets = [0, 256], sizes = [2, 128], strides = [1, 1]} : vector<2x384xf32> to vector<2x128xf32>
    %629 = vector.extract_strided_slice %611 {offsets = [0, 256], sizes = [2, 128], strides = [1, 1]} : vector<2x384xf32> to vector<2x128xf32>
    %630 = arith.mulf %619, %629 : vector<2x128xf32>
    %631 = arith.addf %628, %630 : vector<2x128xf32>
    %632 = math.tanh %631 : vector<2x128xf32>
    %cst_145 = arith.constant 1.000000e+00 : f32
    %633 = vector.broadcast %cst_145 : f32 to vector<2x128xf32>
    %634 = arith.subf %633, %627 : vector<2x128xf32>
    %635 = arith.mulf %634, %632 : vector<2x128xf32>
    %636 = arith.mulf %627, %605 : vector<2x128xf32>
    %637 = arith.addf %635, %636 : vector<2x128xf32>
    %c4_146 = arith.constant 4 : index
    %c0_147 = arith.constant 0 : index
    %638 = vector.load %arg18[%c4_146, %c0_147] : memref<16x128xf32, #tpu.memory_space<vmem>>, vector<2x128xf32>
    tpu.vector_store %arg18[%c4_146, %c0_147], %637 {strides = array<i32>} : memref<16x128xf32, #tpu.memory_space<vmem>>, vector<2x128xf32>,
    %639 = vector.extract_strided_slice %539 {offsets = [6, 0], sizes = [2, 384], strides = [1, 1]} : vector<16x384xf32> to vector<2x384xf32>
    %640 = arith.truncf %637 : vector<2x128xf32> to vector<2x128xbf16>
    %cst_148 = arith.constant dense<0.000000e+00> : vector<2x384xf32>
    %641 = tpu.matmul %640, %540, %cst_148 {dimension_numbers = #tpu.dot_dimension_numbers<[1], [0], [0], [1], [0, 0, 1, 1], [], []>} : vector<2x128xbf16>, vector<128x384xbf16>, vector<2x384xf32> -> vector<2x384xf32>
    %642 = vector.broadcast %541 : vector<1x384xf32> to vector<2x384xf32>
    %643 = arith.addf %641, %642 : vector<2x384xf32>
    %644 = vector.extract_strided_slice %639 {offsets = [0, 0], sizes = [2, 128], strides = [1, 1]} : vector<2x384xf32> to vector<2x128xf32>
    %645 = vector.extract_strided_slice %643 {offsets = [0, 0], sizes = [2, 128], strides = [1, 1]} : vector<2x384xf32> to vector<2x128xf32>
    %646 = arith.addf %644, %645 : vector<2x128xf32>
    %647 = arith.negf %646 : vector<2x128xf32>
    %648 = math.exp %647 : vector<2x128xf32>
    %cst_149 = arith.constant 1.000000e+00 : f32
    %649 = vector.broadcast %cst_149 : f32 to vector<2x128xf32>
    %650 = arith.addf %649, %648 : vector<2x128xf32>
    %651 = arith.divf %649, %650 : vector<2x128xf32>
    %652 = vector.extract_strided_slice %639 {offsets = [0, 128], sizes = [2, 128], strides = [1, 1]} : vector<2x384xf32> to vector<2x128xf32>
    %653 = vector.extract_strided_slice %643 {offsets = [0, 128], sizes = [2, 128], strides = [1, 1]} : vector<2x384xf32> to vector<2x128xf32>
    %654 = arith.addf %652, %653 : vector<2x128xf32>
    %655 = arith.negf %654 : vector<2x128xf32>
    %656 = math.exp %655 : vector<2x128xf32>
    %cst_150 = arith.constant 1.000000e+00 : f32
    %657 = vector.broadcast %cst_150 : f32 to vector<2x128xf32>
    %658 = arith.addf %657, %656 : vector<2x128xf32>
    %659 = arith.divf %657, %658 : vector<2x128xf32>
    %660 = vector.extract_strided_slice %639 {offsets = [0, 256], sizes = [2, 128], strides = [1, 1]} : vector<2x384xf32> to vector<2x128xf32>
    %661 = vector.extract_strided_slice %643 {offsets = [0, 256], sizes = [2, 128], strides = [1, 1]} : vector<2x384xf32> to vector<2x128xf32>
    %662 = arith.mulf %651, %661 : vector<2x128xf32>
    %663 = arith.addf %660, %662 : vector<2x128xf32>
    %664 = math.tanh %663 : vector<2x128xf32>
    %cst_151 = arith.constant 1.000000e+00 : f32
    %665 = vector.broadcast %cst_151 : f32 to vector<2x128xf32>
    %666 = arith.subf %665, %659 : vector<2x128xf32>
    %667 = arith.mulf %666, %664 : vector<2x128xf32>
    %668 = arith.mulf %659, %637 : vector<2x128xf32>
    %669 = arith.addf %667, %668 : vector<2x128xf32>
    %c6_152 = arith.constant 6 : index
    %c0_153 = arith.constant 0 : index
    %670 = vector.load %arg18[%c6_152, %c0_153] : memref<16x128xf32, #tpu.memory_space<vmem>>, vector<2x128xf32>
    tpu.vector_store %arg18[%c6_152, %c0_153], %669 {strides = array<i32>} : memref<16x128xf32, #tpu.memory_space<vmem>>, vector<2x128xf32>,
    %671 = vector.extract_strided_slice %539 {offsets = [8, 0], sizes = [2, 384], strides = [1, 1]} : vector<16x384xf32> to vector<2x384xf32>
    %672 = arith.truncf %669 : vector<2x128xf32> to vector<2x128xbf16>
    %cst_154 = arith.constant dense<0.000000e+00> : vector<2x384xf32>
    %673 = tpu.matmul %672, %540, %cst_154 {dimension_numbers = #tpu.dot_dimension_numbers<[1], [0], [0], [1], [0, 0, 1, 1], [], []>} : vector<2x128xbf16>, vector<128x384xbf16>, vector<2x384xf32> -> vector<2x384xf32>
    %674 = vector.broadcast %541 : vector<1x384xf32> to vector<2x384xf32>
    %675 = arith.addf %673, %674 : vector<2x384xf32>
    %676 = vector.extract_strided_slice %671 {offsets = [0, 0], sizes = [2, 128], strides = [1, 1]} : vector<2x384xf32> to vector<2x128xf32>
    %677 = vector.extract_strided_slice %675 {offsets = [0, 0], sizes = [2, 128], strides = [1, 1]} : vector<2x384xf32> to vector<2x128xf32>
    %678 = arith.addf %676, %677 : vector<2x128xf32>
    %679 = arith.negf %678 : vector<2x128xf32>
    %680 = math.exp %679 : vector<2x128xf32>
    %cst_155 = arith.constant 1.000000e+00 : f32
    %681 = vector.broadcast %cst_155 : f32 to vector<2x128xf32>
    %682 = arith.addf %681, %680 : vector<2x128xf32>
    %683 = arith.divf %681, %682 : vector<2x128xf32>
    %684 = vector.extract_strided_slice %671 {offsets = [0, 128], sizes = [2, 128], strides = [1, 1]} : vector<2x384xf32> to vector<2x128xf32>
    %685 = vector.extract_strided_slice %675 {offsets = [0, 128], sizes = [2, 128], strides = [1, 1]} : vector<2x384xf32> to vector<2x128xf32>
    %686 = arith.addf %684, %685 : vector<2x128xf32>
    %687 = arith.negf %686 : vector<2x128xf32>
    %688 = math.exp %687 : vector<2x128xf32>
    %cst_156 = arith.constant 1.000000e+00 : f32
    %689 = vector.broadcast %cst_156 : f32 to vector<2x128xf32>
    %690 = arith.addf %689, %688 : vector<2x128xf32>
    %691 = arith.divf %689, %690 : vector<2x128xf32>
    %692 = vector.extract_strided_slice %671 {offsets = [0, 256], sizes = [2, 128], strides = [1, 1]} : vector<2x384xf32> to vector<2x128xf32>
    %693 = vector.extract_strided_slice %675 {offsets = [0, 256], sizes = [2, 128], strides = [1, 1]} : vector<2x384xf32> to vector<2x128xf32>
    %694 = arith.mulf %683, %693 : vector<2x128xf32>
    %695 = arith.addf %692, %694 : vector<2x128xf32>
    %696 = math.tanh %695 : vector<2x128xf32>
    %cst_157 = arith.constant 1.000000e+00 : f32
    %697 = vector.broadcast %cst_157 : f32 to vector<2x128xf32>
    %698 = arith.subf %697, %691 : vector<2x128xf32>
    %699 = arith.mulf %698, %696 : vector<2x128xf32>
    %700 = arith.mulf %691, %669 : vector<2x128xf32>
    %701 = arith.addf %699, %700 : vector<2x128xf32>
    %c8_158 = arith.constant 8 : index
    %c0_159 = arith.constant 0 : index
    %702 = vector.load %arg18[%c8_158, %c0_159] : memref<16x128xf32, #tpu.memory_space<vmem>>, vector<2x128xf32>
    tpu.vector_store %arg18[%c8_158, %c0_159], %701 {strides = array<i32>} : memref<16x128xf32, #tpu.memory_space<vmem>>, vector<2x128xf32>,
    %703 = vector.extract_strided_slice %539 {offsets = [10, 0], sizes = [2, 384], strides = [1, 1]} : vector<16x384xf32> to vector<2x384xf32>
    %704 = arith.truncf %701 : vector<2x128xf32> to vector<2x128xbf16>
    %cst_160 = arith.constant dense<0.000000e+00> : vector<2x384xf32>
    %705 = tpu.matmul %704, %540, %cst_160 {dimension_numbers = #tpu.dot_dimension_numbers<[1], [0], [0], [1], [0, 0, 1, 1], [], []>} : vector<2x128xbf16>, vector<128x384xbf16>, vector<2x384xf32> -> vector<2x384xf32>
    %706 = vector.broadcast %541 : vector<1x384xf32> to vector<2x384xf32>
    %707 = arith.addf %705, %706 : vector<2x384xf32>
    %708 = vector.extract_strided_slice %703 {offsets = [0, 0], sizes = [2, 128], strides = [1, 1]} : vector<2x384xf32> to vector<2x128xf32>
    %709 = vector.extract_strided_slice %707 {offsets = [0, 0], sizes = [2, 128], strides = [1, 1]} : vector<2x384xf32> to vector<2x128xf32>
    %710 = arith.addf %708, %709 : vector<2x128xf32>
    %711 = arith.negf %710 : vector<2x128xf32>
    %712 = math.exp %711 : vector<2x128xf32>
    %cst_161 = arith.constant 1.000000e+00 : f32
    %713 = vector.broadcast %cst_161 : f32 to vector<2x128xf32>
    %714 = arith.addf %713, %712 : vector<2x128xf32>
    %715 = arith.divf %713, %714 : vector<2x128xf32>
    %716 = vector.extract_strided_slice %703 {offsets = [0, 128], sizes = [2, 128], strides = [1, 1]} : vector<2x384xf32> to vector<2x128xf32>
    %717 = vector.extract_strided_slice %707 {offsets = [0, 128], sizes = [2, 128], strides = [1, 1]} : vector<2x384xf32> to vector<2x128xf32>
    %718 = arith.addf %716, %717 : vector<2x128xf32>
    %719 = arith.negf %718 : vector<2x128xf32>
    %720 = math.exp %719 : vector<2x128xf32>
    %cst_162 = arith.constant 1.000000e+00 : f32
    %721 = vector.broadcast %cst_162 : f32 to vector<2x128xf32>
    %722 = arith.addf %721, %720 : vector<2x128xf32>
    %723 = arith.divf %721, %722 : vector<2x128xf32>
    %724 = vector.extract_strided_slice %703 {offsets = [0, 256], sizes = [2, 128], strides = [1, 1]} : vector<2x384xf32> to vector<2x128xf32>
    %725 = vector.extract_strided_slice %707 {offsets = [0, 256], sizes = [2, 128], strides = [1, 1]} : vector<2x384xf32> to vector<2x128xf32>
    %726 = arith.mulf %715, %725 : vector<2x128xf32>
    %727 = arith.addf %724, %726 : vector<2x128xf32>
    %728 = math.tanh %727 : vector<2x128xf32>
    %cst_163 = arith.constant 1.000000e+00 : f32
    %729 = vector.broadcast %cst_163 : f32 to vector<2x128xf32>
    %730 = arith.subf %729, %723 : vector<2x128xf32>
    %731 = arith.mulf %730, %728 : vector<2x128xf32>
    %732 = arith.mulf %723, %701 : vector<2x128xf32>
    %733 = arith.addf %731, %732 : vector<2x128xf32>
    %c10_164 = arith.constant 10 : index
    %c0_165 = arith.constant 0 : index
    %734 = vector.load %arg18[%c10_164, %c0_165] : memref<16x128xf32, #tpu.memory_space<vmem>>, vector<2x128xf32>
    tpu.vector_store %arg18[%c10_164, %c0_165], %733 {strides = array<i32>} : memref<16x128xf32, #tpu.memory_space<vmem>>, vector<2x128xf32>,
    %735 = vector.extract_strided_slice %539 {offsets = [12, 0], sizes = [2, 384], strides = [1, 1]} : vector<16x384xf32> to vector<2x384xf32>
    %736 = arith.truncf %733 : vector<2x128xf32> to vector<2x128xbf16>
    %cst_166 = arith.constant dense<0.000000e+00> : vector<2x384xf32>
    %737 = tpu.matmul %736, %540, %cst_166 {dimension_numbers = #tpu.dot_dimension_numbers<[1], [0], [0], [1], [0, 0, 1, 1], [], []>} : vector<2x128xbf16>, vector<128x384xbf16>, vector<2x384xf32> -> vector<2x384xf32>
    %738 = vector.broadcast %541 : vector<1x384xf32> to vector<2x384xf32>
    %739 = arith.addf %737, %738 : vector<2x384xf32>
    %740 = vector.extract_strided_slice %735 {offsets = [0, 0], sizes = [2, 128], strides = [1, 1]} : vector<2x384xf32> to vector<2x128xf32>
    %741 = vector.extract_strided_slice %739 {offsets = [0, 0], sizes = [2, 128], strides = [1, 1]} : vector<2x384xf32> to vector<2x128xf32>
    %742 = arith.addf %740, %741 : vector<2x128xf32>
    %743 = arith.negf %742 : vector<2x128xf32>
    %744 = math.exp %743 : vector<2x128xf32>
    %cst_167 = arith.constant 1.000000e+00 : f32
    %745 = vector.broadcast %cst_167 : f32 to vector<2x128xf32>
    %746 = arith.addf %745, %744 : vector<2x128xf32>
    %747 = arith.divf %745, %746 : vector<2x128xf32>
    %748 = vector.extract_strided_slice %735 {offsets = [0, 128], sizes = [2, 128], strides = [1, 1]} : vector<2x384xf32> to vector<2x128xf32>
    %749 = vector.extract_strided_slice %739 {offsets = [0, 128], sizes = [2, 128], strides = [1, 1]} : vector<2x384xf32> to vector<2x128xf32>
    %750 = arith.addf %748, %749 : vector<2x128xf32>
    %751 = arith.negf %750 : vector<2x128xf32>
    %752 = math.exp %751 : vector<2x128xf32>
    %cst_168 = arith.constant 1.000000e+00 : f32
    %753 = vector.broadcast %cst_168 : f32 to vector<2x128xf32>
    %754 = arith.addf %753, %752 : vector<2x128xf32>
    %755 = arith.divf %753, %754 : vector<2x128xf32>
    %756 = vector.extract_strided_slice %735 {offsets = [0, 256], sizes = [2, 128], strides = [1, 1]} : vector<2x384xf32> to vector<2x128xf32>
    %757 = vector.extract_strided_slice %739 {offsets = [0, 256], sizes = [2, 128], strides = [1, 1]} : vector<2x384xf32> to vector<2x128xf32>
    %758 = arith.mulf %747, %757 : vector<2x128xf32>
    %759 = arith.addf %756, %758 : vector<2x128xf32>
    %760 = math.tanh %759 : vector<2x128xf32>
    %cst_169 = arith.constant 1.000000e+00 : f32
    %761 = vector.broadcast %cst_169 : f32 to vector<2x128xf32>
    %762 = arith.subf %761, %755 : vector<2x128xf32>
    %763 = arith.mulf %762, %760 : vector<2x128xf32>
    %764 = arith.mulf %755, %733 : vector<2x128xf32>
    %765 = arith.addf %763, %764 : vector<2x128xf32>
    %c12_170 = arith.constant 12 : index
    %c0_171 = arith.constant 0 : index
    %766 = vector.load %arg18[%c12_170, %c0_171] : memref<16x128xf32, #tpu.memory_space<vmem>>, vector<2x128xf32>
    tpu.vector_store %arg18[%c12_170, %c0_171], %765 {strides = array<i32>} : memref<16x128xf32, #tpu.memory_space<vmem>>, vector<2x128xf32>,
    %767 = vector.extract_strided_slice %539 {offsets = [14, 0], sizes = [2, 384], strides = [1, 1]} : vector<16x384xf32> to vector<2x384xf32>
    %768 = arith.truncf %765 : vector<2x128xf32> to vector<2x128xbf16>
    %cst_172 = arith.constant dense<0.000000e+00> : vector<2x384xf32>
    %769 = tpu.matmul %768, %540, %cst_172 {dimension_numbers = #tpu.dot_dimension_numbers<[1], [0], [0], [1], [0, 0, 1, 1], [], []>} : vector<2x128xbf16>, vector<128x384xbf16>, vector<2x384xf32> -> vector<2x384xf32>
    %770 = vector.broadcast %541 : vector<1x384xf32> to vector<2x384xf32>
    %771 = arith.addf %769, %770 : vector<2x384xf32>
    %772 = vector.extract_strided_slice %767 {offsets = [0, 0], sizes = [2, 128], strides = [1, 1]} : vector<2x384xf32> to vector<2x128xf32>
    %773 = vector.extract_strided_slice %771 {offsets = [0, 0], sizes = [2, 128], strides = [1, 1]} : vector<2x384xf32> to vector<2x128xf32>
    %774 = arith.addf %772, %773 : vector<2x128xf32>
    %775 = arith.negf %774 : vector<2x128xf32>
    %776 = math.exp %775 : vector<2x128xf32>
    %cst_173 = arith.constant 1.000000e+00 : f32
    %777 = vector.broadcast %cst_173 : f32 to vector<2x128xf32>
    %778 = arith.addf %777, %776 : vector<2x128xf32>
    %779 = arith.divf %777, %778 : vector<2x128xf32>
    %780 = vector.extract_strided_slice %767 {offsets = [0, 128], sizes = [2, 128], strides = [1, 1]} : vector<2x384xf32> to vector<2x128xf32>
    %781 = vector.extract_strided_slice %771 {offsets = [0, 128], sizes = [2, 128], strides = [1, 1]} : vector<2x384xf32> to vector<2x128xf32>
    %782 = arith.addf %780, %781 : vector<2x128xf32>
    %783 = arith.negf %782 : vector<2x128xf32>
    %784 = math.exp %783 : vector<2x128xf32>
    %cst_174 = arith.constant 1.000000e+00 : f32
    %785 = vector.broadcast %cst_174 : f32 to vector<2x128xf32>
    %786 = arith.addf %785, %784 : vector<2x128xf32>
    %787 = arith.divf %785, %786 : vector<2x128xf32>
    %788 = vector.extract_strided_slice %767 {offsets = [0, 256], sizes = [2, 128], strides = [1, 1]} : vector<2x384xf32> to vector<2x128xf32>
    %789 = vector.extract_strided_slice %771 {offsets = [0, 256], sizes = [2, 128], strides = [1, 1]} : vector<2x384xf32> to vector<2x128xf32>
    %790 = arith.mulf %779, %789 : vector<2x128xf32>
    %791 = arith.addf %788, %790 : vector<2x128xf32>
    %792 = math.tanh %791 : vector<2x128xf32>
    %cst_175 = arith.constant 1.000000e+00 : f32
    %793 = vector.broadcast %cst_175 : f32 to vector<2x128xf32>
    %794 = arith.subf %793, %787 : vector<2x128xf32>
    %795 = arith.mulf %794, %792 : vector<2x128xf32>
    %796 = arith.mulf %787, %765 : vector<2x128xf32>
    %797 = arith.addf %795, %796 : vector<2x128xf32>
    %c14_176 = arith.constant 14 : index
    %c0_177 = arith.constant 0 : index
    %798 = vector.load %arg18[%c14_176, %c0_177] : memref<16x128xf32, #tpu.memory_space<vmem>>, vector<2x128xf32>
    tpu.vector_store %arg18[%c14_176, %c0_177], %797 {strides = array<i32>} : memref<16x128xf32, #tpu.memory_space<vmem>>, vector<2x128xf32>,
    %c4_178 = arith.constant 4 : index
    %c0_179 = arith.constant 0 : index
    %799 = vector.load %arg17[%c4_178, %c0_179] : memref<6x128xf32, #tpu.memory_space<vmem>>, vector<2x128xf32>
    tpu.vector_store %arg17[%c4_178, %c0_179], %797 {strides = array<i32>} : memref<6x128xf32, #tpu.memory_space<vmem>>, vector<2x128xf32>,
    %c0_180 = arith.constant 0 : index
    %c0_181 = arith.constant 0 : index
    %800 = vector.load %arg18[%c0_180, %c0_181] : memref<16x128xf32, #tpu.memory_space<vmem>>, vector<16x128xf32>
    %801 = arith.truncf %800 : vector<16x128xf32> to vector<16x128xbf16>
    %c0_182 = arith.constant 0 : index
    %c0_183 = arith.constant 0 : index
    %802 = vector.load %arg14[%c0_182, %c0_183] : memref<128x128xbf16, #tpu.memory_space<vmem>>, vector<128x128xbf16>
    %cst_184 = arith.constant dense<0.000000e+00> : vector<16x128xf32>
    %803 = tpu.matmul %801, %802, %cst_184 {dimension_numbers = #tpu.dot_dimension_numbers<[1], [0], [0], [1], [0, 0, 1, 1], [], []>} : vector<16x128xbf16>, vector<128x128xbf16>, vector<16x128xf32> -> vector<16x128xf32>
    %c0_185 = arith.constant 0 : index
    %c0_186 = arith.constant 0 : index
    %804 = vector.load %arg15[%c0_185, %c0_186] : memref<1x128xf32, #tpu.memory_space<vmem>>, vector<1x128xf32>
    %805 = vector.broadcast %804 : vector<1x128xf32> to vector<16x128xf32>
    %806 = arith.addf %803, %805 : vector<16x128xf32>
    %c0_187 = arith.constant 0 : index
    %c0_188 = arith.constant 0 : index
    %807 = vector.load %arg16[%c0_187, %c0_188] : memref<16x128xf32, #tpu.memory_space<vmem>>, vector<16x128xf32>
    tpu.vector_store %arg16[%c0_187, %c0_188], %806 {strides = array<i32>} : memref<16x128xf32, #tpu.memory_space<vmem>>, vector<16x128xf32>,
    return
  }
}

</mosaic_0001>

<bundles_post_ra>
// kernel: _lambda_.1
= control target key start
LH: loop header
LB: loop body
LE: loop exit
PB: predicated region body
PF: predicated region fallthrough
CT: control target
= control target key end

     0   :  { %v6232_v38 = vmov 0.0   ;;  %vm6233_vm0 = vmmov 0   ;;  %vm473_vm1 = vcmask 1045504   ;;  %vm469_vm2 = vcmask 359424   ;;  %s8481_s2 = inlined_call_operand.vmem [shape: bf16[300,384], index: 2, kind: input, shape index: {}]   ;;  %s8482_s0 = inlined_call_operand.vmem [shape: bf16[16,300], index: 0, kind: input, shape index: {}]   ;;  %s8483_s3 = inlined_call_operand.vmem [shape: bf16[128,384], index: 3, kind: input, shape index: {}]   ;;  %s8484_s1 = inlined_call_operand.vmem [shape: f32[6,128], index: 1, kind: input, shape index: {}]   ;;  %s8485_s4 = inlined_call_operand.vmem [shape: f32[1,384], index: 4, kind: input, shape index: {}]   ;;  %s8486_s5 = inlined_call_operand.vmem [shape: f32[1,384], index: 5, kind: input, shape index: {}]   ;;  %s8487_s6 = inlined_call_operand.vmem [shape: bf16[128,384], index: 6, kind: input, shape index: {}]   ;;  %s8488_s7 = inlined_call_operand.vmem [shape: bf16[128,384], index: 7, kind: input, shape index: {}]   ;;  %s8489_s17 = inlined_call_operand.vmem [shape: f32[6,128], index: 17, kind: output, shape index: {1}]   ;;  %s8490_s8 = inlined_call_operand.vmem [shape: f32[1,384], index: 8, kind: input, shape index: {}]   ;;  %s8491_s9 = inlined_call_operand.vmem [shape: f32[1,384], index: 9, kind: input, shape index: {}]   ;;  %s8492_s10 = inlined_call_operand.vmem [shape: bf16[128,384], index: 10, kind: input, shape index: {}]   ;;  %s8493_s11 = inlined_call_operand.vmem [shape: bf16[128,384], index: 11, kind: input, shape index: {}]   ;;  %s8494_s12 = inlined_call_operand.vmem [shape: f32[1,384], index: 12, kind: input, shape index: {}]   ;;  %s8495_s13 = inlined_call_operand.vmem [shape: f32[1,384], index: 13, kind: input, shape index: {}]   ;;  %s8496_s14 = inlined_call_operand.vmem [shape: bf16[128,128], index: 14, kind: input, shape index: {}]   ;;  %s8497_s15 = inlined_call_operand.vmem [shape: f32[1,128], index: 15, kind: input, shape index: {}]   ;;  %s8498_s16 = inlined_call_operand.vmem [shape: f32[16,128], index: 16, kind: output, shape index: {0}]  }
   0x1   :  { %8501 = sst [smem:[#allocation4_spill]] %s8481_s2  ;;  %v6469_v46 = vld [vmem:[%s8483_s3 + $0x4] ss:$12 sps:$4 sm:$0xff]   ;;  %v6482_v49 = vld [vmem:[%s8483_s3] ss:$12 sps:$4 sm:$0xff]   ;;  %v6234_v56 = vmov 0  }
   0x2   :  { %8502 = sst [smem:[#allocation5_spill]] %s8482_s0  ;;  %s8503_s26 = sld [smem:[#allocation4_spill]]  ;;  %v6491_v51 = vld [vmem:[%s8483_s3 + $0x1c] ss:$12 sps:$4 sm:$0xff]   ;;  %v6501_v53 = vld [vmem:[%s8483_s3 + $0x18] ss:$12 sps:$4 sm:$0xff]  }
   0x3   :  { %s8504_s22 = sld [smem:[#allocation5_spill]]  ;;  %v6511_v55 = vld [vmem:[%s8483_s3 + $0x34] ss:$12 sps:$4 sm:$0xff]   ;;  %v6520_v58 = vld [vmem:[%s8483_s3 + $0x30] ss:$12 sps:$4 sm:$0xff]  }
   0x4   :  { %v6530_v60 = vld [vmem:[%s8483_s3 + $0x4c] ss:$12 sps:$4 sm:$0xff]   ;;  %v6539_v62 = vld [vmem:[%s8483_s3 + $0x48] ss:$12 sps:$4 sm:$0xff]  }
   0x8   :  { %v5677_v0 = vld [vmem:[%s8503_s26 + $0x4] ss:$12 sps:$4 sm:$0xff]   ;;  %v5679_v1 = vld [vmem:[%s8503_s26 + $0xc8] ss:$12 sps:$4 sm:$0xff]   ;;  %v5680_v2 = vld [vmem:[%s8503_s26] ss:$12 sps:$4 sm:$0xff]  }
   0x9   :  { %483 = vmatprep.subr.bf16.mxu0 %v5677_v0  ;;  %4847 = vmatprep.subr.bf16.mxu1 %v5679_v1  ;;  %v5681_v3 = vld [vmem:[%s8503_s26 + $0x8] ss:$12 sps:$4 sm:$0xff]   ;;  %v5684_v5 = vld [vmem:[%s8503_s26 + $0xe0] ss:$12 sps:$4 sm:$0xff]   ;;  %v5685_v6 = vld [vmem:[%s8503_s26 + $0x18] ss:$12 sps:$4 sm:$0xff]  }
   0xa   :  { %484 = vmatpush1.bf16.msra.mxu0 %v5680_v2  ;;  %v5682_v4 = vld [vmem:[%s8503_s26 + $0x1c] ss:$12 sps:$4 sm:$0xff]   ;;  %4848 = vmatpush3.bf16.msra.mxu1 %v5681_v3  ;;  %v5686_v7 = vld [vmem:[%s8503_s26 + $0x20] ss:$12 sps:$4 sm:$0xff]   ;;  %v5689_v9 = vld [vmem:[%s8503_s26 + $0xf8] ss:$12 sps:$4 sm:$0xff]  }
   0xb   :  { %485 = vmatprep.subr.bf16.mxu0 %v5682_v4  ;;  %4849 = vmatprep.subr.bf16.mxu1 %v5684_v5  ;;  %v5687_v8 = vld [vmem:[%s8503_s26 + $0x34] ss:$12 sps:$4 sm:$0xff]   ;;  %v5690_v10 = vld [vmem:[%s8503_s26 + $0x30] ss:$12 sps:$4 sm:$0xff]   ;;  %v5691_v11 = vld [vmem:[%s8503_s26 + $0x38] ss:$12 sps:$4 sm:$0xff]  }
   0xc   :  { %v5692_v12 = vld [vmem:[%s8503_s26 + $0x4c] ss:$12 sps:$4 sm:$0xff]   ;;  %v5694_v13 = vld [vmem:[%s8503_s26 + $0x110] ss:$12 sps:$4 sm:$0xff]   ;;  %v5695_v14 = vld [vmem:[%s8503_s26 + $0x48] ss:$12 sps:$4 sm:$0xff]  }
   0xd   :  { %v5696_v15 = vld [vmem:[%s8503_s26 + $0x50] ss:$12 sps:$4 sm:$0xff]   ;;  %v5699_v17 = vld [vmem:[%s8503_s26 + $0x128] ss:$12 sps:$4 sm:$0xff]   ;;  %v5700_v18 = vld [vmem:[%s8503_s26 + $0x60] ss:$12 sps:$4 sm:$0xff]  }
   0xe   :  { %486 = vmatpush1.bf16.msra.mxu0 %v5685_v6  ;;  %4850 = vmatpush3.bf16.msra.mxu1 %v5686_v7  ;;  %v5697_v16 = vld [vmem:[%s8503_s26 + $0x64] ss:$12 sps:$4 sm:$0xff]   ;;  %v5701_v19 = vld [vmem:[%s8503_s26 + $0x68] ss:$12 sps:$4 sm:$0xff]   ;;  %v5704_v21 = vld [vmem:[%s8503_s26 + $0x140] ss:$12 sps:$4 sm:$0xff]  }
   0xf   :  { %487 = vmatprep.subr.bf16.mxu0 %v5687_v8  ;;  %4851 = vmatprep.subr.bf16.mxu1 %v5689_v9  ;;  %v5702_v20 = vld [vmem:[%s8503_s26 + $0x7c] ss:$12 sps:$4 sm:$0xff]   ;;  %v5705_v22 = vld [vmem:[%s8503_s26 + $0x78] ss:$12 sps:$4 sm:$0xff]   ;;  %v5706_v23 = vld [vmem:[%s8503_s26 + $0x80] ss:$12 sps:$4 sm:$0xff]  }
  0x10   :  { %v5707_v24 = vld [vmem:[%s8503_s26 + $0x94] ss:$12 sps:$4 sm:$0xff]   ;;  %v5709_v25 = vld [vmem:[%s8503_s26 + $0x158] ss:$12 sps:$4 sm:$0xff]   ;;  %v5710_v26 = vld [vmem:[%s8503_s26 + $0x90] ss:$12 sps:$4 sm:$0xff]  }
  0x11   :  { %v5711_v27 = vld [vmem:[%s8503_s26 + $0x98] ss:$12 sps:$4 sm:$0xff]   ;;  %v5714_v29 = vld [vmem:[%s8503_s26 + $0x170] ss:$12 sps:$4 sm:$0xff]   ;;  %v5715_v30 = vld [vmem:[%s8503_s26 + $0xa8] ss:$12 sps:$4 sm:$0xff]  }
  0x12   :  { %488 = vmatpush1.bf16.msra.mxu0 %v5690_v10  ;;  %4852 = vmatpush3.bf16.msra.mxu1 %v5691_v11  ;;  %v5712_v28 = vld [vmem:[%s8503_s26 + $0xac] ss:$12 sps:$4 sm:$0xff]   ;;  %v5716_v31 = vld [vmem:[%s8503_s26 + $0xb0] ss:$12 sps:$4 sm:$0xff]   ;;  %v5724_v36 = vld [vmem:[%s8503_s26 + $0x188] ss:$12 sps:$4 sm:$0xff]  }
  0x13   :  { %489 = vmatprep.subr.bf16.mxu0 %v5692_v12  ;;  %4853 = vmatprep.subr.bf16.mxu1 %v5694_v13  ;;  %v5717_v32 = vld [vmem:[%s8503_s26 + $0xc4] ss:$12 sps:$4 sm:$0xff]   ;;  %v6430_v34 = vld [vmem:[%s8504_s22] ss:$12 sps:$4 sm:$0xff]   ;;  %v5725_v37 = vld [vmem:[%s8503_s26 + $0xdc] ss:$12 sps:$4 sm:$0xff]  }
  0x14   :  { %v5721_v33 = vld [vmem:[%s8504_s22 + $0x4] ss:$12 sps:$4 sm:$0xff]   ;;  %v5723_v35 = vld [vmem:[%s8503_s26 + $0xc0] ss:$12 sps:$4 sm:$0xff]   ;;  %v6474_v47 = vld [vmem:[%s8504_s22 + $0x8] ss:$12 sps:$4 sm:$0xff]  }
  0x15   :  { %601 = vmatprep.mubr.bf16.mxu1 %v5721_v33  ;;  %515 = vmatprep.mubr.bf16.mxu0 %v5721_v33  ;;  %v5727_v39 = vld [vmem:[%s8503_s26 + $0xd8] ss:$12 sps:$4 sm:$0xff]   ;;  %v5728_v40 = vld [vmem:[%s8503_s26 + $0x1a0] ss:$12 sps:$4 sm:$0xff]   ;;  %v5731_v43 = vld [vmem:[%s8503_s26 + $0xf0] ss:$12 sps:$4 sm:$0xff]  }
  0x16   :  { %490 = vmatpush1.bf16.msra.mxu0 %v5695_v14  ;;  %4854 = vmatpush3.bf16.msra.mxu1 %v5696_v15  ;;  %v5729_v41 = vld [vmem:[%s8503_s26 + $0xf4] ss:$12 sps:$4 sm:$0xff]   ;;  %v5732_v42 = vld [vmem:[%s8503_s26 + $0x1b8] ss:$12 sps:$4 sm:$0x3f]  }
  0x17   :  { %491 = vmatprep.subr.bf16.mxu0 %v5697_v16  ;;  %4855 = vmatprep.subr.bf16.mxu1 %v5699_v17  ;;  %v5733_v44 = vld [vmem:[%s8503_s26 + $0x10c] ss:$12 sps:$4 sm:$0xff]   ;;  %v481_v45 = vsel %vm473_vm1, %v5732_v42, 0  ;;  %v5737_v48 = vld [vmem:[%s8503_s26 + $0x108] ss:$12 sps:$4 sm:$0xff]  }
  0x18   :  { %v5739_v50 = vld [vmem:[%s8503_s26 + $0x124] ss:$12 sps:$4 sm:$0xff]   ;;  %v5743_v52 = vld [vmem:[%s8503_s26 + $0x120] ss:$12 sps:$4 sm:$0xff]   ;;  %v5745_v54 = vld [vmem:[%s8503_s26 + $0x13c] ss:$12 sps:$4 sm:$0xff]  }
  0x19   :  { %v5749_v57 = vld [vmem:[%s8503_s26 + $0x138] ss:$12 sps:$4 sm:$0xff]   ;;  %v5751_v59 = vld [vmem:[%s8503_s26 + $0x154] ss:$12 sps:$4 sm:$0xff]   ;;  %v5755_v61 = vld [vmem:[%s8503_s26 + $0x150] ss:$12 sps:$4 sm:$0xff]  }
  0x1a   :  { %492 = vmatpush1.bf16.msra.mxu0 %v5700_v18  ;;  %4856 = vmatpush3.bf16.msra.mxu1 %v5701_v19  ;;  %v5757_v63 = vld [vmem:[%s8503_s26 + $0x16c] ss:$12 sps:$4 sm:$0xff]   ;;  %v6548_v0 = vld [vmem:[%s8483_s3 + $0x64] ss:$12 sps:$4 sm:$0xff]   ;;  %v5761_v1 = vld [vmem:[%s8503_s26 + $0x168] ss:$12 sps:$4 sm:$0xff]  }
  0x1b   :  { %493 = vmatprep.subr.bf16.mxu0 %v5702_v20  ;;  %4857 = vmatprep.subr.bf16.mxu1 %v5704_v21  ;;  %v6556_v2 = vld [vmem:[%s8483_s3 + $0x60] ss:$12 sps:$4 sm:$0xff]   ;;  %v5765_v3 = vld [vmem:[%s8503_s26 + $0x184] ss:$12 sps:$4 sm:$0xff]   ;;  %v6566_v4 = vld [vmem:[%s8483_s3 + $0x7c] ss:$12 sps:$4 sm:$0xff]  }
  0x1c   :  { %v5763_v5 = vld [vmem:[%s8503_s26 + $0x180] ss:$12 sps:$4 sm:$0xff]   ;;  %v6574_v6 = vld [vmem:[%s8483_s3 + $0x78] ss:$12 sps:$4 sm:$0xff]   ;;  %v5771_v7 = vld [vmem:[%s8503_s26 + $0x19c] ss:$12 sps:$4 sm:$0xff]  }
  0x1d   :  { %v6584_v8 = vld [vmem:[%s8483_s3 + $0x94] ss:$12 sps:$4 sm:$0xff]   ;;  %v5769_v9 = vld [vmem:[%s8503_s26 + $0x198] ss:$12 sps:$4 sm:$0xff]   ;;  %v6593_v10 = vld [vmem:[%s8483_s3 + $0x90] ss:$12 sps:$4 sm:$0xff]  }
  0x1e   :  { %494 = vmatpush1.bf16.msra.mxu0 %v5705_v22  ;;  %4858 = vmatpush3.bf16.msra.mxu1 %v5706_v23  ;;  %v5775_v11 = vld [vmem:[%s8503_s26 + $0x1b4] ss:$12 sps:$4 sm:$0x3f]   ;;  %v5779_v12 = vld [vmem:[%s8503_s26 + $0x1b0] ss:$12 sps:$4 sm:$0x3f]  }
  0x1f   :  { %495 = vmatprep.subr.bf16.mxu0 %v5707_v24  ;;  %4859 = vmatprep.subr.bf16.mxu1 %v5709_v25  ;;  %v6607_v13 = vld [vmem:[%s8483_s3 + $0xac] ss:$12 sps:$4 sm:$0xff]   ;;  %v475_v14 = vsel %vm473_vm1, %v5779_v12, 0  ;;  %v6615_v15 = vld [vmem:[%s8483_s3 + $0xa8] ss:$12 sps:$4 sm:$0xff]  }
  0x20   :  { %v6620_v16 = vld [vmem:[%s8484_s1] sm:$0x3]  ;;  %v6628_v18 = vld [vmem:[%s8483_s3 + $0x8] ss:$12 sps:$4 sm:$0xff]   ;;  %v6651_v20 = vld [vmem:[%s8483_s3 + $0x38] ss:$12 sps:$4 sm:$0xff]  }
  0x21   :  { %v685_v17 = vpack.c.bf16 %v6620_v16, %v6620_v16  ;;  %v6639_v19 = vld [vmem:[%s8483_s3 + $0x20] ss:$12 sps:$4 sm:$0xff]   ;;  %v6660_v21 = vld [vmem:[%s8483_s3 + $0x50] ss:$12 sps:$4 sm:$0xff]   ;;  %v6669_v22 = vld [vmem:[%s8483_s3 + $0x68] ss:$12 sps:$4 sm:$0xff]  }
  0x22   :  { %496 = vmatpush1.bf16.msra.mxu0 %v5710_v26  ;;  %4860 = vmatpush3.bf16.msra.mxu1 %v5711_v27  ;;  %v6678_v23 = vld [vmem:[%s8483_s3 + $0x80] ss:$12 sps:$4 sm:$0xff]   ;;  %v6687_v24 = vld [vmem:[%s8483_s3 + $0x98] ss:$12 sps:$4 sm:$0xff]   ;;  %v6696_v25 = vld [vmem:[%s8483_s3 + $0xb0] ss:$12 sps:$4 sm:$0xff]   ;;  %v138_v26 = vlaneseq }
  0x23   :  { %497 = vmatprep.subr.bf16.mxu0 %v5712_v28  ;;  %4861 = vmatprep.subr.bf16.mxu1 %v5714_v29  ;;  %v136_v29 = vld [vmem:[%s8485_s4] sm:$0x7] }
  0x24   :  { %v139_v27 = vshrl.u32 %v138_v26, 7 }
  0x26   :  { %498 = vmatpush1.bf16.msra.mxu0 %v5715_v30  ;;  %4862 = vmatpush3.bf16.msra.mxu1 %v5716_v31  ;;  %v6723_v28 = vsub.s32 2, %v139_v27 }
  0x27   :  { %499 = vmatprep.subr.bf16.mxu0 %v5717_v32  ;;  %5116 = vmatprep.subr.bf16.mxu1 %v6232_v38 }
  0x29   :  { %602 = vmatmul.mubr.bf16.vlgmr.msra.gmra.mrb[0].mxu1 %v6430_v34 }
  0x2a   :  { %500 = vmatpush1.bf16.msra.mxu0 %v5723_v35  ;;  %5117 = vmatpush3.bf16.msra.mxu1 %v5724_v36 }
  0x2b   :  { %501 = vmatprep.subr.bf16.mxu0 %v5725_v37  ;;  %5118 = vmatprep.subr.bf16.mxu1 %v6232_v38 }
  0x2c   :  { %5122 = vmatprep.mubr.msk.bf16.mxu1 %vm6233_vm0, %v6232_v38 }
  0x2e   :  { %502 = vmatpush1.bf16.msra.mxu0 %v5727_v39  ;;  %5119 = vmatpush3.bf16.msra.mxu1 %v5728_v40 }
  0x2f   :  { %503 = vmatprep.subr.bf16.mxu0 %v5729_v41  ;;  %5120 = vmatprep.subr.bf16.mxu1 %v6232_v38 }
  0x32   :  { %504 = vmatpush1.bf16.msra.mxu0 %v5731_v43  ;;  %5121 = vmatpush3.bf16.msra.mxu1 %v481_v45 }
  0x33   :  { %505 = vmatprep.subr.bf16.mxu0 %v5733_v44  ;;  %830 = vmatprep.subr.bf16.mxu1 %v6469_v46 }
  0x35   :  { %5123 = vmatmul.mubr.msk.bf16.vlgmr.msra.gmra.mrb[4].mxu1 %vm469_vm2, %v6474_v47 }
  0x36   :  { %506 = vmatpush1.bf16.msra.mxu0 %v5737_v48  ;;  %831 = vmatpush1.bf16.msra.mxu1 %v6482_v49  ;;  %v683_v48 = vld [vmem:[%s8486_s5] sm:$0x7] }
  0x37   :  { %507 = vmatprep.subr.bf16.mxu0 %v5739_v50  ;;  %832 = vmatprep.subr.bf16.mxu1 %v6491_v51 }
  0x38   :  { %862 = vmatprep.mubr.bf16.mxu1 %v6234_v56 }
  0x3a   :  { %508 = vmatpush1.bf16.msra.mxu0 %v5743_v52  ;;  %833 = vmatpush1.bf16.msra.mxu1 %v6501_v53 }
  0x3b   :  { %509 = vmatprep.subr.bf16.mxu0 %v5745_v54  ;;  %834 = vmatprep.subr.bf16.mxu1 %v6511_v55  ;;  %v6742_v54 = vsub.s32 1, %v139_v27 }
  0x3e   :  { %510 = vmatpush1.bf16.msra.mxu0 %v5749_v57  ;;  %835 = vmatpush1.bf16.msra.mxu1 %v6520_v58 }
  0x3f   :  { %511 = vmatprep.subr.bf16.mxu0 %v5751_v59  ;;  %836 = vmatprep.subr.bf16.mxu1 %v6530_v60 }
  0x42   :  { %512 = vmatpush1.bf16.msra.mxu0 %v5755_v61  ;;  %837 = vmatpush1.bf16.msra.mxu1 %v6539_v62 }
  0x43   :  { %513 = vmatprep.subr.bf16.mxu0 %v5757_v63  ;;  %838 = vmatprep.subr.bf16.mxu1 %v6548_v0 }
  0x46   :  { %514 = vmatpush1.bf16.msra.mxu0 %v5761_v1  ;;  %839 = vmatpush1.bf16.msra.mxu1 %v6556_v2 }
  0x47   :  { %526 = vmatprep.subr.bf16.mxu0 %v5765_v3  ;;  %840 = vmatprep.subr.bf16.mxu1 %v6566_v4  ;;  %v145_v3 = vrot.slane %v136_v29, %v6742_v54 }
  0x49   :  { %516 = vmatmul.mubr.bf16.vlgmr.msra.gmra.mrb[0].mxu0 %v6430_v34  ;;  %v149_v34 = vrot.slane %v136_v29, %v6723_v28 }
  0x4a   :  { %527 = vmatpush1.bf16.msra.mxu0 %v5763_v5  ;;  %558 = vmatprep.mubr.bf16.mxu0 %v6234_v56  ;;  %v6749_v5 = vrot.slane %v683_v48, %v6742_v54 }
  0x4b   :  { %841 = vmatpush1.bf16.msra.mxu1 %v6574_v6  ;;  %528 = vmatprep.subr.bf16.mxu0 %v5771_v7 }
  0x4c   :  { %842 = vmatprep.subr.bf16.mxu1 %v6584_v8 }
  0x4e   :  { %529 = vmatpush1.bf16.msra.mxu0 %v5769_v9 }
  0x4f   :  { %843 = vmatpush1.bf16.msra.mxu1 %v6593_v10  ;;  %4667 = vmatprep.subr.msk.bf16.mxu0 %vm473_vm1, %v5775_v11 }
  0x50   :  { %844 = vmatprep.subr.bf16.mxu1 %v6607_v13 }
  0x52   :  { %531 = vmatpush1.bf16.msra.mxu0 %v475_v14 }
  0x53   :  { %845 = vmatpush1.bf16.msra.mxu1 %v6615_v15  ;;  %5126 = vmatprep.subr.bf16.mxu0 %v6232_v38 }
  0x54   :  { %934 = vmatprep.subr.bf16.mxu1 %v6469_v46 }
  0x55   :  { %4668 = vmatmul.mubr.msk.bf16.vlgmr.msra.gmra.mrb[0].mxu0 %vm469_vm2, %v6474_v47  ;;  %v6733_v47 = vsub.s32 0, %v139_v27 }
  0x56   :  { %863 = vmatmul.mubr.bf16.vlgmr.msra.gmra.mrb[8].mxu1 %v685_v17  ;;  %5127 = vmatpush3.bf16.msra.mxu0 %v6628_v18 }
  0x57   :  { %5128 = vmatprep.subr.bf16.mxu0 %v6232_v38  ;;  %5142 = vmatprep.mubr.msk.bf16.mxu0 %vm6233_vm0, %v6232_v38  ;;  %v141_v50 = vrot.slane %v136_v29, %v6733_v47  ;;  %v6740_v52 = vrot.slane %v683_v48, %v6733_v47 }
  0x58   :  { %935 = vmatpush1.bf16.msra.mxu1 %v6482_v49  ;;  %966 = vmatprep.mubr.bf16.mxu1 %v6234_v56 }
  0x59   :  { %936 = vmatprep.subr.bf16.mxu1 %v6491_v51 }
  0x5a   :  { %5129 = vmatpush3.bf16.msra.mxu0 %v6639_v19 }
  0x5b   :  { %5130 = vmatprep.subr.bf16.mxu0 %v6232_v38 }
  0x5c   :  { %937 = vmatpush1.bf16.msra.mxu1 %v6501_v53 }
  0x5d   :  { %938 = vmatprep.subr.bf16.mxu1 %v6511_v55 }
  0x5e   :  { %5131 = vmatpush3.bf16.msra.mxu0 %v6651_v20 }
  0x5f   :  { %5132 = vmatprep.subr.bf16.mxu0 %v6232_v38 }
  0x60   :  { %939 = vmatpush1.bf16.msra.mxu1 %v6520_v58 }
  0x61   :  { %940 = vmatprep.subr.bf16.mxu1 %v6530_v60 }
  0x62   :  { %5133 = vmatpush3.bf16.msra.mxu0 %v6660_v21 }
  0x63   :  { %5134 = vmatprep.subr.bf16.mxu0 %v6232_v38 }
  0x64   :  { %941 = vmatpush1.bf16.msra.mxu1 %v6539_v62 }
  0x65   :  { %942 = vmatprep.subr.bf16.mxu1 %v6548_v0 }
  0x66   :  { %5135 = vmatpush3.bf16.msra.mxu0 %v6669_v22 }
  0x67   :  { %5136 = vmatprep.subr.bf16.mxu0 %v6232_v38 }
  0x68   :  { %943 = vmatpush1.bf16.msra.mxu1 %v6556_v2 }
  0x69   :  { %944 = vmatprep.subr.bf16.mxu1 %v6566_v4 }
  0x6a   :  { %5137 = vmatpush3.bf16.msra.mxu0 %v6678_v23 }
  0x6b   :  { %5138 = vmatprep.subr.bf16.mxu0 %v6232_v38 }
  0x6c   :  { %945 = vmatpush1.bf16.msra.mxu1 %v6574_v6 }
  0x6d   :  { %946 = vmatprep.subr.bf16.mxu1 %v6584_v8 }
  0x6e   :  { %5139 = vmatpush3.bf16.msra.mxu0 %v6687_v24 }
  0x6f   :  { %5140 = vmatprep.subr.bf16.mxu0 %v6232_v38 }
  0x70   :  { %947 = vmatpush1.bf16.msra.mxu1 %v6593_v10 }
  0x71   :  { %948 = vmatprep.subr.bf16.mxu1 %v6607_v13 }
  0x72   :  { %5141 = vmatpush3.bf16.msra.mxu0 %v6696_v25 }
  0x73   :  { %5146 = vmatprep.subr.bf16.mxu0 %v6232_v38 }
  0x74   :  { %949 = vmatpush1.bf16.msra.mxu1 %v6615_v15 }
  0x75   :  { %5143 = vmatmul.mubr.bf16.vlgmr.msra.gmra.mrb[4].mxu0 %v685_v17  ;;  %1053 = vmatprep.subr.bf16.mxu1 %v6469_v46 }
  0x76   :  { %5147 = vmatpush3.bf16.msra.mxu0 %v6628_v18  ;;  %5162 = vmatprep.mubr.msk.bf16.mxu0 %vm6233_vm0, %v6232_v38 }
  0x77   :  { %5148 = vmatprep.subr.bf16.mxu0 %v6232_v38 }
  0x7a   :  { %5149 = vmatpush3.bf16.msra.mxu0 %v6639_v19 }
  0x7b   :  { %5150 = vmatprep.subr.bf16.mxu0 %v6232_v38 }
  0x7e   :  { %5151 = vmatpush3.bf16.msra.mxu0 %v6651_v20 }
  0x7f   :  { %5152 = vmatprep.subr.bf16.mxu0 %v6232_v38 }
  0x82   :  { %5153 = vmatpush3.bf16.msra.mxu0 %v6660_v21 }
  0x83   :  { %5154 = vmatprep.subr.bf16.mxu0 %v6232_v38 }
  0x86   :  { %5155 = vmatpush3.bf16.msra.mxu0 %v6669_v22 }
  0x87   :  { %5156 = vmatprep.subr.bf16.mxu0 %v6232_v38 }
  0x8a   :  { %5157 = vmatpush3.bf16.msra.mxu0 %v6678_v23 }
  0x8b   :  { %5158 = vmatprep.subr.bf16.mxu0 %v6232_v38 }
  0x8e   :  { %5159 = vmatpush3.bf16.msra.mxu0 %v6687_v24 }
  0x8f   :  { %5160 = vmatprep.subr.bf16.mxu0 %v6232_v38 }
  0x92   :  { %5161 = vmatpush3.bf16.msra.mxu0 %v6696_v25 }
  0x93   :  { %5166 = vmatprep.subr.bf16.mxu0 %v6232_v38 }
  0xfc   :  { %v4863_v30 = vpop.f32.mrb[0].mxu1 }
  0xfd   :  { %v4864_v31 = vpop.f32.mrb[1].mxu1 }
  0xfe   :  { %v4865_v32 = vadd.f32 %v4864_v31, %v4863_v30  ;;  %v4866_v33 = vpop.f32.mrb[2].mxu1 }
  0xff   :  { %v4867_v35 = vpop.f32.mrb[3].mxu1 }
 0x100   :  { %v4868_v36 = vadd.f32 %v4867_v35, %v4866_v33  ;;  %v604_v39 = vadd.f32 %v4865_v32, %v149_v34 }
 0x102   :  { %v607_v37 = vadd.f32 %v4868_v36, %v149_v34 }
 0x108   :  { %v644_v40 = vpop.f32.mrb[4].mxu1 }
 0x109   :  { %v6729_v41 = vadd.f32 %v644_v40, %v604_v39  ;;  %v5124_v42 = vpop.f32.mrb[5].mxu1 }
 0x10a   :  { %v647_v43 = vpop.f32.mrb[6].mxu1 }
 0x10b   :  { %v6731_v44 = vadd.f32 %v647_v43, %v607_v37  ;;  %v5125_v45 = vpop.f32.mrb[7].mxu1  ;;  %v6761_v37 = vrot.slane %v683_v48, %v6723_v28 }
 0x128   :  { %v560_v57 = vpop.f32.mrb[0].mxu0 }
 0x129   :  { %v6744_v59 = vadd.f32 %v560_v57, %v141_v50  ;;  %v864_v61 = vpop.f32.mrb[8].mxu1  ;;  %v562_v63 = vpop.f32.mrb[1].mxu0 }
 0x12a   :  { %v865_v1 = vadd.f32 %v864_v61, %v6740_v52  ;;  %v866_v7 = vpop.f32.mrb[9].mxu1  ;;  %v564_v9 = vpop.f32.mrb[2].mxu0  ;;  %v6756_v31 = vadd.f32 %v562_v63, %v145_v3 }
 0x12b   :  { %v6751_v11 = vadd.f32 %v564_v9, %v141_v50  ;;  %v566_v12 = vpop.f32.mrb[3].mxu0  ;;  %v868_v14 = vpop.f32.mrb[10].mxu1  ;;  %v867_v32 = vadd.f32 %v866_v7, %v6749_v5 }
 0x12c   :  { %v911_v17 = vadd.f32 %v6744_v59, %v865_v1  ;;  %v6754_v26 = vadd.f32 %v566_v12, %v145_v3  ;;  %v869_v27 = vpop.f32.mrb[11].mxu1 }
 0x12d   :  { %v918_v29 = vadd.f32 %v6756_v31, %v867_v32 }
 0x12e   :  { %v4694_v30 = vmul.f32 -1.442695, %v911_v17 }
 0x12f   :  { %v4695_v33 = vmul.f32 -1.442695, %v918_v29 }
 0x130   :  { %5925 = vpow2.f32 %v4694_v30 }
 0x131   :  { %5927 = vpow2.f32 %v4695_v33 }
 0x13a   :  { %v5926_v34 = vpop.eup %5925 }
 0x13b   :  { %v915_v35 = vadd.f32 1.0, %v5926_v34  ;;  %v5928_v36 = vpop.eup %5927 }
 0x13c   :  { %v922_v39 = vadd.f32 1.0, %v5928_v36 }
 0x13d   :  { %5929 = vrcp.f32 %v915_v35 }
 0x13e   :  { %5931 = vrcp.f32 %v922_v39 }
 0x147   :  { %v5930_v45 = vpop.eup %5929 }
 0x148   :  { %v905_v40 = vpop.f32.mrb[4].mxu0  ;;  %v5932_v1 = vpop.eup %5931 }
 0x149   :  { %v906_v42 = vadd.f32 %v905_v40, %v6761_v37  ;;  %v5144_v43 = vpop.f32.mrb[5].mxu0  ;;  %v928_v3 = vsub.f32 1.0, %v5932_v1  ;;  %v930_v48 = vmul.f32 %v5932_v1, %v6620_v16 }
 0x14a   :  { %v908_v50 = vpop.f32.mrb[6].mxu0 }
 0x14b   :  { %v925_v57 = vmul.f32 %v5930_v45, %v906_v42  ;;  %v5145_v61 = vpop.f32.mrb[7].mxu0 }
 0x14d   :  { %v926_v63 = vadd.f32 %v925_v57, %v6729_v41 }
 0x14f   :  { %5933 = vtanh.f32 %v926_v63 }
 0x159   :  { %v5934_v7 = vpop.eup %5933 }
 0x15a   :  { %v929_v9 = vmul.f32 %v5934_v7, %v928_v3 }
 0x15c   :  { %v6766_v12 = vadd.f32 %v930_v48, %v929_v9 }
 0x15e   :  { %932 = vst [vmem:[#allocation2] sm:$0x3] %v6766_v12  ;;  %v933_v14 = vpack.c.bf16 %v6766_v12, %v6766_v12  ;;  %v1044_v48 = vrot.slane %v6766_v12, 6 }
 0x160   :  { %967 = vmatmul.mubr.bf16.vlgmr.msra.gmra.mrb[12].mxu1 %v933_v14  ;;  %5163 = vmatmul.mubr.bf16.vlgmr.msra.gmra.mrb[8].mxu0 %v933_v14 }
 0x161   :  { %1054 = vmatpush1.bf16.msra.mxu1 %v6482_v49  ;;  %5167 = vmatpush3.bf16.msra.mxu0 %v6628_v18 }
 0x162   :  { %1055 = vmatprep.subr.bf16.mxu1 %v6491_v51  ;;  %5168 = vmatprep.subr.bf16.mxu0 %v6232_v38 }
 0x163   :  { %1085 = vmatprep.mubr.bf16.mxu1 %v6234_v56  ;;  %5182 = vmatprep.mubr.msk.bf16.mxu0 %vm6233_vm0, %v6232_v38 }
 0x165   :  { %1056 = vmatpush1.bf16.msra.mxu1 %v6501_v53  ;;  %5169 = vmatpush3.bf16.msra.mxu0 %v6639_v19 }
 0x166   :  { %1057 = vmatprep.subr.bf16.mxu1 %v6511_v55  ;;  %5170 = vmatprep.subr.bf16.mxu0 %v6232_v38 }
 0x169   :  { %1058 = vmatpush1.bf16.msra.mxu1 %v6520_v58  ;;  %5171 = vmatpush3.bf16.msra.mxu0 %v6651_v20 }
 0x16a   :  { %1059 = vmatprep.subr.bf16.mxu1 %v6530_v60  ;;  %5172 = vmatprep.subr.bf16.mxu0 %v6232_v38 }
 0x16d   :  { %1060 = vmatpush1.bf16.msra.mxu1 %v6539_v62  ;;  %5173 = vmatpush3.bf16.msra.mxu0 %v6660_v21 }
 0x16e   :  { %1061 = vmatprep.subr.bf16.mxu1 %v6548_v0  ;;  %5174 = vmatprep.subr.bf16.mxu0 %v6232_v38 }
 0x171   :  { %1062 = vmatpush1.bf16.msra.mxu1 %v6556_v2  ;;  %5175 = vmatpush3.bf16.msra.mxu0 %v6669_v22 }
 0x172   :  { %1063 = vmatprep.subr.bf16.mxu1 %v6566_v4  ;;  %5176 = vmatprep.subr.bf16.mxu0 %v6232_v38 }
 0x175   :  { %1064 = vmatpush1.bf16.msra.mxu1 %v6574_v6  ;;  %5177 = vmatpush3.bf16.msra.mxu0 %v6678_v23 }
 0x176   :  { %1065 = vmatprep.subr.bf16.mxu1 %v6584_v8  ;;  %5178 = vmatprep.subr.bf16.mxu0 %v6232_v38 }
 0x179   :  { %1066 = vmatpush1.bf16.msra.mxu1 %v6593_v10  ;;  %5179 = vmatpush3.bf16.msra.mxu0 %v6687_v24 }
 0x17a   :  { %1067 = vmatprep.subr.bf16.mxu1 %v6607_v13  ;;  %5180 = vmatprep.subr.bf16.mxu0 %v6232_v38 }
 0x17d   :  { %1068 = vmatpush1.bf16.msra.mxu1 %v6615_v15  ;;  %5181 = vmatpush3.bf16.msra.mxu0 %v6696_v25 }
 0x17e   :  { %1172 = vmatprep.subr.bf16.mxu1 %v6469_v46  ;;  %5186 = vmatprep.subr.bf16.mxu0 %v6232_v38 }
 0x233   :  { %v968_v16 = vpop.f32.mrb[12].mxu1  ;;  %v1009_v17 = vpop.f32.mrb[8].mxu0 }
 0x234   :  { %v969_v27 = vadd.f32 %v968_v16, %v6740_v52  ;;  %v970_v30 = vpop.f32.mrb[13].mxu1  ;;  %v5164_v32 = vpop.f32.mrb[9].mxu0  ;;  %v1010_v3 = vadd.f32 %v1009_v17, %v6761_v37 }
 0x235   :  { %v971_v29 = vadd.f32 %v970_v30, %v6749_v5  ;;  %v972_v33 = vpop.f32.mrb[14].mxu1  ;;  %v1012_v34 = vpop.f32.mrb[10].mxu0 }
 0x236   :  { %v1016_v35 = vrot.slane %v969_v27, 6  ;;  %v973_v36 = vpop.f32.mrb[15].mxu1  ;;  %v5165_v39 = vpop.f32.mrb[11].mxu0  ;;  %v1036_v7 = vrot.slane %v1010_v3, 6 }
 0x237   :  { %v1026_v40 = vrot.slane %v971_v29, 6 }
 0x238   :  { %v1018_v42 = vadd.f32 %v6744_v59, %v1016_v35 }
 0x239   :  { %v1028_v43 = vadd.f32 %v6756_v31, %v1026_v40 }
 0x23a   :  { %v4696_v45 = vmul.f32 -1.442695, %v1018_v42 }
 0x23b   :  { %v4697_v50 = vmul.f32 -1.442695, %v1028_v43 }
 0x23c   :  { %5935 = vpow2.f32 %v4696_v45 }
 0x23d   :  { %5937 = vpow2.f32 %v4697_v50 }
 0x246   :  { %v5936_v57 = vpop.eup %5935 }
 0x247   :  { %v5938_v61 = vpop.eup %5937  ;;  %v1022_v63 = vadd.f32 1.0, %v5936_v57 }
 0x248   :  { %v1032_v1 = vadd.f32 1.0, %v5938_v61 }
 0x249   :  { %5939 = vrcp.f32 %v1022_v63 }
 0x24a   :  { %5941 = vrcp.f32 %v1032_v1 }
 0x253   :  { %v5940_v9 = vpop.eup %5939 }
 0x254   :  { %v5942_v14 = vpop.eup %5941  ;;  %v1038_v16 = vmul.f32 %v5940_v9, %v1036_v7 }
 0x255   :  { %v1046_v27 = vmul.f32 %v5942_v14, %v1044_v48  ;;  %v1041_v32 = vsub.f32 1.0, %v5942_v14 }
 0x256   :  { %v1039_v30 = vadd.f32 %v1038_v16, %v6729_v41 }
 0x258   :  { %5943 = vtanh.f32 %v1039_v30 }
 0x262   :  { %v5944_v29 = vpop.eup %5943 }
 0x263   :  { %v1042_v33 = vmul.f32 %v5944_v29, %v1041_v32 }
 0x265   :  { %v6813_v34 = vadd.f32 %v1046_v27, %v1042_v33 }
 0x267   :  { %1048 = vst [vmem:[#allocation2] sm:$0xc] %v6813_v34  ;;  %v1049_v17 = vpack.c.bf16 %v6813_v34, %v6813_v34 }
 0x269   :  { %v1051_v35 = vrot.slane %v1049_v17, 1  ;;  %v1163_v17 = vrot.slane %v6813_v34, 6 }
 0x26b   :  { %1086 = vmatmul.mubr.bf16.vlgmr.msra.gmra.mrb[16].mxu1 %v1051_v35  ;;  %5183 = vmatmul.mubr.bf16.vlgmr.msra.gmra.mrb[12].mxu0 %v1051_v35 }
 0x26c   :  { %1173 = vmatpush1.bf16.msra.mxu1 %v6482_v49  ;;  %5187 = vmatpush3.bf16.msra.mxu0 %v6628_v18 }
 0x26d   :  { %1174 = vmatprep.subr.bf16.mxu1 %v6491_v51  ;;  %5188 = vmatprep.subr.bf16.mxu0 %v6232_v38 }
 0x26e   :  { %1204 = vmatprep.mubr.bf16.mxu1 %v6234_v56  ;;  %5202 = vmatprep.mubr.msk.bf16.mxu0 %vm6233_vm0, %v6232_v38 }
 0x270   :  { %1175 = vmatpush1.bf16.msra.mxu1 %v6501_v53  ;;  %5189 = vmatpush3.bf16.msra.mxu0 %v6639_v19 }
 0x271   :  { %1176 = vmatprep.subr.bf16.mxu1 %v6511_v55  ;;  %5190 = vmatprep.subr.bf16.mxu0 %v6232_v38 }
 0x274   :  { %1177 = vmatpush1.bf16.msra.mxu1 %v6520_v58  ;;  %5191 = vmatpush3.bf16.msra.mxu0 %v6651_v20 }
 0x275   :  { %1178 = vmatprep.subr.bf16.mxu1 %v6530_v60  ;;  %5192 = vmatprep.subr.bf16.mxu0 %v6232_v38 }
 0x278   :  { %1179 = vmatpush1.bf16.msra.mxu1 %v6539_v62  ;;  %5193 = vmatpush3.bf16.msra.mxu0 %v6660_v21 }
 0x279   :  { %1180 = vmatprep.subr.bf16.mxu1 %v6548_v0  ;;  %5194 = vmatprep.subr.bf16.mxu0 %v6232_v38 }
 0x27c   :  { %1181 = vmatpush1.bf16.msra.mxu1 %v6556_v2  ;;  %5195 = vmatpush3.bf16.msra.mxu0 %v6669_v22 }
 0x27d   :  { %1182 = vmatprep.subr.bf16.mxu1 %v6566_v4  ;;  %5196 = vmatprep.subr.bf16.mxu0 %v6232_v38 }
 0x280   :  { %1183 = vmatpush1.bf16.msra.mxu1 %v6574_v6  ;;  %5197 = vmatpush3.bf16.msra.mxu0 %v6678_v23 }
 0x281   :  { %1184 = vmatprep.subr.bf16.mxu1 %v6584_v8  ;;  %5198 = vmatprep.subr.bf16.mxu0 %v6232_v38 }
 0x284   :  { %1185 = vmatpush1.bf16.msra.mxu1 %v6593_v10  ;;  %5199 = vmatpush3.bf16.msra.mxu0 %v6687_v24 }
 0x285   :  { %1186 = vmatprep.subr.bf16.mxu1 %v6607_v13  ;;  %5200 = vmatprep.subr.bf16.mxu0 %v6232_v38 }
 0x288   :  { %1187 = vmatpush1.bf16.msra.mxu1 %v6615_v15  ;;  %5201 = vmatpush3.bf16.msra.mxu0 %v6696_v25 }
 0x289   :  { %1291 = vmatprep.subr.bf16.mxu1 %v6469_v46  ;;  %5206 = vmatprep.subr.bf16.mxu0 %v6232_v38 }
 0x33e   :  { %v1087_v12 = vpop.f32.mrb[16].mxu1  ;;  %v1128_v36 = vpop.f32.mrb[12].mxu0 }
 0x33f   :  { %v1088_v39 = vadd.f32 %v1087_v12, %v6740_v52  ;;  %v1089_v40 = vpop.f32.mrb[17].mxu1  ;;  %v5184_v42 = vpop.f32.mrb[13].mxu0  ;;  %v1129_v32 = vadd.f32 %v1128_v36, %v6761_v37 }
 0x340   :  { %v1090_v43 = vadd.f32 %v1089_v40, %v6749_v5  ;;  %v1091_v45 = vpop.f32.mrb[18].mxu1  ;;  %v1131_v50 = vpop.f32.mrb[14].mxu0 }
 0x341   :  { %v1135_v57 = vrot.slane %v1088_v39, 4  ;;  %v1092_v61 = vpop.f32.mrb[19].mxu1  ;;  %v5185_v63 = vpop.f32.mrb[15].mxu0  ;;  %v1155_v29 = vrot.slane %v1129_v32, 4 }
 0x342   :  { %v1145_v1 = vrot.slane %v1090_v43, 4 }
 0x343   :  { %v1137_v3 = vadd.f32 %v6744_v59, %v1135_v57 }
 0x344   :  { %v1147_v7 = vadd.f32 %v6756_v31, %v1145_v1 }
 0x345   :  { %v4698_v9 = vmul.f32 -1.442695, %v1137_v3 }
 0x346   :  { %v4699_v48 = vmul.f32 -1.442695, %v1147_v7 }
 0x347   :  { %5945 = vpow2.f32 %v4698_v9 }
 0x348   :  { %5947 = vpow2.f32 %v4699_v48 }
 0x351   :  { %v5946_v14 = vpop.eup %5945 }
 0x352   :  { %v5948_v16 = vpop.eup %5947  ;;  %v1141_v27 = vadd.f32 1.0, %v5946_v14 }
 0x353   :  { %v1151_v30 = vadd.f32 1.0, %v5948_v16 }
 0x354   :  { %5949 = vrcp.f32 %v1141_v27 }
 0x355   :  { %5951 = vrcp.f32 %v1151_v30 }
 0x35e   :  { %v5950_v33 = vpop.eup %5949 }
 0x35f   :  { %v5952_v35 = vpop.eup %5951  ;;  %v1157_v12 = vmul.f32 %v5950_v33, %v1155_v29 }
 0x360   :  { %v1165_v39 = vmul.f32 %v5952_v35, %v1163_v17  ;;  %v1160_v42 = vsub.f32 1.0, %v5952_v35 }
 0x361   :  { %v1158_v40 = vadd.f32 %v1157_v12, %v6729_v41 }
 0x363   :  { %5953 = vtanh.f32 %v1158_v40 }
 0x36d   :  { %v5954_v43 = vpop.eup %5953 }
 0x36e   :  { %v1161_v45 = vmul.f32 %v5954_v43, %v1160_v42 }
 0x370   :  { %v6860_v50 = vadd.f32 %v1165_v39, %v1161_v45 }
 0x372   :  { %1167 = vst [vmem:[#allocation2] sm:$0x30] %v6860_v50  ;;  %v1168_v36 = vpack.c.bf16 %v6860_v50, %v6860_v50  ;;  %v1282_v45 = vrot.slane %v6860_v50, 6 }
 0x374   :  { %v1170_v57 = vrot.slane %v1168_v36, 2 }
 0x376   :  { %1205 = vmatmul.mubr.bf16.vlgmr.msra.gmra.mrb[20].mxu1 %v1170_v57  ;;  %5203 = vmatmul.mubr.bf16.vlgmr.msra.gmra.mrb[16].mxu0 %v1170_v57 }
 0x377   :  { %1292 = vmatpush1.bf16.msra.mxu1 %v6482_v49  ;;  %5207 = vmatpush3.bf16.msra.mxu0 %v6628_v18 }
 0x378   :  { %1293 = vmatprep.subr.bf16.mxu1 %v6491_v51  ;;  %5208 = vmatprep.subr.bf16.mxu0 %v6232_v38 }
 0x379   :  { %1323 = vmatprep.mubr.bf16.mxu1 %v6234_v56  ;;  %5222 = vmatprep.mubr.msk.bf16.mxu0 %vm6233_vm0, %v6232_v38 }
 0x37b   :  { %1294 = vmatpush1.bf16.msra.mxu1 %v6501_v53  ;;  %5209 = vmatpush3.bf16.msra.mxu0 %v6639_v19 }
 0x37c   :  { %1295 = vmatprep.subr.bf16.mxu1 %v6511_v55  ;;  %5210 = vmatprep.subr.bf16.mxu0 %v6232_v38 }
 0x37f   :  { %1296 = vmatpush1.bf16.msra.mxu1 %v6520_v58  ;;  %5211 = vmatpush3.bf16.msra.mxu0 %v6651_v20 }
 0x380   :  { %1297 = vmatprep.subr.bf16.mxu1 %v6530_v60  ;;  %5212 = vmatprep.subr.bf16.mxu0 %v6232_v38 }
 0x383   :  { %1298 = vmatpush1.bf16.msra.mxu1 %v6539_v62  ;;  %5213 = vmatpush3.bf16.msra.mxu0 %v6660_v21 }
 0x384   :  { %1299 = vmatprep.subr.bf16.mxu1 %v6548_v0  ;;  %5214 = vmatprep.subr.bf16.mxu0 %v6232_v38 }
 0x387   :  { %1300 = vmatpush1.bf16.msra.mxu1 %v6556_v2  ;;  %5215 = vmatpush3.bf16.msra.mxu0 %v6669_v22 }
 0x388   :  { %1301 = vmatprep.subr.bf16.mxu1 %v6566_v4  ;;  %5216 = vmatprep.subr.bf16.mxu0 %v6232_v38 }
 0x38b   :  { %1302 = vmatpush1.bf16.msra.mxu1 %v6574_v6  ;;  %5217 = vmatpush3.bf16.msra.mxu0 %v6678_v23 }
 0x38c   :  { %1303 = vmatprep.subr.bf16.mxu1 %v6584_v8  ;;  %5218 = vmatprep.subr.bf16.mxu0 %v6232_v38 }
 0x38f   :  { %1304 = vmatpush1.bf16.msra.mxu1 %v6593_v10  ;;  %5219 = vmatpush3.bf16.msra.mxu0 %v6687_v24 }
 0x390   :  { %1305 = vmatprep.subr.bf16.mxu1 %v6607_v13  ;;  %5220 = vmatprep.subr.bf16.mxu0 %v6232_v38 }
 0x393   :  { %1306 = vmatpush1.bf16.msra.mxu1 %v6615_v15  ;;  %5221 = vmatpush3.bf16.msra.mxu0 %v6696_v25 }
 0x394   :  { %1398 = vmatprep.subr.bf16.mxu1 %v6469_v46  ;;  %5226 = vmatprep.subr.bf16.mxu0 %v6232_v38 }
 0x449   :  { %v1206_v34 = vpop.f32.mrb[20].mxu1  ;;  %v1247_v61 = vpop.f32.mrb[16].mxu0 }
 0x44a   :  { %v1207_v63 = vadd.f32 %v1206_v34, %v6740_v52  ;;  %v1208_v1 = vpop.f32.mrb[21].mxu1  ;;  %v5204_v3 = vpop.f32.mrb[17].mxu0  ;;  %v1248_v40 = vadd.f32 %v1247_v61, %v6761_v37 }
 0x44b   :  { %v1209_v7 = vadd.f32 %v1208_v1, %v6749_v5  ;;  %v1210_v9 = vpop.f32.mrb[22].mxu1  ;;  %v1250_v48 = vpop.f32.mrb[18].mxu0 }
 0x44c   :  { %v1254_v14 = vrot.slane %v1207_v63, 2  ;;  %v1211_v16 = vpop.f32.mrb[23].mxu1  ;;  %v5205_v27 = vpop.f32.mrb[19].mxu0  ;;  %v1274_v42 = vrot.slane %v1248_v40, 2 }
 0x44d   :  { %v1264_v30 = vrot.slane %v1209_v7, 2 }
 0x44e   :  { %v1256_v32 = vadd.f32 %v6744_v59, %v1254_v14 }
 0x44f   :  { %v1266_v46 = vadd.f32 %v6756_v31, %v1264_v30 }
 0x450   :  { %v4700_v29 = vmul.f32 -1.442695, %v1256_v32 }
 0x451   :  { %v4701_v33 = vmul.f32 -1.442695, %v1266_v46 }
 0x452   :  { %5955 = vpow2.f32 %v4700_v29 }
 0x453   :  { %5957 = vpow2.f32 %v4701_v33 }
 0x45c   :  { %v5956_v17 = vpop.eup %5955 }
 0x45d   :  { %v5958_v35 = vpop.eup %5957  ;;  %v1260_v12 = vadd.f32 1.0, %v5956_v17 }
 0x45e   :  { %v1270_v39 = vadd.f32 1.0, %v5958_v35 }
 0x45f   :  { %5959 = vrcp.f32 %v1260_v12 }
 0x460   :  { %5961 = vrcp.f32 %v1270_v39 }
 0x469   :  { %v5960_v43 = vpop.eup %5959 }
 0x46a   :  { %v5962_v36 = vpop.eup %5961  ;;  %v1276_v59 = vmul.f32 %v5960_v43, %v1274_v42 }
 0x46b   :  { %v1284_v57 = vmul.f32 %v5962_v36, %v1282_v45  ;;  %v1279_v34 = vsub.f32 1.0, %v5962_v36 }
 0x46c   :  { %v1277_v31 = vadd.f32 %v1276_v59, %v6729_v41 }
 0x46e   :  { %5963 = vtanh.f32 %v1277_v31 }
 0x478   :  { %v5964_v63 = vpop.eup %5963 }
 0x479   :  { %v1280_v1 = vmul.f32 %v5964_v63, %v1279_v34  ;;  %v6967_v63 = vld [vmem:[%s8483_s3] ss:$12 sps:$4 sm:$0xff]  }
 0x47b   :  { %v6907_v3 = vadd.f32 %v1284_v57, %v1280_v1  ;;  %v6974_v1 = vld [vmem:[%s8483_s3 + $0x1c] ss:$12 sps:$4 sm:$0xff]  }
 0x47d   :  { %1286 = vst [vmem:[#allocation2] sm:$0xc0] %v6907_v3  ;;  %v1287_v61 = vpack.c.bf16 %v6907_v3, %v6907_v3  ;;  %v1392_v39 = vrot.slane %v6907_v3, 6  ;;  %v6984_v3 = vld [vmem:[%s8483_s3 + $0x18] ss:$12 sps:$4 sm:$0xff]  }
 0x47f   :  { %v1289_v7 = vrot.slane %v1287_v61, 3  ;;  %v6998_v61 = vld [vmem:[%s8483_s3 + $0x30] ss:$12 sps:$4 sm:$0xff]  }
 0x481   :  { %1324 = vmatmul.mubr.bf16.vlgmr.msra.gmra.mrb[24].mxu1 %v1289_v7  ;;  %5223 = vmatmul.mubr.bf16.vlgmr.msra.gmra.mrb[20].mxu0 %v1289_v7 }
 0x482   :  { %1399 = vmatpush1.bf16.msra.mxu1 %v6482_v49  ;;  %5227 = vmatpush3.bf16.msra.mxu0 %v6628_v18  ;;  %v6948_v49 = vld [vmem:[%s8483_s3 + $0x4] ss:$12 sps:$4 sm:$0xff]  }
 0x483   :  { %1400 = vmatprep.subr.bf16.mxu1 %v6491_v51  ;;  %5228 = vmatprep.subr.bf16.mxu0 %v6232_v38 }
 0x484   :  { %1430 = vmatprep.mubr.bf16.mxu1 %v6234_v56  ;;  %5242 = vmatprep.mubr.msk.bf16.mxu0 %vm6233_vm0, %v6232_v38 }
 0x486   :  { %1401 = vmatpush1.bf16.msra.mxu1 %v6501_v53  ;;  %5229 = vmatpush3.bf16.msra.mxu0 %v6639_v19 }
 0x487   :  { %1402 = vmatprep.subr.bf16.mxu1 %v6511_v55  ;;  %5230 = vmatprep.subr.bf16.mxu0 %v6232_v38 }
 0x48a   :  { %1403 = vmatpush1.bf16.msra.mxu1 %v6520_v58  ;;  %5231 = vmatpush3.bf16.msra.mxu0 %v6651_v20 }
 0x48b   :  { %1404 = vmatprep.subr.bf16.mxu1 %v6530_v60  ;;  %5232 = vmatprep.subr.bf16.mxu0 %v6232_v38 }
 0x48e   :  { %1405 = vmatpush1.bf16.msra.mxu1 %v6539_v62  ;;  %5233 = vmatpush3.bf16.msra.mxu0 %v6660_v21 }
 0x48f   :  { %1406 = vmatprep.subr.bf16.mxu1 %v6548_v0  ;;  %5234 = vmatprep.subr.bf16.mxu0 %v6232_v38 }
 0x492   :  { %1407 = vmatpush1.bf16.msra.mxu1 %v6556_v2  ;;  %5235 = vmatpush3.bf16.msra.mxu0 %v6669_v22 }
 0x493   :  { %1408 = vmatprep.subr.bf16.mxu1 %v6566_v4  ;;  %5236 = vmatprep.subr.bf16.mxu0 %v6232_v38 }
 0x496   :  { %1409 = vmatpush1.bf16.msra.mxu1 %v6574_v6  ;;  %5237 = vmatpush3.bf16.msra.mxu0 %v6678_v23 }
 0x497   :  { %1410 = vmatprep.subr.bf16.mxu1 %v6584_v8  ;;  %5238 = vmatprep.subr.bf16.mxu0 %v6232_v38 }
 0x49a   :  { %1411 = vmatpush1.bf16.msra.mxu1 %v6593_v10  ;;  %5239 = vmatpush3.bf16.msra.mxu0 %v6687_v24 }
 0x49b   :  { %1412 = vmatprep.subr.bf16.mxu1 %v6607_v13  ;;  %5240 = vmatprep.subr.bf16.mxu0 %v6232_v38 }
 0x49e   :  { %1413 = vmatpush1.bf16.msra.mxu1 %v6615_v15  ;;  %5241 = vmatpush3.bf16.msra.mxu0 %v6696_v25 }
 0x49f   :  { %1517 = vmatprep.subr.bf16.mxu1 %v6948_v49  ;;  %5246 = vmatprep.subr.bf16.mxu0 %v6232_v38 }
 0x554   :  { %v1325_v51 = vpop.f32.mrb[24].mxu1  ;;  %v1366_v53 = vpop.f32.mrb[20].mxu0 }
 0x555   :  { %v1326_v55 = vadd.f32 %v1325_v51, %v6740_v52  ;;  %v1327_v58 = vpop.f32.mrb[25].mxu1  ;;  %v5224_v60 = vpop.f32.mrb[21].mxu0  ;;  %v1367_v35 = vadd.f32 %v1366_v53, %v6761_v37 }
 0x556   :  { %v1328_v41 = vadd.f32 %v1327_v58, %v6749_v5  ;;  %v1329_v50 = vpop.f32.mrb[26].mxu1  ;;  %v1369_v9 = vpop.f32.mrb[22].mxu0 }
 0x557   :  { %v1372_v48 = vadd.f32 %v6751_v11, %v1326_v55  ;;  %v1330_v14 = vpop.f32.mrb[27].mxu1  ;;  %v5225_v16 = vpop.f32.mrb[23].mxu0 }
 0x558   :  { %v1379_v27 = vadd.f32 %v6754_v26, %v1328_v41 }
 0x559   :  { %v4702_v30 = vmul.f32 -1.442695, %v1372_v48 }
 0x55a   :  { %v4703_v32 = vmul.f32 -1.442695, %v1379_v27 }
 0x55b   :  { %5965 = vpow2.f32 %v4702_v30 }
 0x55c   :  { %5967 = vpow2.f32 %v4703_v32 }
 0x565   :  { %v5966_v46 = vpop.eup %5965 }
 0x566   :  { %v5968_v29 = vpop.eup %5967  ;;  %v1376_v33 = vadd.f32 1.0, %v5966_v46 }
 0x567   :  { %v1383_v17 = vadd.f32 1.0, %v5968_v29 }
 0x568   :  { %5969 = vrcp.f32 %v1376_v33 }
 0x569   :  { %5971 = vrcp.f32 %v1383_v17 }
 0x572   :  { %v5970_v12 = vpop.eup %5969 }
 0x573   :  { %v5972_v40 = vpop.eup %5971  ;;  %v1386_v42 = vmul.f32 %v5970_v12, %v1367_v35 }
 0x574   :  { %v1394_v43 = vmul.f32 %v5972_v40, %v1392_v39  ;;  %v1389_v36 = vsub.f32 1.0, %v5972_v40 }
 0x575   :  { %v1387_v45 = vadd.f32 %v1386_v42, %v6731_v44  ;;  %v6172_v42 = vld [vmem:[%s8483_s3 + $0x8] ss:$12 sps:$4 sm:$0xff]  }
 0x577   :  { %5973 = vtanh.f32 %v1387_v45  ;;  %v6174_v45 = vld [vmem:[%s8483_s3 + $0x38] ss:$12 sps:$4 sm:$0xff]  }
 0x581   :  { %v5974_v59 = vpop.eup %5973 }
 0x582   :  { %v1390_v57 = vmul.f32 %v5974_v59, %v1389_v36  ;;  %v6175_v36 = vld [vmem:[%s8483_s3 + $0x48] ss:$12 sps:$4 sm:$0xff]   ;;  %v6176_v59 = vld [vmem:[%s8483_s3 + $0x64] ss:$12 sps:$4 sm:$0xff]  }
 0x584   :  { %v6959_v31 = vadd.f32 %v1394_v43, %v1390_v57  ;;  %v6173_v43 = vld [vmem:[%s8483_s3 + $0x20] ss:$12 sps:$4 sm:$0xff]  }
 0x585   :  { %v6177_v57 = vld [vmem:[%s8483_s3 + $0x60] ss:$12 sps:$4 sm:$0xff]  }
 0x586   :  { %1396 = vst [vmem:[#allocation2 + $0x8] sm:$0x3] %v6959_v31  ;;  %v1397_v34 = vpack.c.bf16 %v6959_v31, %v6959_v31  ;;  %v1508_v27 = vrot.slane %v6959_v31, 6  ;;  %v6178_v31 = vld [vmem:[%s8483_s3 + $0x7c] ss:$12 sps:$4 sm:$0xff]  }
 0x588   :  { %1431 = vmatmul.mubr.bf16.vlgmr.msra.gmra.mrb[28].mxu1 %v1397_v34  ;;  %5243 = vmatmul.mubr.bf16.vlgmr.msra.gmra.mrb[24].mxu0 %v1397_v34  ;;  %v6180_v34 = vld [vmem:[%s8483_s3 + $0x94] ss:$12 sps:$4 sm:$0xff]  }
 0x589   :  { %1518 = vmatpush1.bf16.msra.mxu1 %v6967_v63  ;;  %5247 = vmatpush3.bf16.msra.mxu0 %v6628_v18  ;;  %v6991_v18 = vld [vmem:[%s8483_s3 + $0x34] ss:$12 sps:$4 sm:$0xff]  }
 0x58a   :  { %1519 = vmatprep.subr.bf16.mxu1 %v6974_v1  ;;  %5248 = vmatprep.subr.bf16.mxu0 %v6232_v38 }
 0x58b   :  { %1549 = vmatprep.mubr.bf16.mxu1 %v6234_v56  ;;  %5262 = vmatprep.mubr.msk.bf16.mxu0 %vm6233_vm0, %v6232_v38 }
 0x58d   :  { %1520 = vmatpush1.bf16.msra.mxu1 %v6984_v3  ;;  %5249 = vmatpush3.bf16.msra.mxu0 %v6639_v19  ;;  %v7005_v19 = vld [vmem:[%s8483_s3 + $0x4c] ss:$12 sps:$4 sm:$0xff]  }
 0x58e   :  { %1521 = vmatprep.subr.bf16.mxu1 %v6991_v18  ;;  %5250 = vmatprep.subr.bf16.mxu0 %v6232_v38 }
 0x591   :  { %1522 = vmatpush1.bf16.msra.mxu1 %v6998_v61  ;;  %5251 = vmatpush3.bf16.msra.mxu0 %v6651_v20 }
 0x592   :  { %1523 = vmatprep.subr.bf16.mxu1 %v7005_v19  ;;  %5252 = vmatprep.subr.bf16.mxu0 %v6232_v38 }
 0x595   :  { %1524 = vmatpush1.bf16.msra.mxu1 %v6539_v62  ;;  %5253 = vmatpush3.bf16.msra.mxu0 %v6660_v21 }
 0x596   :  { %1525 = vmatprep.subr.bf16.mxu1 %v6548_v0  ;;  %5254 = vmatprep.subr.bf16.mxu0 %v6232_v38 }
 0x599   :  { %1526 = vmatpush1.bf16.msra.mxu1 %v6556_v2  ;;  %5255 = vmatpush3.bf16.msra.mxu0 %v6669_v22 }
 0x59a   :  { %1527 = vmatprep.subr.bf16.mxu1 %v6566_v4  ;;  %5256 = vmatprep.subr.bf16.mxu0 %v6232_v38 }
 0x59d   :  { %1528 = vmatpush1.bf16.msra.mxu1 %v6574_v6  ;;  %5257 = vmatpush3.bf16.msra.mxu0 %v6678_v23 }
 0x59e   :  { %1529 = vmatprep.subr.bf16.mxu1 %v6584_v8  ;;  %5258 = vmatprep.subr.bf16.mxu0 %v6232_v38 }
 0x5a1   :  { %1530 = vmatpush1.bf16.msra.mxu1 %v6593_v10  ;;  %5259 = vmatpush3.bf16.msra.mxu0 %v6687_v24 }
 0x5a2   :  { %1531 = vmatprep.subr.bf16.mxu1 %v6607_v13  ;;  %5260 = vmatprep.subr.bf16.mxu0 %v6232_v38 }
 0x5a5   :  { %1532 = vmatpush1.bf16.msra.mxu1 %v6615_v15  ;;  %5261 = vmatpush3.bf16.msra.mxu0 %v6696_v25 }
 0x5a6   :  { %1636 = vmatprep.subr.bf16.mxu1 %v6948_v49  ;;  %5266 = vmatprep.subr.bf16.mxu0 %v6232_v38 }
 0x65b   :  { %v1432_v62 = vpop.f32.mrb[28].mxu1  ;;  %v1473_v0 = vpop.f32.mrb[24].mxu0 }
 0x65c   :  { %v1433_v2 = vadd.f32 %v1432_v62, %v6740_v52  ;;  %v1434_v4 = vpop.f32.mrb[29].mxu1  ;;  %v5244_v6 = vpop.f32.mrb[25].mxu0  ;;  %v1474_v48 = vadd.f32 %v1473_v0, %v6761_v37 }
 0x65d   :  { %v1435_v8 = vadd.f32 %v1434_v4, %v6749_v5  ;;  %v1436_v10 = vpop.f32.mrb[30].mxu1  ;;  %v1476_v13 = vpop.f32.mrb[26].mxu0 }
 0x65e   :  { %v1480_v20 = vrot.slane %v1433_v2, 6  ;;  %v1437_v7 = vpop.f32.mrb[31].mxu1  ;;  %v5245_v51 = vpop.f32.mrb[27].mxu0  ;;  %v1500_v14 = vrot.slane %v1474_v48, 6 }
 0x65f   :  { %v1490_v15 = vrot.slane %v1435_v8, 6 }
 0x660   :  { %v1482_v53 = vadd.f32 %v6751_v11, %v1480_v20 }
 0x661   :  { %v1492_v49 = vadd.f32 %v6754_v26, %v1490_v15 }
 0x662   :  { %v4704_v55 = vmul.f32 -1.442695, %v1482_v53 }
 0x663   :  { %v4705_v58 = vmul.f32 -1.442695, %v1492_v49 }
 0x664   :  { %5975 = vpow2.f32 %v4704_v55 }
 0x665   :  { %5977 = vpow2.f32 %v4705_v58 }
 0x66e   :  { %v5976_v60 = vpop.eup %5975 }
 0x66f   :  { %v5978_v41 = vpop.eup %5977  ;;  %v1486_v50 = vadd.f32 1.0, %v5976_v60 }
 0x670   :  { %v1496_v9 = vadd.f32 1.0, %v5978_v41 }
 0x671   :  { %5979 = vrcp.f32 %v1486_v50 }
 0x672   :  { %5981 = vrcp.f32 %v1496_v9 }
 0x67b   :  { %v5980_v16 = vpop.eup %5979 }
 0x67c   :  { %v5982_v30 = vpop.eup %5981  ;;  %v1502_v32 = vmul.f32 %v5980_v16, %v1500_v14 }
 0x67d   :  { %v1510_v46 = vmul.f32 %v5982_v30, %v1508_v27  ;;  %v1505_v33 = vsub.f32 1.0, %v5982_v30 }
 0x67e   :  { %v1503_v29 = vadd.f32 %v1502_v32, %v6731_v44 }
 0x680   :  { %5983 = vtanh.f32 %v1503_v29  ;;  %v5791_v29 = vld [vmem:[%s8487_s6 + $0x4] ss:$12 sps:$4 sm:$0xff]  }
 0x68a   :  { %v5984_v17 = vpop.eup %5983 }
 0x68b   :  { %v1506_v35 = vmul.f32 %v5984_v17, %v1505_v33  ;;  %v5789_v33 = vld [vmem:[%s8487_s6] ss:$12 sps:$4 sm:$0xff]   ;;  %v5792_v17 = vld [vmem:[%s8487_s6 + $0x8] ss:$12 sps:$4 sm:$0xff]  }
 0x68d   :  { %v7036_v12 = vadd.f32 %v1510_v46, %v1506_v35  ;;  %v5795_v35 = vld [vmem:[%s8487_s6 + $0x1c] ss:$12 sps:$4 sm:$0xff]  }
 0x68f   :  { %1512 = vst [vmem:[#allocation2 + $0x8] sm:$0xc] %v7036_v12  ;;  %v1513_v39 = vpack.c.bf16 %v7036_v12, %v7036_v12  ;;  %v1627_v60 = vrot.slane %v7036_v12, 6  ;;  %v5793_v12 = vld [vmem:[%s8487_s6 + $0x18] ss:$12 sps:$4 sm:$0xff]  }
 0x691   :  { %v1515_v40 = vrot.slane %v1513_v39, 1  ;;  %v5796_v39 = vld [vmem:[%s8487_s6 + $0x20] ss:$12 sps:$4 sm:$0xff]  }
 0x693   :  { %1550 = vmatmul.mubr.bf16.vlgmr.msra.gmra.mrb[32].mxu1 %v1515_v40  ;;  %5263 = vmatmul.mubr.bf16.vlgmr.msra.gmra.mrb[28].mxu0 %v1515_v40  ;;  %v5799_v40 = vld [vmem:[%s8487_s6 + $0x34] ss:$12 sps:$4 sm:$0xff]  }
 0x694   :  { %1637 = vmatpush1.bf16.msra.mxu1 %v6967_v63  ;;  %5267 = vmatpush3.bf16.msra.mxu0 %v6172_v42  ;;  %v6182_v63 = vld [vmem:[%s8483_s3 + $0xac] ss:$12 sps:$4 sm:$0xff]   ;;  %v5797_v42 = vld [vmem:[%s8487_s6 + $0x30] ss:$12 sps:$4 sm:$0xff]  }
 0x695   :  { %1638 = vmatprep.subr.bf16.mxu1 %v6974_v1  ;;  %5268 = vmatprep.subr.bf16.mxu0 %v6232_v38 }
 0x696   :  { %1668 = vmatprep.mubr.bf16.mxu1 %v6234_v56  ;;  %5282 = vmatprep.mubr.msk.bf16.mxu0 %vm6233_vm0, %v6232_v38 }
 0x698   :  { %1639 = vmatpush1.bf16.msra.mxu1 %v6984_v3  ;;  %5269 = vmatpush3.bf16.msra.mxu0 %v6173_v43  ;;  %v5800_v43 = vld [vmem:[%s8487_s6 + $0x38] ss:$12 sps:$4 sm:$0xff]  }
 0x699   :  { %1640 = vmatprep.subr.bf16.mxu1 %v6991_v18  ;;  %5270 = vmatprep.subr.bf16.mxu0 %v6232_v38 }
 0x69c   :  { %1641 = vmatpush1.bf16.msra.mxu1 %v6998_v61  ;;  %5271 = vmatpush3.bf16.msra.mxu0 %v6174_v45  ;;  %v5803_v45 = vld [vmem:[%s8487_s6 + $0x4c] ss:$12 sps:$4 sm:$0xff]  }
 0x69d   :  { %1642 = vmatprep.subr.bf16.mxu1 %v7005_v19  ;;  %5272 = vmatprep.subr.bf16.mxu0 %v6232_v38 }
 0x6a0   :  { %1643 = vmatpush1.bf16.msra.mxu1 %v6175_v36  ;;  %5273 = vmatpush3.bf16.msra.mxu0 %v6660_v21  ;;  %v6179_v21 = vld [vmem:[%s8483_s3 + $0x78] ss:$12 sps:$4 sm:$0xff]   ;;  %v5801_v36 = vld [vmem:[%s8487_s6 + $0x48] ss:$12 sps:$4 sm:$0xff]  }
 0x6a1   :  { %1644 = vmatprep.subr.bf16.mxu1 %v6176_v59  ;;  %5274 = vmatprep.subr.bf16.mxu0 %v6232_v38  ;;  %v5804_v59 = vld [vmem:[%s8487_s6 + $0x50] ss:$12 sps:$4 sm:$0xff]  }
 0x6a4   :  { %1645 = vmatpush1.bf16.msra.mxu1 %v6177_v57  ;;  %5275 = vmatpush3.bf16.msra.mxu0 %v6669_v22  ;;  %v6181_v22 = vld [vmem:[%s8483_s3 + $0x90] ss:$12 sps:$4 sm:$0xff]  }
 0x6a5   :  { %1646 = vmatprep.subr.bf16.mxu1 %v6178_v31  ;;  %5276 = vmatprep.subr.bf16.mxu0 %v6232_v38  ;;  %v5807_v57 = vld [vmem:[%s8487_s6 + $0x64] ss:$12 sps:$4 sm:$0xff]   ;;  %v5805_v31 = vld [vmem:[%s8487_s6 + $0x60] ss:$12 sps:$4 sm:$0xff]  }
 0x6a8   :  { %1647 = vmatpush1.bf16.msra.mxu1 %v6179_v21  ;;  %5277 = vmatpush3.bf16.msra.mxu0 %v6678_v23  ;;  %v6183_v23 = vld [vmem:[%s8483_s3 + $0xa8] ss:$12 sps:$4 sm:$0xff]  }
 0x6a9   :  { %1648 = vmatprep.subr.bf16.mxu1 %v6180_v34  ;;  %5278 = vmatprep.subr.bf16.mxu0 %v6232_v38  ;;  %v5808_v21 = vld [vmem:[%s8487_s6 + $0x68] ss:$12 sps:$4 sm:$0xff]  }
 0x6aa   :  { %v5811_v34 = vld [vmem:[%s8487_s6 + $0x7c] ss:$12 sps:$4 sm:$0xff]  }
 0x6ac   :  { %1649 = vmatpush1.bf16.msra.mxu1 %v6181_v22  ;;  %5279 = vmatpush3.bf16.msra.mxu0 %v6687_v24  ;;  %v5809_v22 = vld [vmem:[%s8487_s6 + $0x78] ss:$12 sps:$4 sm:$0xff]  }
 0x6ad   :  { %1650 = vmatprep.subr.bf16.mxu1 %v6182_v63  ;;  %5280 = vmatprep.subr.bf16.mxu0 %v6232_v38  ;;  %v5812_v63 = vld [vmem:[%s8487_s6 + $0x80] ss:$12 sps:$4 sm:$0xff]  }
 0x6b0   :  { %1651 = vmatpush1.bf16.msra.mxu1 %v6183_v23  ;;  %5281 = vmatpush3.bf16.msra.mxu0 %v6696_v25  ;;  %v5813_v23 = vld [vmem:[%s8487_s6 + $0x90] ss:$12 sps:$4 sm:$0xff]  }
 0x6b1   :  { %5286 = vmatprep.subr.bf16.mxu0 %v6232_v38  ;;  %1932 = vmatprep.subr.bf16.mxu1 %v5791_v29 }
 0x766   :  { %v1551_v1 = vpop.f32.mrb[32].mxu1  ;;  %v1592_v3 = vpop.f32.mrb[28].mxu0 }
 0x767   :  { %v1552_v24 = vadd.f32 %v1551_v1, %v6740_v52  ;;  %v1553_v18 = vpop.f32.mrb[33].mxu1  ;;  %v5264_v61 = vpop.f32.mrb[29].mxu0  ;;  %v1593_v49 = vadd.f32 %v1592_v3, %v6761_v37  ;;  %v5815_v1 = vld [vmem:[%s8487_s6 + $0x94] ss:$12 sps:$4 sm:$0xff]   ;;  %v5816_v3 = vld [vmem:[%s8487_s6 + $0x98] ss:$12 sps:$4 sm:$0xff]  }
 0x768   :  { %v1554_v19 = vadd.f32 %v1553_v18, %v6749_v5  ;;  %v1555_v62 = vpop.f32.mrb[34].mxu1  ;;  %v1595_v0 = vpop.f32.mrb[30].mxu0  ;;  %v5819_v18 = vld [vmem:[%s8487_s6 + $0xac] ss:$12 sps:$4 sm:$0xff]   ;;  %v5820_v61 = vld [vmem:[%s8487_s6 + $0xb0] ss:$12 sps:$4 sm:$0xff]  }
 0x769   :  { %v1599_v2 = vrot.slane %v1552_v24, 4  ;;  %v1556_v4 = vpop.f32.mrb[35].mxu1  ;;  %v5265_v6 = vpop.f32.mrb[31].mxu0  ;;  %v1619_v55 = vrot.slane %v1593_v49, 4  ;;  %v5817_v24 = vld [vmem:[%s8487_s6 + $0xa8] ss:$12 sps:$4 sm:$0xff]  }
 0x76a   :  { %v1609_v8 = vrot.slane %v1554_v19, 4  ;;  %v7195_v19 = vld [vmem:[%s8488_s7 + $0x4] ss:$12 sps:$4 sm:$0xff]  }
 0x76b   :  { %v1601_v10 = vadd.f32 %v6751_v11, %v1599_v2 }
 0x76c   :  { %v1611_v25 = vadd.f32 %v6754_v26, %v1609_v8 }
 0x76d   :  { %v4706_v13 = vmul.f32 -1.442695, %v1601_v10 }
 0x76e   :  { %v4707_v20 = vmul.f32 -1.442695, %v1611_v25 }
 0x76f   :  { %5985 = vpow2.f32 %v4706_v13 }
 0x770   :  { %5987 = vpow2.f32 %v4707_v20 }
 0x779   :  { %v5986_v7 = vpop.eup %5985 }
 0x77a   :  { %v5988_v51 = vpop.eup %5987  ;;  %v1605_v15 = vadd.f32 1.0, %v5986_v7 }
 0x77b   :  { %v1615_v53 = vadd.f32 1.0, %v5988_v51 }
 0x77c   :  { %5989 = vrcp.f32 %v1605_v15 }
 0x77d   :  { %5991 = vrcp.f32 %v1615_v53 }
 0x786   :  { %v5990_v58 = vpop.eup %5989 }
 0x787   :  { %v5992_v41 = vpop.eup %5991  ;;  %v1621_v50 = vmul.f32 %v5990_v58, %v1619_v55 }
 0x788   :  { %v1629_v9 = vmul.f32 %v5992_v41, %v1627_v60  ;;  %v1624_v14 = vsub.f32 1.0, %v5992_v41 }
 0x789   :  { %v1622_v48 = vadd.f32 %v1621_v50, %v6731_v44 }
 0x78b   :  { %5993 = vtanh.f32 %v1622_v48 }
 0x795   :  { %v5994_v16 = vpop.eup %5993 }
 0x796   :  { %v1625_v27 = vmul.f32 %v5994_v16, %v1624_v14 }
 0x798   :  { %v7106_v30 = vadd.f32 %v1629_v9, %v1625_v27 }
 0x79a   :  { %1631 = vst [vmem:[#allocation2 + $0x8] sm:$0x30] %v7106_v30  ;;  %v1632_v32 = vpack.c.bf16 %v7106_v30, %v7106_v30  ;;  %v1746_v48 = vrot.slane %v7106_v30, 6  ;;  %v7213_v30 = vld [vmem:[%s8488_s7] ss:$12 sps:$4 sm:$0xff]  }
 0x79c   :  { %v1634_v46 = vrot.slane %v1632_v32, 2 }
 0x79e   :  { %1669 = vmatmul.mubr.bf16.vlgmr.msra.gmra.mrb[36].mxu1 %v1634_v46  ;;  %5283 = vmatmul.mubr.bf16.vlgmr.msra.gmra.mrb[32].mxu0 %v1634_v46 }
 0x79f   :  { %1964 = vmatprep.mubr.bf16.mxu1 %v6234_v56  ;;  %5302 = vmatprep.mubr.msk.bf16.mxu0 %vm6233_vm0, %v6232_v38 }
 0x7a0   :  { %1933 = vmatpush1.bf16.msra.mxu1 %v5789_v33  ;;  %5287 = vmatpush3.bf16.msra.mxu0 %v5792_v17 }
 0x7a1   :  { %5288 = vmatprep.subr.bf16.mxu0 %v6232_v38  ;;  %1934 = vmatprep.subr.bf16.mxu1 %v5795_v35  ;;  %v7223_v35 = vld [vmem:[%s8488_s7 + $0x1c] ss:$12 sps:$4 sm:$0xff]  }
 0x7a4   :  { %1935 = vmatpush1.bf16.msra.mxu1 %v5793_v12  ;;  %5289 = vmatpush3.bf16.msra.mxu0 %v5796_v39  ;;  %v7229_v12 = vld [vmem:[%s8488_s7 + $0x18] ss:$12 sps:$4 sm:$0xff]   ;;  %v7235_v39 = vld [vmem:[%s8488_s7 + $0x20] ss:$12 sps:$4 sm:$0xff]  }
 0x7a5   :  { %5290 = vmatprep.subr.bf16.mxu0 %v6232_v38  ;;  %1936 = vmatprep.subr.bf16.mxu1 %v5799_v40  ;;  %v7241_v40 = vld [vmem:[%s8488_s7 + $0x34] ss:$12 sps:$4 sm:$0xff]  }
 0x7a8   :  { %1937 = vmatpush1.bf16.msra.mxu1 %v5797_v42  ;;  %5291 = vmatpush3.bf16.msra.mxu0 %v5800_v43  ;;  %v7251_v42 = vld [vmem:[%s8488_s7 + $0x30] ss:$12 sps:$4 sm:$0xff]   ;;  %v7257_v43 = vld [vmem:[%s8488_s7 + $0x38] ss:$12 sps:$4 sm:$0xff]  }
 0x7a9   :  { %5292 = vmatprep.subr.bf16.mxu0 %v6232_v38  ;;  %1938 = vmatprep.subr.bf16.mxu1 %v5803_v45  ;;  %v7263_v45 = vld [vmem:[%s8488_s7 + $0x4c] ss:$12 sps:$4 sm:$0xff]  }
 0x7ac   :  { %1939 = vmatpush1.bf16.msra.mxu1 %v5801_v36  ;;  %5293 = vmatpush3.bf16.msra.mxu0 %v5804_v59  ;;  %v7270_v36 = vld [vmem:[%s8488_s7 + $0x48] ss:$12 sps:$4 sm:$0xff]   ;;  %v7276_v59 = vld [vmem:[%s8488_s7 + $0x50] ss:$12 sps:$4 sm:$0xff]  }
 0x7ad   :  { %5294 = vmatprep.subr.bf16.mxu0 %v6232_v38  ;;  %1940 = vmatprep.subr.bf16.mxu1 %v5807_v57  ;;  %v7282_v57 = vld [vmem:[%s8488_s7 + $0x64] ss:$12 sps:$4 sm:$0xff]  }
 0x7b0   :  { %1941 = vmatpush1.bf16.msra.mxu1 %v5805_v31  ;;  %5295 = vmatpush3.bf16.msra.mxu0 %v5808_v21  ;;  %v7289_v31 = vld [vmem:[%s8488_s7 + $0x60] ss:$12 sps:$4 sm:$0xff]   ;;  %v7295_v21 = vld [vmem:[%s8488_s7 + $0x68] ss:$12 sps:$4 sm:$0xff]  }
 0x7b1   :  { %5296 = vmatprep.subr.bf16.mxu0 %v6232_v38  ;;  %1942 = vmatprep.subr.bf16.mxu1 %v5811_v34  ;;  %v7301_v34 = vld [vmem:[%s8488_s7 + $0x7c] ss:$12 sps:$4 sm:$0xff]  }
 0x7b4   :  { %1943 = vmatpush1.bf16.msra.mxu1 %v5809_v22  ;;  %5297 = vmatpush3.bf16.msra.mxu0 %v5812_v63  ;;  %v7308_v22 = vld [vmem:[%s8488_s7 + $0x78] ss:$12 sps:$4 sm:$0xff]   ;;  %v7314_v63 = vld [vmem:[%s8488_s7 + $0x80] ss:$12 sps:$4 sm:$0xff]  }
 0x7b5   :  { %5298 = vmatprep.subr.bf16.mxu0 %v6232_v38  ;;  %1944 = vmatprep.subr.bf16.mxu1 %v5815_v1  ;;  %v7327_v1 = vld [vmem:[%s8488_s7 + $0x90] ss:$12 sps:$4 sm:$0xff]  }
 0x7b8   :  { %1945 = vmatpush1.bf16.msra.mxu1 %v5813_v23  ;;  %5299 = vmatpush3.bf16.msra.mxu0 %v5816_v3  ;;  %v7320_v23 = vld [vmem:[%s8488_s7 + $0x94] ss:$12 sps:$4 sm:$0xff]   ;;  %v7333_v3 = vld [vmem:[%s8488_s7 + $0x98] ss:$12 sps:$4 sm:$0xff]  }
 0x7b9   :  { %1946 = vmatprep.subr.bf16.mxu1 %v5819_v18  ;;  %5300 = vmatprep.subr.bf16.mxu0 %v6232_v38  ;;  %v7346_v18 = vld [vmem:[%s8488_s7 + $0xa8] ss:$12 sps:$4 sm:$0xff]  }
 0x7bc   :  { %1947 = vmatpush1.bf16.msra.mxu1 %v5817_v24  ;;  %5301 = vmatpush3.bf16.msra.mxu0 %v5820_v61  ;;  %v7339_v24 = vld [vmem:[%s8488_s7 + $0xac] ss:$12 sps:$4 sm:$0xff]   ;;  %v7351_v61 = vld [vmem:[%s8484_s1 + $0x2] sm:$0x3] }
 0x7bd   :  { %2195 = vmatprep.subr.bf16.mxu1 %v7195_v19  ;;  %5306 = vmatprep.subr.bf16.mxu0 %v6232_v38 }
 0x871   :  { %v1670_v62 = vpop.f32.mrb[36].mxu1  ;;  %v1711_v0 = vpop.f32.mrb[32].mxu0 }
 0x872   :  { %v1671_v2 = vadd.f32 %v1670_v62, %v6740_v52  ;;  %v1672_v4 = vpop.f32.mrb[37].mxu1  ;;  %v5284_v6 = vpop.f32.mrb[33].mxu0  ;;  %v7357_v62 = vld [vmem:[%s8488_s7 + $0xb0] ss:$12 sps:$4 sm:$0xff]  }
 0x873   :  { %v1673_v8 = vadd.f32 %v1672_v4, %v6749_v5  ;;  %v1674_v10 = vpop.f32.mrb[38].mxu1  ;;  %v1714_v25 = vpop.f32.mrb[34].mxu0  ;;  %v1712_v5 = vadd.f32 %v1711_v0, %v6761_v37  ;;  %v1752_v37 = vld [vmem:[#allocation2] sm:$0xff]  ;;  %v2050_v0 = vpack.c.bf16 %v7351_v61, %v7351_v61 }
 0x874   :  { %v1718_v13 = vrot.slane %v1671_v2, 2  ;;  %v1675_v20 = vpop.f32.mrb[39].mxu1  ;;  %v5285_v7 = vpop.f32.mrb[35].mxu0  ;;  %v1787_v2 = vld [vmem:[%s8490_s8] sm:$0x7] }
 0x875   :  { %v1728_v51 = vrot.slane %v1673_v8, 2  ;;  %v1738_v50 = vrot.slane %v1712_v5, 2  ;;  %v1792_v8 = vrot.slane %v1787_v2, %v6733_v47  ;;  %v1800_v10 = vrot.slane %v1787_v2, %v6723_v28 }
 0x876   :  { %v1720_v15 = vadd.f32 %v6751_v11, %v1718_v13  ;;  %v1796_v20 = vrot.slane %v1787_v2, %v6742_v54 }
 0x877   :  { %v1730_v53 = vadd.f32 %v6754_v26, %v1728_v51 }
 0x878   :  { %v4708_v49 = vmul.f32 -1.442695, %v1720_v15 }
 0x879   :  { %v4709_v55 = vmul.f32 -1.442695, %v1730_v53 }
 0x87a   :  { %5995 = vpow2.f32 %v4708_v49 }
 0x87b   :  { %5997 = vpow2.f32 %v4709_v55 }
 0x884   :  { %v5996_v58 = vpop.eup %5995 }
 0x885   :  { %v5998_v52 = vpop.eup %5997  ;;  %v1724_v60 = vadd.f32 1.0, %v5996_v58 }
 0x886   :  { %v1734_v41 = vadd.f32 1.0, %v5998_v52  ;;  %v2048_v52 = vld [vmem:[%s8491_s9] sm:$0x7] }
 0x887   :  { %5999 = vrcp.f32 %v1724_v60  ;;  %v7418_v60 = vrot.slane %v2048_v52, %v6733_v47 }
 0x888   :  { %6001 = vrcp.f32 %v1734_v41  ;;  %v7421_v41 = vrot.slane %v2048_v52, %v6742_v54 }
 0x891   :  { %v6000_v9 = vpop.eup %5999 }
 0x892   :  { %v6002_v14 = vpop.eup %6001  ;;  %v1740_v11 = vmul.f32 %v6000_v9, %v1738_v50 }
 0x893   :  { %v1748_v16 = vmul.f32 %v6002_v14, %v1746_v48  ;;  %v1743_v27 = vsub.f32 1.0, %v6002_v14 }
 0x894   :  { %v1741_v26 = vadd.f32 %v1740_v11, %v6731_v44  ;;  %v7218_v44 = vld [vmem:[%s8488_s7 + $0x8] ss:$12 sps:$4 sm:$0xff]  }
 0x896   :  { %6003 = vtanh.f32 %v1741_v26 }
 0x8a0   :  { %v6004_v32 = vpop.eup %6003 }
 0x8a1   :  { %v1744_v46 = vmul.f32 %v6004_v32, %v1743_v27 }
 0x8a3   :  { %v1749_v29 = vadd.f32 %v1748_v16, %v1744_v46 }
 0x8a5   :  { %1750 = vst [vmem:[#allocation2 + $0x8] sm:$0xc0] %v1749_v29  ;;  %1751 = vst [vmem:[%s8489_s17 - $0x6] sm:$0xc0] %v1749_v29 }
 0x8ac   :  { %v1753_v33 = vld [vmem:[#allocation2 + $0x8] sm:$0xff] }
 0x8ad   :  { %v1754_v17 = vpack.c.bf16 %v1753_v33, %v1752_v37 }
 0x8af   :  { %1965 = vmatmul.mubr.bf16.vlgmr.msra.gmra.mrb[40].mxu1 %v1754_v17  ;;  %5303 = vmatmul.mubr.bf16.vlgmr.msra.gmra.mrb[36].mxu0 %v1754_v17 }
 0x8b0   :  { %2196 = vmatpush1.bf16.msra.mxu1 %v7213_v30  ;;  %5307 = vmatpush3.bf16.msra.mxu0 %v7218_v44 }
 0x8b1   :  { %2197 = vmatprep.subr.bf16.mxu1 %v7223_v35  ;;  %5308 = vmatprep.subr.bf16.mxu0 %v6232_v38 }
 0x8b2   :  { %2227 = vmatprep.mubr.bf16.mxu1 %v6234_v56  ;;  %5322 = vmatprep.mubr.msk.bf16.mxu0 %vm6233_vm0, %v6232_v38 }
 0x8b4   :  { %2198 = vmatpush1.bf16.msra.mxu1 %v7229_v12  ;;  %5309 = vmatpush3.bf16.msra.mxu0 %v7235_v39 }
 0x8b5   :  { %2199 = vmatprep.subr.bf16.mxu1 %v7241_v40  ;;  %5310 = vmatprep.subr.bf16.mxu0 %v6232_v38 }
 0x8b8   :  { %2200 = vmatpush1.bf16.msra.mxu1 %v7251_v42  ;;  %5311 = vmatpush3.bf16.msra.mxu0 %v7257_v43 }
 0x8b9   :  { %2201 = vmatprep.subr.bf16.mxu1 %v7263_v45  ;;  %5312 = vmatprep.subr.bf16.mxu0 %v6232_v38 }
 0x8bc   :  { %2202 = vmatpush1.bf16.msra.mxu1 %v7270_v36  ;;  %5313 = vmatpush3.bf16.msra.mxu0 %v7276_v59 }
 0x8bd   :  { %2203 = vmatprep.subr.bf16.mxu1 %v7282_v57  ;;  %5314 = vmatprep.subr.bf16.mxu0 %v6232_v38 }
 0x8c0   :  { %2204 = vmatpush1.bf16.msra.mxu1 %v7289_v31  ;;  %5315 = vmatpush3.bf16.msra.mxu0 %v7295_v21 }
 0x8c1   :  { %2205 = vmatprep.subr.bf16.mxu1 %v7301_v34  ;;  %5316 = vmatprep.subr.bf16.mxu0 %v6232_v38 }
 0x8c4   :  { %2206 = vmatpush1.bf16.msra.mxu1 %v7308_v22  ;;  %5317 = vmatpush3.bf16.msra.mxu0 %v7314_v63 }
 0x8c5   :  { %2207 = vmatprep.subr.bf16.mxu1 %v7320_v23  ;;  %5318 = vmatprep.subr.bf16.mxu0 %v6232_v38 }
 0x8c8   :  { %2208 = vmatpush1.bf16.msra.mxu1 %v7327_v1  ;;  %5319 = vmatpush3.bf16.msra.mxu0 %v7333_v3 }
 0x8c9   :  { %2209 = vmatprep.subr.bf16.mxu1 %v7339_v24  ;;  %5320 = vmatprep.subr.bf16.mxu0 %v6232_v38 }
 0x8cc   :  { %2210 = vmatpush1.bf16.msra.mxu1 %v7346_v18  ;;  %5321 = vmatpush3.bf16.msra.mxu0 %v7357_v62 }
 0x8cd   :  { %2299 = vmatprep.subr.bf16.mxu1 %v7195_v19  ;;  %5326 = vmatprep.subr.bf16.mxu0 %v6232_v38 }
 0x8cf   :  { %2228 = vmatmul.mubr.bf16.vlgmr.msra.gmra.mrb[44].mxu1 %v2050_v0  ;;  %5323 = vmatmul.mubr.bf16.vlgmr.msra.gmra.mrb[40].mxu0 %v2050_v0 }
 0x8d0   :  { %2300 = vmatpush1.bf16.msra.mxu1 %v7213_v30  ;;  %5327 = vmatpush3.bf16.msra.mxu0 %v7218_v44 }
 0x8d1   :  { %2301 = vmatprep.subr.bf16.mxu1 %v7223_v35  ;;  %5328 = vmatprep.subr.bf16.mxu0 %v6232_v38 }
 0x8d2   :  { %2331 = vmatprep.mubr.bf16.mxu1 %v6234_v56  ;;  %5342 = vmatprep.mubr.msk.bf16.mxu0 %vm6233_vm0, %v6232_v38 }
 0x8d4   :  { %2302 = vmatpush1.bf16.msra.mxu1 %v7229_v12  ;;  %5329 = vmatpush3.bf16.msra.mxu0 %v7235_v39 }
 0x8d5   :  { %2303 = vmatprep.subr.bf16.mxu1 %v7241_v40  ;;  %5330 = vmatprep.subr.bf16.mxu0 %v6232_v38 }
 0x8d8   :  { %2304 = vmatpush1.bf16.msra.mxu1 %v7251_v42  ;;  %5331 = vmatpush3.bf16.msra.mxu0 %v7257_v43 }
 0x8d9   :  { %2305 = vmatprep.subr.bf16.mxu1 %v7263_v45  ;;  %5332 = vmatprep.subr.bf16.mxu0 %v6232_v38 }
 0x8dc   :  { %2306 = vmatpush1.bf16.msra.mxu1 %v7270_v36  ;;  %5333 = vmatpush3.bf16.msra.mxu0 %v7276_v59 }
 0x8dd   :  { %2307 = vmatprep.subr.bf16.mxu1 %v7282_v57  ;;  %5334 = vmatprep.subr.bf16.mxu0 %v6232_v38 }
 0x8e0   :  { %2308 = vmatpush1.bf16.msra.mxu1 %v7289_v31  ;;  %5335 = vmatpush3.bf16.msra.mxu0 %v7295_v21 }
 0x8e1   :  { %2309 = vmatprep.subr.bf16.mxu1 %v7301_v34  ;;  %5336 = vmatprep.subr.bf16.mxu0 %v6232_v38 }
 0x8e4   :  { %2310 = vmatpush1.bf16.msra.mxu1 %v7308_v22  ;;  %5337 = vmatpush3.bf16.msra.mxu0 %v7314_v63 }
 0x8e5   :  { %2311 = vmatprep.subr.bf16.mxu1 %v7320_v23  ;;  %5338 = vmatprep.subr.bf16.mxu0 %v6232_v38 }
 0x8e8   :  { %2312 = vmatpush1.bf16.msra.mxu1 %v7327_v1  ;;  %5339 = vmatpush3.bf16.msra.mxu0 %v7333_v3 }
 0x8e9   :  { %2313 = vmatprep.subr.bf16.mxu1 %v7339_v24  ;;  %5340 = vmatprep.subr.bf16.mxu0 %v6232_v38 }
 0x8ec   :  { %2314 = vmatpush1.bf16.msra.mxu1 %v7346_v18  ;;  %5341 = vmatpush3.bf16.msra.mxu0 %v7357_v62 }
 0x8ed   :  { %2418 = vmatprep.subr.bf16.mxu1 %v7195_v19  ;;  %5346 = vmatprep.subr.bf16.mxu0 %v6232_v38 }
 0x982   :  { %v1966_v4 = vpop.f32.mrb[40].mxu1  ;;  %v2009_v6 = vpop.f32.mrb[36].mxu0 }
 0x983   :  { %v1968_v25 = vpop.f32.mrb[41].mxu1  ;;  %v5304_v13 = vpop.f32.mrb[37].mxu0  ;;  %v7423_v9 = vadd.f32 %v1966_v4, %v1792_v8 }
 0x984   :  { %v1970_v7 = vpop.f32.mrb[42].mxu1  ;;  %v2012_v51 = vpop.f32.mrb[38].mxu0  ;;  %v7428_v37 = vadd.f32 %v1968_v25, %v1796_v20 }
 0x985   :  { %v7408_v15 = vadd.f32 %v1970_v7, %v1792_v8  ;;  %v7410_v53 = vadd.f32 %v2012_v51, %v1800_v10  ;;  %v1972_v49 = vpop.f32.mrb[43].mxu1  ;;  %v5305_v55 = vpop.f32.mrb[39].mxu0  ;;  %v7432_v8 = vrot.slane %v2048_v52, %v6723_v28 }
 0x986   :  { %v7412_v58 = vadd.f32 %v1972_v49, %v1796_v20  ;;  %v7435_v55 = vadd.f32 %v2009_v6, %v1800_v10 }
 0x9a2   :  { %v2229_v5 = vpop.f32.mrb[44].mxu1  ;;  %v2270_v50 = vpop.f32.mrb[40].mxu0 }
 0x9a3   :  { %v2230_v48 = vadd.f32 %v2229_v5, %v7418_v60  ;;  %v2231_v14 = vpop.f32.mrb[45].mxu1  ;;  %v5324_v11 = vpop.f32.mrb[41].mxu0  ;;  %v2271_v51 = vadd.f32 %v2270_v50, %v7432_v8 }
 0x9a4   :  { %v2232_v16 = vadd.f32 %v2231_v14, %v7421_v41  ;;  %v2233_v26 = vpop.f32.mrb[46].mxu1  ;;  %v2273_v27 = vpop.f32.mrb[42].mxu0 }
 0x9a5   :  { %v2276_v32 = vadd.f32 %v2230_v48, %v7423_v9  ;;  %v2234_v46 = vpop.f32.mrb[47].mxu1  ;;  %v5325_v29 = vpop.f32.mrb[43].mxu0 }
 0x9a6   :  { %v2283_v17 = vadd.f32 %v2232_v16, %v7428_v37 }
 0x9a7   :  { %v4758_v33 = vmul.f32 -1.442695, %v2276_v32 }
 0x9a8   :  { %v4759_v0 = vmul.f32 -1.442695, %v2283_v17 }
 0x9a9   :  { %6005 = vpow2.f32 %v4758_v33 }
 0x9aa   :  { %6007 = vpow2.f32 %v4759_v0 }
 0x9b3   :  { %v6006_v2 = vpop.eup %6005 }
 0x9b4   :  { %v2280_v4 = vadd.f32 1.0, %v6006_v2  ;;  %v6008_v13 = vpop.eup %6007 }
 0x9b5   :  { %v2287_v7 = vadd.f32 1.0, %v6008_v13 }
 0x9b6   :  { %6009 = vrcp.f32 %v2280_v4 }
 0x9b7   :  { %6011 = vrcp.f32 %v2287_v7 }
 0x9c0   :  { %v6010_v49 = vpop.eup %6009 }
 0x9c1   :  { %v2290_v25 = vmul.f32 %v6010_v49, %v2271_v51  ;;  %v6012_v5 = vpop.eup %6011 }
 0x9c2   :  { %v2293_v48 = vsub.f32 1.0, %v6012_v5  ;;  %v2295_v16 = vmul.f32 %v6012_v5, %v7351_v61 }
 0x9c3   :  { %v2291_v20 = vadd.f32 %v2290_v25, %v7435_v55 }
 0x9c5   :  { %6013 = vtanh.f32 %v2291_v20 }
 0x9cf   :  { %v6014_v14 = vpop.eup %6013 }
 0x9d0   :  { %v2294_v11 = vmul.f32 %v6014_v14, %v2293_v48 }
 0x9d2   :  { %v7439_v52 = vadd.f32 %v2295_v16, %v2294_v11 }
 0x9d4   :  { %2297 = vst [vmem:[#allocation3] sm:$0x3] %v7439_v52  ;;  %v2298_v50 = vpack.c.bf16 %v7439_v52, %v7439_v52  ;;  %v2409_v16 = vrot.slane %v7439_v52, 6 }
 0x9d6   :  { %2332 = vmatmul.mubr.bf16.vlgmr.msra.gmra.mrb[48].mxu1 %v2298_v50  ;;  %5343 = vmatmul.mubr.bf16.vlgmr.msra.gmra.mrb[44].mxu0 %v2298_v50 }
 0x9d7   :  { %2419 = vmatpush1.bf16.msra.mxu1 %v7213_v30  ;;  %5347 = vmatpush3.bf16.msra.mxu0 %v7218_v44 }
 0x9d8   :  { %2420 = vmatprep.subr.bf16.mxu1 %v7223_v35  ;;  %5348 = vmatprep.subr.bf16.mxu0 %v6232_v38 }
 0x9d9   :  { %2450 = vmatprep.mubr.bf16.mxu1 %v6234_v56  ;;  %5362 = vmatprep.mubr.msk.bf16.mxu0 %vm6233_vm0, %v6232_v38 }
 0x9db   :  { %2421 = vmatpush1.bf16.msra.mxu1 %v7229_v12  ;;  %5349 = vmatpush3.bf16.msra.mxu0 %v7235_v39 }
 0x9dc   :  { %2422 = vmatprep.subr.bf16.mxu1 %v7241_v40  ;;  %5350 = vmatprep.subr.bf16.mxu0 %v6232_v38 }
 0x9df   :  { %2423 = vmatpush1.bf16.msra.mxu1 %v7251_v42  ;;  %5351 = vmatpush3.bf16.msra.mxu0 %v7257_v43 }
 0x9e0   :  { %2424 = vmatprep.subr.bf16.mxu1 %v7263_v45  ;;  %5352 = vmatprep.subr.bf16.mxu0 %v6232_v38 }
 0x9e3   :  { %2425 = vmatpush1.bf16.msra.mxu1 %v7270_v36  ;;  %5353 = vmatpush3.bf16.msra.mxu0 %v7276_v59 }
 0x9e4   :  { %2426 = vmatprep.subr.bf16.mxu1 %v7282_v57  ;;  %5354 = vmatprep.subr.bf16.mxu0 %v6232_v38 }
 0x9e7   :  { %2427 = vmatpush1.bf16.msra.mxu1 %v7289_v31  ;;  %5355 = vmatpush3.bf16.msra.mxu0 %v7295_v21 }
 0x9e8   :  { %2428 = vmatprep.subr.bf16.mxu1 %v7301_v34  ;;  %5356 = vmatprep.subr.bf16.mxu0 %v6232_v38 }
 0x9eb   :  { %2429 = vmatpush1.bf16.msra.mxu1 %v7308_v22  ;;  %5357 = vmatpush3.bf16.msra.mxu0 %v7314_v63 }
 0x9ec   :  { %2430 = vmatprep.subr.bf16.mxu1 %v7320_v23  ;;  %5358 = vmatprep.subr.bf16.mxu0 %v6232_v38 }
 0x9ef   :  { %2431 = vmatpush1.bf16.msra.mxu1 %v7327_v1  ;;  %5359 = vmatpush3.bf16.msra.mxu0 %v7333_v3 }
 0x9f0   :  { %2432 = vmatprep.subr.bf16.mxu1 %v7339_v24  ;;  %5360 = vmatprep.subr.bf16.mxu0 %v6232_v38 }
 0x9f3   :  { %2433 = vmatpush1.bf16.msra.mxu1 %v7346_v18  ;;  %5361 = vmatpush3.bf16.msra.mxu0 %v7357_v62 }
 0x9f4   :  { %2537 = vmatprep.subr.bf16.mxu1 %v7195_v19  ;;  %5366 = vmatprep.subr.bf16.mxu0 %v6232_v38 }
 0xaa9   :  { %v2333_v61 = vpop.f32.mrb[48].mxu1  ;;  %v2374_v6 = vpop.f32.mrb[44].mxu0 }
 0xaaa   :  { %v2334_v10 = vadd.f32 %v2333_v61, %v7418_v60  ;;  %v2335_v26 = vpop.f32.mrb[49].mxu1  ;;  %v5344_v27 = vpop.f32.mrb[45].mxu0  ;;  %v2375_v48 = vadd.f32 %v2374_v6, %v7432_v8 }
 0xaab   :  { %v2336_v32 = vadd.f32 %v2335_v26, %v7421_v41  ;;  %v2337_v46 = vpop.f32.mrb[50].mxu1  ;;  %v2377_v29 = vpop.f32.mrb[46].mxu0 }
 0xaac   :  { %v2381_v33 = vrot.slane %v2334_v10, 6  ;;  %v2338_v17 = vpop.f32.mrb[51].mxu1  ;;  %v5345_v0 = vpop.f32.mrb[47].mxu0  ;;  %v2401_v14 = vrot.slane %v2375_v48, 6 }
 0xaad   :  { %v2391_v2 = vrot.slane %v2336_v32, 6 }
 0xaae   :  { %v2383_v4 = vadd.f32 %v2381_v33, %v7423_v9 }
 0xaaf   :  { %v2393_v13 = vadd.f32 %v2391_v2, %v7428_v37 }
 0xab0   :  { %v4760_v7 = vmul.f32 -1.442695, %v2383_v4 }
 0xab1   :  { %v4761_v51 = vmul.f32 -1.442695, %v2393_v13 }
 0xab2   :  { %6015 = vpow2.f32 %v4760_v7 }
 0xab3   :  { %6017 = vpow2.f32 %v4761_v51 }
 0xabc   :  { %v6016_v49 = vpop.eup %6015 }
 0xabd   :  { %v6018_v25 = vpop.eup %6017  ;;  %v2387_v20 = vadd.f32 1.0, %v6016_v49 }
 0xabe   :  { %v2397_v5 = vadd.f32 1.0, %v6018_v25 }
 0xabf   :  { %6019 = vrcp.f32 %v2387_v20 }
 0xac0   :  { %6021 = vrcp.f32 %v2397_v5 }
 0xac9   :  { %v6020_v11 = vpop.eup %6019 }
 0xaca   :  { %v6022_v50 = vpop.eup %6021  ;;  %v2403_v61 = vmul.f32 %v6020_v11, %v2401_v14 }
 0xacb   :  { %v2411_v10 = vmul.f32 %v6022_v50, %v2409_v16  ;;  %v2406_v27 = vsub.f32 1.0, %v6022_v50 }
 0xacc   :  { %v2404_v26 = vadd.f32 %v2403_v61, %v7435_v55 }
 0xace   :  { %6023 = vtanh.f32 %v2404_v26 }
 0xad8   :  { %v6024_v32 = vpop.eup %6023 }
 0xad9   :  { %v2407_v46 = vmul.f32 %v6024_v32, %v2406_v27 }
 0xadb   :  { %v7486_v29 = vadd.f32 %v2411_v10, %v2407_v46 }
 0xadd   :  { %2413 = vst [vmem:[#allocation3] sm:$0xc] %v7486_v29  ;;  %v2414_v6 = vpack.c.bf16 %v7486_v29, %v7486_v29 }
 0xadf   :  { %v2416_v33 = vrot.slane %v2414_v6, 1  ;;  %v2528_v6 = vrot.slane %v7486_v29, 6 }
 0xae1   :  { %2451 = vmatmul.mubr.bf16.vlgmr.msra.gmra.mrb[52].mxu1 %v2416_v33  ;;  %5363 = vmatmul.mubr.bf16.vlgmr.msra.gmra.mrb[48].mxu0 %v2416_v33 }
 0xae2   :  { %2538 = vmatpush1.bf16.msra.mxu1 %v7213_v30  ;;  %5367 = vmatpush3.bf16.msra.mxu0 %v7218_v44 }
 0xae3   :  { %2539 = vmatprep.subr.bf16.mxu1 %v7223_v35  ;;  %5368 = vmatprep.subr.bf16.mxu0 %v6232_v38 }
 0xae4   :  { %2569 = vmatprep.mubr.bf16.mxu1 %v6234_v56  ;;  %5382 = vmatprep.mubr.msk.bf16.mxu0 %vm6233_vm0, %v6232_v38 }
 0xae6   :  { %2540 = vmatpush1.bf16.msra.mxu1 %v7229_v12  ;;  %5369 = vmatpush3.bf16.msra.mxu0 %v7235_v39 }
 0xae7   :  { %2541 = vmatprep.subr.bf16.mxu1 %v7241_v40  ;;  %5370 = vmatprep.subr.bf16.mxu0 %v6232_v38 }
 0xaea   :  { %2542 = vmatpush1.bf16.msra.mxu1 %v7251_v42  ;;  %5371 = vmatpush3.bf16.msra.mxu0 %v7257_v43 }
 0xaeb   :  { %2543 = vmatprep.subr.bf16.mxu1 %v7263_v45  ;;  %5372 = vmatprep.subr.bf16.mxu0 %v6232_v38 }
 0xaee   :  { %2544 = vmatpush1.bf16.msra.mxu1 %v7270_v36  ;;  %5373 = vmatpush3.bf16.msra.mxu0 %v7276_v59 }
 0xaef   :  { %2545 = vmatprep.subr.bf16.mxu1 %v7282_v57  ;;  %5374 = vmatprep.subr.bf16.mxu0 %v6232_v38 }
 0xaf2   :  { %2546 = vmatpush1.bf16.msra.mxu1 %v7289_v31  ;;  %5375 = vmatpush3.bf16.msra.mxu0 %v7295_v21 }
 0xaf3   :  { %2547 = vmatprep.subr.bf16.mxu1 %v7301_v34  ;;  %5376 = vmatprep.subr.bf16.mxu0 %v6232_v38 }
 0xaf6   :  { %2548 = vmatpush1.bf16.msra.mxu1 %v7308_v22  ;;  %5377 = vmatpush3.bf16.msra.mxu0 %v7314_v63 }
 0xaf7   :  { %2549 = vmatprep.subr.bf16.mxu1 %v7320_v23  ;;  %5378 = vmatprep.subr.bf16.mxu0 %v6232_v38 }
 0xafa   :  { %2550 = vmatpush1.bf16.msra.mxu1 %v7327_v1  ;;  %5379 = vmatpush3.bf16.msra.mxu0 %v7333_v3 }
 0xafb   :  { %2551 = vmatprep.subr.bf16.mxu1 %v7339_v24  ;;  %5380 = vmatprep.subr.bf16.mxu0 %v6232_v38 }
 0xafe   :  { %2552 = vmatpush1.bf16.msra.mxu1 %v7346_v18  ;;  %5381 = vmatpush3.bf16.msra.mxu0 %v7357_v62 }
 0xaff   :  { %2656 = vmatprep.subr.bf16.mxu1 %v7195_v19  ;;  %5386 = vmatprep.subr.bf16.mxu0 %v6232_v38 }
 0xbb4   :  { %v2452_v52 = vpop.f32.mrb[52].mxu1  ;;  %v2493_v17 = vpop.f32.mrb[48].mxu0 }
 0xbb5   :  { %v2453_v0 = vadd.f32 %v2452_v52, %v7418_v60  ;;  %v2454_v2 = vpop.f32.mrb[53].mxu1  ;;  %v5364_v4 = vpop.f32.mrb[49].mxu0  ;;  %v2494_v27 = vadd.f32 %v2493_v17, %v7432_v8 }
 0xbb6   :  { %v2455_v13 = vadd.f32 %v2454_v2, %v7421_v41  ;;  %v2456_v7 = vpop.f32.mrb[54].mxu1  ;;  %v2496_v51 = vpop.f32.mrb[50].mxu0 }
 0xbb7   :  { %v2500_v49 = vrot.slane %v2453_v0, 4  ;;  %v2457_v25 = vpop.f32.mrb[55].mxu1  ;;  %v5365_v20 = vpop.f32.mrb[51].mxu0  ;;  %v2520_v32 = vrot.slane %v2494_v27, 4 }
 0xbb8   :  { %v2510_v5 = vrot.slane %v2455_v13, 4 }
 0xbb9   :  { %v2502_v48 = vadd.f32 %v2500_v49, %v7423_v9 }
 0xbba   :  { %v2512_v14 = vadd.f32 %v2510_v5, %v7428_v37 }
 0xbbb   :  { %v4762_v11 = vmul.f32 -1.442695, %v2502_v48 }
 0xbbc   :  { %v4763_v16 = vmul.f32 -1.442695, %v2512_v14 }
 0xbbd   :  { %6025 = vpow2.f32 %v4762_v11 }
 0xbbe   :  { %6027 = vpow2.f32 %v4763_v16 }
 0xbc7   :  { %v6026_v50 = vpop.eup %6025 }
 0xbc8   :  { %v6028_v61 = vpop.eup %6027  ;;  %v2506_v10 = vadd.f32 1.0, %v6026_v50 }
 0xbc9   :  { %v2516_v26 = vadd.f32 1.0, %v6028_v61 }
 0xbca   :  { %6029 = vrcp.f32 %v2506_v10 }
 0xbcb   :  { %6031 = vrcp.f32 %v2516_v26 }
 0xbd4   :  { %v6030_v46 = vpop.eup %6029 }
 0xbd5   :  { %v6032_v33 = vpop.eup %6031  ;;  %v2522_v52 = vmul.f32 %v6030_v46, %v2520_v32 }
 0xbd6   :  { %v2530_v0 = vmul.f32 %v6032_v33, %v2528_v6  ;;  %v2525_v4 = vsub.f32 1.0, %v6032_v33 }
 0xbd7   :  { %v2523_v2 = vadd.f32 %v2522_v52, %v7435_v55 }
 0xbd9   :  { %6033 = vtanh.f32 %v2523_v2 }
 0xbe3   :  { %v6034_v13 = vpop.eup %6033 }
 0xbe4   :  { %v2526_v7 = vmul.f32 %v6034_v13, %v2525_v4 }
 0xbe6   :  { %v7533_v51 = vadd.f32 %v2530_v0, %v2526_v7 }
 0xbe8   :  { %2532 = vst [vmem:[#allocation3] sm:$0x30] %v7533_v51  ;;  %v2533_v17 = vpack.c.bf16 %v7533_v51, %v7533_v51 }
 0xbea   :  { %v2535_v49 = vrot.slane %v2533_v17, 2  ;;  %v2647_v17 = vrot.slane %v7533_v51, 6 }
 0xbec   :  { %2570 = vmatmul.mubr.bf16.vlgmr.msra.gmra.mrb[56].mxu1 %v2535_v49  ;;  %5383 = vmatmul.mubr.bf16.vlgmr.msra.gmra.mrb[52].mxu0 %v2535_v49 }
 0xbed   :  { %2657 = vmatpush1.bf16.msra.mxu1 %v7213_v30  ;;  %5387 = vmatpush3.bf16.msra.mxu0 %v7218_v44 }
 0xbee   :  { %2658 = vmatprep.subr.bf16.mxu1 %v7223_v35  ;;  %5388 = vmatprep.subr.bf16.mxu0 %v6232_v38 }
 0xbef   :  { %2688 = vmatprep.mubr.bf16.mxu1 %v6234_v56  ;;  %5402 = vmatprep.mubr.msk.bf16.mxu0 %vm6233_vm0, %v6232_v38 }
 0xbf1   :  { %2659 = vmatpush1.bf16.msra.mxu1 %v7229_v12  ;;  %5389 = vmatpush3.bf16.msra.mxu0 %v7235_v39 }
 0xbf2   :  { %2660 = vmatprep.subr.bf16.mxu1 %v7241_v40  ;;  %5390 = vmatprep.subr.bf16.mxu0 %v6232_v38 }
 0xbf5   :  { %2661 = vmatpush1.bf16.msra.mxu1 %v7251_v42  ;;  %5391 = vmatpush3.bf16.msra.mxu0 %v7257_v43 }
 0xbf6   :  { %2662 = vmatprep.subr.bf16.mxu1 %v7263_v45  ;;  %5392 = vmatprep.subr.bf16.mxu0 %v6232_v38 }
 0xbf9   :  { %2663 = vmatpush1.bf16.msra.mxu1 %v7270_v36  ;;  %5393 = vmatpush3.bf16.msra.mxu0 %v7276_v59 }
 0xbfa   :  { %2664 = vmatprep.subr.bf16.mxu1 %v7282_v57  ;;  %5394 = vmatprep.subr.bf16.mxu0 %v6232_v38 }
 0xbfd   :  { %2665 = vmatpush1.bf16.msra.mxu1 %v7289_v31  ;;  %5395 = vmatpush3.bf16.msra.mxu0 %v7295_v21 }
 0xbfe   :  { %2666 = vmatprep.subr.bf16.mxu1 %v7301_v34  ;;  %5396 = vmatprep.subr.bf16.mxu0 %v6232_v38 }
 0xc01   :  { %2667 = vmatpush1.bf16.msra.mxu1 %v7308_v22  ;;  %5397 = vmatpush3.bf16.msra.mxu0 %v7314_v63 }
 0xc02   :  { %2668 = vmatprep.subr.bf16.mxu1 %v7320_v23  ;;  %5398 = vmatprep.subr.bf16.mxu0 %v6232_v38 }
 0xc05   :  { %2669 = vmatpush1.bf16.msra.mxu1 %v7327_v1  ;;  %5399 = vmatpush3.bf16.msra.mxu0 %v7333_v3 }
 0xc06   :  { %2670 = vmatprep.subr.bf16.mxu1 %v7339_v24  ;;  %5400 = vmatprep.subr.bf16.mxu0 %v6232_v38 }
 0xc09   :  { %2671 = vmatpush1.bf16.msra.mxu1 %v7346_v18  ;;  %5401 = vmatpush3.bf16.msra.mxu0 %v7357_v62 }
 0xc0a   :  { %2763 = vmatprep.subr.bf16.mxu1 %v7195_v19  ;;  %5406 = vmatprep.subr.bf16.mxu0 %v6232_v38 }
 0xcbf   :  { %v2571_v29 = vpop.f32.mrb[56].mxu1  ;;  %v2612_v25 = vpop.f32.mrb[52].mxu0 }
 0xcc0   :  { %v2572_v20 = vadd.f32 %v2571_v29, %v7418_v60  ;;  %v2573_v5 = vpop.f32.mrb[57].mxu1  ;;  %v5384_v48 = vpop.f32.mrb[53].mxu0  ;;  %v2613_v4 = vadd.f32 %v2612_v25, %v7432_v8 }
 0xcc1   :  { %v2574_v14 = vadd.f32 %v2573_v5, %v7421_v41  ;;  %v2575_v11 = vpop.f32.mrb[58].mxu1  ;;  %v2615_v16 = vpop.f32.mrb[54].mxu0 }
 0xcc2   :  { %v2619_v50 = vrot.slane %v2572_v20, 2  ;;  %v2576_v61 = vpop.f32.mrb[59].mxu1  ;;  %v5385_v10 = vpop.f32.mrb[55].mxu0  ;;  %v2639_v13 = vrot.slane %v2613_v4, 2 }
 0xcc3   :  { %v2629_v26 = vrot.slane %v2574_v14, 2 }
 0xcc4   :  { %v2621_v27 = vadd.f32 %v2619_v50, %v7423_v9 }
 0xcc5   :  { %v2631_v32 = vadd.f32 %v2629_v26, %v7428_v37 }
 0xcc6   :  { %v4764_v46 = vmul.f32 -1.442695, %v2621_v27 }
 0xcc7   :  { %v4765_v6 = vmul.f32 -1.442695, %v2631_v32 }
 0xcc8   :  { %6035 = vpow2.f32 %v4764_v46 }
 0xcc9   :  { %6037 = vpow2.f32 %v4765_v6 }
 0xcd2   :  { %v6036_v33 = vpop.eup %6035 }
 0xcd3   :  { %v6038_v52 = vpop.eup %6037  ;;  %v2625_v0 = vadd.f32 1.0, %v6036_v33 }
 0xcd4   :  { %v2635_v2 = vadd.f32 1.0, %v6038_v52 }
 0xcd5   :  { %6039 = vrcp.f32 %v2625_v0 }
 0xcd6   :  { %6041 = vrcp.f32 %v2635_v2 }
 0xcdf   :  { %v6040_v7 = vpop.eup %6039 }
 0xce0   :  { %v6042_v49 = vpop.eup %6041  ;;  %v2641_v9 = vmul.f32 %v6040_v7, %v2639_v13 }
 0xce1   :  { %v2649_v29 = vmul.f32 %v6042_v49, %v2647_v17  ;;  %v2644_v20 = vsub.f32 1.0, %v6042_v49 }
 0xce2   :  { %v2642_v37 = vadd.f32 %v2641_v9, %v7435_v55 }
 0xce4   :  { %6043 = vtanh.f32 %v2642_v37 }
 0xcee   :  { %v6044_v5 = vpop.eup %6043 }
 0xcef   :  { %v2645_v48 = vmul.f32 %v6044_v5, %v2644_v20 }
 0xcf1   :  { %v7580_v14 = vadd.f32 %v2649_v29, %v2645_v48 }
 0xcf3   :  { %2651 = vst [vmem:[#allocation3] sm:$0xc0] %v7580_v14  ;;  %v2652_v25 = vpack.c.bf16 %v7580_v14, %v7580_v14  ;;  %v2757_v49 = vrot.slane %v7580_v14, 6 }
 0xcf5   :  { %v2654_v11 = vrot.slane %v2652_v25, 3 }
 0xcf7   :  { %2689 = vmatmul.mubr.bf16.vlgmr.msra.gmra.mrb[60].mxu1 %v2654_v11  ;;  %5403 = vmatmul.mubr.bf16.vlgmr.msra.gmra.mrb[56].mxu0 %v2654_v11 }
 0xcf8   :  { %2764 = vmatpush1.bf16.msra.mxu1 %v7213_v30  ;;  %5407 = vmatpush3.bf16.msra.mxu0 %v7218_v44 }
 0xcf9   :  { %2765 = vmatprep.subr.bf16.mxu1 %v7223_v35  ;;  %5408 = vmatprep.subr.bf16.mxu0 %v6232_v38 }
 0xcfa   :  { %2795 = vmatprep.mubr.bf16.mxu1 %v6234_v56  ;;  %5422 = vmatprep.mubr.msk.bf16.mxu0 %vm6233_vm0, %v6232_v38 }
 0xcfc   :  { %2766 = vmatpush1.bf16.msra.mxu1 %v7229_v12  ;;  %5409 = vmatpush3.bf16.msra.mxu0 %v7235_v39 }
 0xcfd   :  { %2767 = vmatprep.subr.bf16.mxu1 %v7241_v40  ;;  %5410 = vmatprep.subr.bf16.mxu0 %v6232_v38 }
 0xd00   :  { %2768 = vmatpush1.bf16.msra.mxu1 %v7251_v42  ;;  %5411 = vmatpush3.bf16.msra.mxu0 %v7257_v43 }
 0xd01   :  { %2769 = vmatprep.subr.bf16.mxu1 %v7263_v45  ;;  %5412 = vmatprep.subr.bf16.mxu0 %v6232_v38 }
 0xd04   :  { %2770 = vmatpush1.bf16.msra.mxu1 %v7270_v36  ;;  %5413 = vmatpush3.bf16.msra.mxu0 %v7276_v59 }
 0xd05   :  { %2771 = vmatprep.subr.bf16.mxu1 %v7282_v57  ;;  %5414 = vmatprep.subr.bf16.mxu0 %v6232_v38 }
 0xd08   :  { %2772 = vmatpush1.bf16.msra.mxu1 %v7289_v31  ;;  %5415 = vmatpush3.bf16.msra.mxu0 %v7295_v21 }
 0xd09   :  { %2773 = vmatprep.subr.bf16.mxu1 %v7301_v34  ;;  %5416 = vmatprep.subr.bf16.mxu0 %v6232_v38 }
 0xd0c   :  { %2774 = vmatpush1.bf16.msra.mxu1 %v7308_v22  ;;  %5417 = vmatpush3.bf16.msra.mxu0 %v7314_v63 }
 0xd0d   :  { %2775 = vmatprep.subr.bf16.mxu1 %v7320_v23  ;;  %5418 = vmatprep.subr.bf16.mxu0 %v6232_v38 }
 0xd10   :  { %2776 = vmatpush1.bf16.msra.mxu1 %v7327_v1  ;;  %5419 = vmatpush3.bf16.msra.mxu0 %v7333_v3 }
 0xd11   :  { %2777 = vmatprep.subr.bf16.mxu1 %v7339_v24  ;;  %5420 = vmatprep.subr.bf16.mxu0 %v6232_v38 }
 0xd14   :  { %2778 = vmatpush1.bf16.msra.mxu1 %v7346_v18  ;;  %5421 = vmatpush3.bf16.msra.mxu0 %v7357_v62 }
 0xd15   :  { %2882 = vmatprep.subr.bf16.mxu1 %v7195_v19  ;;  %5426 = vmatprep.subr.bf16.mxu0 %v6232_v38 }
 0xdca   :  { %v2690_v55 = vpop.f32.mrb[60].mxu1  ;;  %v2731_v51 = vpop.f32.mrb[56].mxu0 }
 0xdcb   :  { %v2691_v16 = vadd.f32 %v2690_v55, %v7418_v60  ;;  %v2692_v50 = vpop.f32.mrb[61].mxu1  ;;  %v5404_v61 = vpop.f32.mrb[57].mxu0  ;;  %v2732_v7 = vadd.f32 %v2731_v51, %v7432_v8 }
 0xdcc   :  { %v2693_v10 = vadd.f32 %v2692_v50, %v7421_v41  ;;  %v2694_v26 = vpop.f32.mrb[62].mxu1  ;;  %v2734_v27 = vpop.f32.mrb[58].mxu0 }
 0xdcd   :  { %v2737_v32 = vadd.f32 %v2691_v16, %v7408_v15  ;;  %v2695_v46 = vpop.f32.mrb[63].mxu1  ;;  %v5405_v6 = vpop.f32.mrb[59].mxu0 }
 0xdce   :  { %v2744_v33 = vadd.f32 %v2693_v10, %v7412_v58 }
 0xdcf   :  { %v4766_v52 = vmul.f32 -1.442695, %v2737_v32 }
 0xdd0   :  { %v4767_v19 = vmul.f32 -1.442695, %v2744_v33 }
 0xdd1   :  { %6045 = vpow2.f32 %v4766_v52  ;;  %v6185_v52 = vld [vmem:[%s8488_s7] ss:$12 sps:$4 sm:$0xff]  }
 0xdd2   :  { %6047 = vpow2.f32 %v4767_v19  ;;  %v6186_v19 = vld [vmem:[%s8488_s7 + $0x8] ss:$12 sps:$4 sm:$0xff]  }
 0xddb   :  { %v6046_v0 = vpop.eup %6045 }
 0xddc   :  { %v6048_v2 = vpop.eup %6047  ;;  %v2741_v4 = vadd.f32 1.0, %v6046_v0  ;;  %v6187_v0 = vld [vmem:[%s8488_s7 + $0x1c] ss:$12 sps:$4 sm:$0xff]  }
 0xddd   :  { %v2748_v13 = vadd.f32 1.0, %v6048_v2  ;;  %v6188_v2 = vld [vmem:[%s8488_s7 + $0x18] ss:$12 sps:$4 sm:$0xff]  }
 0xdde   :  { %6049 = vrcp.f32 %v2741_v4  ;;  %v6189_v4 = vld [vmem:[%s8488_s7 + $0x20] ss:$12 sps:$4 sm:$0xff]  }
 0xddf   :  { %6051 = vrcp.f32 %v2748_v13  ;;  %v6190_v13 = vld [vmem:[%s8488_s7 + $0x34] ss:$12 sps:$4 sm:$0xff]  }
 0xde8   :  { %v6050_v17 = vpop.eup %6049 }
 0xde9   :  { %v6052_v9 = vpop.eup %6051  ;;  %v2751_v29 = vmul.f32 %v6050_v17, %v2732_v7  ;;  %v6191_v7 = vld [vmem:[%s8488_s7 + $0x30] ss:$12 sps:$4 sm:$0xff]   ;;  %v6192_v17 = vld [vmem:[%s8488_s7 + $0x38] ss:$12 sps:$4 sm:$0xff]  }
 0xdea   :  { %v2759_v37 = vmul.f32 %v6052_v9, %v2757_v49  ;;  %v2754_v5 = vsub.f32 1.0, %v6052_v9  ;;  %v6193_v49 = vld [vmem:[%s8488_s7 + $0x4c] ss:$12 sps:$4 sm:$0xff]   ;;  %v6194_v9 = vld [vmem:[%s8488_s7 + $0x48] ss:$12 sps:$4 sm:$0xff]  }
 0xdeb   :  { %v2752_v20 = vadd.f32 %v2751_v29, %v7410_v53  ;;  %v6195_v29 = vld [vmem:[%s8488_s7 + $0x50] ss:$12 sps:$4 sm:$0xff]  }
 0xded   :  { %6053 = vtanh.f32 %v2752_v20  ;;  %v6197_v20 = vld [vmem:[%s8488_s7 + $0x60] ss:$12 sps:$4 sm:$0xff]  }
 0xdf7   :  { %v6054_v48 = vpop.eup %6053 }
 0xdf8   :  { %v2755_v25 = vmul.f32 %v6054_v48, %v2754_v5  ;;  %v6198_v5 = vld [vmem:[%s8488_s7 + $0x68] ss:$12 sps:$4 sm:$0xff]  }
 0xdf9   :  { %v6199_v48 = vld [vmem:[%s8488_s7 + $0x7c] ss:$12 sps:$4 sm:$0xff]  }
 0xdfa   :  { %v7627_v11 = vadd.f32 %v2759_v37, %v2755_v25  ;;  %v6196_v37 = vld [vmem:[%s8488_s7 + $0x64] ss:$12 sps:$4 sm:$0xff]  }
 0xdfb   :  { %v6200_v25 = vld [vmem:[%s8488_s7 + $0x78] ss:$12 sps:$4 sm:$0xff]  }
 0xdfc   :  { %2761 = vst [vmem:[#allocation3 + $0x8] sm:$0x3] %v7627_v11  ;;  %v2762_v55 = vpack.c.bf16 %v7627_v11, %v7627_v11  ;;  %v2873_v51 = vrot.slane %v7627_v11, 6  ;;  %v6201_v11 = vld [vmem:[%s8488_s7 + $0x80] ss:$12 sps:$4 sm:$0xff]  }
 0xdfe   :  { %2796 = vmatmul.mubr.bf16.vlgmr.msra.gmra.mrb[64].mxu1 %v2762_v55  ;;  %5423 = vmatmul.mubr.bf16.vlgmr.msra.gmra.mrb[60].mxu0 %v2762_v55  ;;  %v6202_v55 = vld [vmem:[%s8488_s7 + $0x94] ss:$12 sps:$4 sm:$0xff]  }
 0xdff   :  { %2883 = vmatpush1.bf16.msra.mxu1 %v7213_v30  ;;  %5427 = vmatpush3.bf16.msra.mxu0 %v7218_v44  ;;  %v6184_v30 = vld [vmem:[%s8488_s7 + $0x4] ss:$12 sps:$4 sm:$0xff]  }
 0xe00   :  { %2884 = vmatprep.subr.bf16.mxu1 %v7223_v35  ;;  %5428 = vmatprep.subr.bf16.mxu0 %v6232_v38 }
 0xe01   :  { %2914 = vmatprep.mubr.bf16.mxu1 %v6234_v56  ;;  %5442 = vmatprep.mubr.msk.bf16.mxu0 %vm6233_vm0, %v6232_v38 }
 0xe03   :  { %2885 = vmatpush1.bf16.msra.mxu1 %v7229_v12  ;;  %5429 = vmatpush3.bf16.msra.mxu0 %v7235_v39 }
 0xe04   :  { %2886 = vmatprep.subr.bf16.mxu1 %v7241_v40  ;;  %5430 = vmatprep.subr.bf16.mxu0 %v6232_v38 }
 0xe07   :  { %2887 = vmatpush1.bf16.msra.mxu1 %v7251_v42  ;;  %5431 = vmatpush3.bf16.msra.mxu0 %v7257_v43 }
 0xe08   :  { %2888 = vmatprep.subr.bf16.mxu1 %v7263_v45  ;;  %5432 = vmatprep.subr.bf16.mxu0 %v6232_v38 }
 0xe0b   :  { %2889 = vmatpush1.bf16.msra.mxu1 %v7270_v36  ;;  %5433 = vmatpush3.bf16.msra.mxu0 %v7276_v59 }
 0xe0c   :  { %2890 = vmatprep.subr.bf16.mxu1 %v7282_v57  ;;  %5434 = vmatprep.subr.bf16.mxu0 %v6232_v38 }
 0xe0f   :  { %2891 = vmatpush1.bf16.msra.mxu1 %v7289_v31  ;;  %5435 = vmatpush3.bf16.msra.mxu0 %v7295_v21 }
 0xe10   :  { %2892 = vmatprep.subr.bf16.mxu1 %v7301_v34  ;;  %5436 = vmatprep.subr.bf16.mxu0 %v6232_v38 }
 0xe13   :  { %2893 = vmatpush1.bf16.msra.mxu1 %v7308_v22  ;;  %5437 = vmatpush3.bf16.msra.mxu0 %v7314_v63 }
 0xe14   :  { %2894 = vmatprep.subr.bf16.mxu1 %v7320_v23  ;;  %5438 = vmatprep.subr.bf16.mxu0 %v6232_v38 }
 0xe17   :  { %2895 = vmatpush1.bf16.msra.mxu1 %v7327_v1  ;;  %5439 = vmatpush3.bf16.msra.mxu0 %v7333_v3 }
 0xe18   :  { %2896 = vmatprep.subr.bf16.mxu1 %v7339_v24  ;;  %5440 = vmatprep.subr.bf16.mxu0 %v6232_v38 }
 0xe1b   :  { %2897 = vmatpush1.bf16.msra.mxu1 %v7346_v18  ;;  %5441 = vmatpush3.bf16.msra.mxu0 %v7357_v62 }
 0xe1c   :  { %3001 = vmatprep.subr.bf16.mxu1 %v6184_v30  ;;  %5446 = vmatprep.subr.bf16.mxu0 %v6232_v38  ;;  %v6203_v30 = vld [vmem:[%s8488_s7 + $0x90] ss:$12 sps:$4 sm:$0xff]  }
 0xed1   :  { %v2797_v44 = vpop.f32.mrb[64].mxu1  ;;  %v2838_v35 = vpop.f32.mrb[60].mxu0 }
 0xed2   :  { %v2798_v12 = vadd.f32 %v2797_v44, %v7418_v60  ;;  %v2799_v39 = vpop.f32.mrb[65].mxu1  ;;  %v5424_v40 = vpop.f32.mrb[61].mxu0  ;;  %v2839_v18 = vadd.f32 %v2838_v35, %v7432_v8  ;;  %v6204_v44 = vld [vmem:[%s8488_s7 + $0x98] ss:$12 sps:$4 sm:$0xff]  }
 0xed3   :  { %v2800_v42 = vadd.f32 %v2799_v39, %v7421_v41  ;;  %v2801_v43 = vpop.f32.mrb[66].mxu1  ;;  %v2841_v45 = vpop.f32.mrb[62].mxu0  ;;  %v6205_v35 = vld [vmem:[%s8488_s7 + $0xac] ss:$12 sps:$4 sm:$0xff]   ;;  %v6207_v39 = vld [vmem:[%s8488_s7 + $0xb0] ss:$12 sps:$4 sm:$0xff]  }
 0xed4   :  { %v2845_v36 = vrot.slane %v2798_v12, 6  ;;  %v2802_v59 = vpop.f32.mrb[67].mxu1  ;;  %v5425_v57 = vpop.f32.mrb[63].mxu0  ;;  %v2865_v62 = vrot.slane %v2839_v18, 6  ;;  %v6206_v12 = vld [vmem:[%s8488_s7 + $0xa8] ss:$12 sps:$4 sm:$0xff]  }
 0xed5   :  { %v2855_v31 = vrot.slane %v2800_v42, 6 }
 0xed6   :  { %v2847_v21 = vadd.f32 %v2845_v36, %v7408_v15 }
 0xed7   :  { %v2857_v34 = vadd.f32 %v2855_v31, %v7412_v58 }
 0xed8   :  { %v4768_v22 = vmul.f32 -1.442695, %v2847_v21 }
 0xed9   :  { %v4769_v63 = vmul.f32 -1.442695, %v2857_v34 }
 0xeda   :  { %6055 = vpow2.f32 %v4768_v22 }
 0xedb   :  { %6057 = vpow2.f32 %v4769_v63 }
 0xee4   :  { %v6056_v23 = vpop.eup %6055 }
 0xee5   :  { %v6058_v1 = vpop.eup %6057  ;;  %v2851_v3 = vadd.f32 1.0, %v6056_v23 }
 0xee6   :  { %v2861_v24 = vadd.f32 1.0, %v6058_v1 }
 0xee7   :  { %6059 = vrcp.f32 %v2851_v3 }
 0xee8   :  { %6061 = vrcp.f32 %v2861_v24 }
 0xef1   :  { %v6060_v14 = vpop.eup %6059 }
 0xef2   :  { %v6062_v16 = vpop.eup %6061  ;;  %v2867_v50 = vmul.f32 %v6060_v14, %v2865_v62 }
 0xef3   :  { %v2875_v61 = vmul.f32 %v6062_v16, %v2873_v51  ;;  %v2870_v26 = vsub.f32 1.0, %v6062_v16 }
 0xef4   :  { %v2868_v10 = vadd.f32 %v2867_v50, %v7410_v53 }
 0xef6   :  { %6063 = vtanh.f32 %v2868_v10 }
 0xf00   :  { %v6064_v27 = vpop.eup %6063 }
 0xf01   :  { %v2871_v32 = vmul.f32 %v6064_v27, %v2870_v26 }
 0xf03   :  { %v7676_v46 = vadd.f32 %v2875_v61, %v2871_v32 }
 0xf05   :  { %2877 = vst [vmem:[#allocation3 + $0x8] sm:$0xc] %v7676_v46  ;;  %v2878_v6 = vpack.c.bf16 %v7676_v46, %v7676_v46  ;;  %v2992_v10 = vrot.slane %v7676_v46, 6  ;;  %v5855_v46 = vld [vmem:[%s8492_s10 + $0x4] ss:$12 sps:$4 sm:$0xff]  }
 0xf07   :  { %v2880_v33 = vrot.slane %v2878_v6, 1 }
 0xf09   :  { %2915 = vmatmul.mubr.bf16.vlgmr.msra.gmra.mrb[68].mxu1 %v2880_v33  ;;  %5443 = vmatmul.mubr.bf16.vlgmr.msra.gmra.mrb[64].mxu0 %v2880_v33 }
 0xf0a   :  { %3002 = vmatpush1.bf16.msra.mxu1 %v6185_v52  ;;  %5447 = vmatpush3.bf16.msra.mxu0 %v6186_v19 }
 0xf0b   :  { %3003 = vmatprep.subr.bf16.mxu1 %v6187_v0  ;;  %5448 = vmatprep.subr.bf16.mxu0 %v6232_v38 }
 0xf0c   :  { %3033 = vmatprep.mubr.bf16.mxu1 %v6234_v56  ;;  %5462 = vmatprep.mubr.msk.bf16.mxu0 %vm6233_vm0, %v6232_v38 }
 0xf0e   :  { %3004 = vmatpush1.bf16.msra.mxu1 %v6188_v2  ;;  %5449 = vmatpush3.bf16.msra.mxu0 %v6189_v4 }
 0xf0f   :  { %3005 = vmatprep.subr.bf16.mxu1 %v6190_v13  ;;  %5450 = vmatprep.subr.bf16.mxu0 %v6232_v38  ;;  %v5853_v13 = vld [vmem:[%s8492_s10] ss:$12 sps:$4 sm:$0xff]  }
 0xf12   :  { %3006 = vmatpush1.bf16.msra.mxu1 %v6191_v7  ;;  %5451 = vmatpush3.bf16.msra.mxu0 %v6192_v17  ;;  %v5856_v7 = vld [vmem:[%s8492_s10 + $0x8] ss:$12 sps:$4 sm:$0xff]  }
 0xf13   :  { %3007 = vmatprep.subr.bf16.mxu1 %v6193_v49  ;;  %5452 = vmatprep.subr.bf16.mxu0 %v6232_v38  ;;  %v5859_v17 = vld [vmem:[%s8492_s10 + $0x1c] ss:$12 sps:$4 sm:$0xff]   ;;  %v5857_v49 = vld [vmem:[%s8492_s10 + $0x18] ss:$12 sps:$4 sm:$0xff]  }
 0xf16   :  { %3008 = vmatpush1.bf16.msra.mxu1 %v6194_v9  ;;  %5453 = vmatpush3.bf16.msra.mxu0 %v6195_v29  ;;  %v5860_v9 = vld [vmem:[%s8492_s10 + $0x20] ss:$12 sps:$4 sm:$0xff]  }
 0xf17   :  { %3009 = vmatprep.subr.bf16.mxu1 %v6196_v37  ;;  %5454 = vmatprep.subr.bf16.mxu0 %v6232_v38  ;;  %v5863_v29 = vld [vmem:[%s8492_s10 + $0x34] ss:$12 sps:$4 sm:$0xff]   ;;  %v5861_v37 = vld [vmem:[%s8492_s10 + $0x30] ss:$12 sps:$4 sm:$0xff]  }
 0xf1a   :  { %3010 = vmatpush1.bf16.msra.mxu1 %v6197_v20  ;;  %5455 = vmatpush3.bf16.msra.mxu0 %v6198_v5  ;;  %v5864_v20 = vld [vmem:[%s8492_s10 + $0x38] ss:$12 sps:$4 sm:$0xff]  }
 0xf1b   :  { %3011 = vmatprep.subr.bf16.mxu1 %v6199_v48  ;;  %5456 = vmatprep.subr.bf16.mxu0 %v6232_v38  ;;  %v5867_v5 = vld [vmem:[%s8492_s10 + $0x4c] ss:$12 sps:$4 sm:$0xff]   ;;  %v5865_v48 = vld [vmem:[%s8492_s10 + $0x48] ss:$12 sps:$4 sm:$0xff]  }
 0xf1e   :  { %3012 = vmatpush1.bf16.msra.mxu1 %v6200_v25  ;;  %5457 = vmatpush3.bf16.msra.mxu0 %v6201_v11  ;;  %v5868_v25 = vld [vmem:[%s8492_s10 + $0x50] ss:$12 sps:$4 sm:$0xff]  }
 0xf1f   :  { %3013 = vmatprep.subr.bf16.mxu1 %v6202_v55  ;;  %5458 = vmatprep.subr.bf16.mxu0 %v6232_v38  ;;  %v5871_v11 = vld [vmem:[%s8492_s10 + $0x64] ss:$12 sps:$4 sm:$0xff]   ;;  %v5869_v55 = vld [vmem:[%s8492_s10 + $0x60] ss:$12 sps:$4 sm:$0xff]  }
 0xf22   :  { %3014 = vmatpush1.bf16.msra.mxu1 %v6203_v30  ;;  %5459 = vmatpush3.bf16.msra.mxu0 %v6204_v44  ;;  %v5872_v30 = vld [vmem:[%s8492_s10 + $0x68] ss:$12 sps:$4 sm:$0xff]  }
 0xf23   :  { %3015 = vmatprep.subr.bf16.mxu1 %v6205_v35  ;;  %5460 = vmatprep.subr.bf16.mxu0 %v6232_v38  ;;  %v5875_v44 = vld [vmem:[%s8492_s10 + $0x7c] ss:$12 sps:$4 sm:$0xff]   ;;  %v5873_v35 = vld [vmem:[%s8492_s10 + $0x78] ss:$12 sps:$4 sm:$0xff]  }
 0xf26   :  { %3016 = vmatpush1.bf16.msra.mxu1 %v6206_v12  ;;  %5461 = vmatpush3.bf16.msra.mxu0 %v6207_v39  ;;  %v5876_v12 = vld [vmem:[%s8492_s10 + $0x80] ss:$12 sps:$4 sm:$0xff]  }
 0xf27   :  { %5466 = vmatprep.subr.bf16.mxu0 %v6232_v38  ;;  %3297 = vmatprep.subr.bf16.mxu1 %v5855_v46  ;;  %v5879_v39 = vld [vmem:[%s8492_s10 + $0x94] ss:$12 sps:$4 sm:$0xff]  }
 0xfdc   :  { %v2916_v40 = vpop.f32.mrb[68].mxu1  ;;  %v2957_v42 = vpop.f32.mrb[64].mxu0 }
 0xfdd   :  { %v2917_v43 = vadd.f32 %v2916_v40, %v7418_v60  ;;  %v2918_v45 = vpop.f32.mrb[69].mxu1  ;;  %v5444_v36 = vpop.f32.mrb[65].mxu0  ;;  %v2958_v16 = vadd.f32 %v2957_v42, %v7432_v8  ;;  %v5877_v40 = vld [vmem:[%s8492_s10 + $0x90] ss:$12 sps:$4 sm:$0xff]   ;;  %v5880_v42 = vld [vmem:[%s8492_s10 + $0x98] ss:$12 sps:$4 sm:$0xff]  }
 0xfde   :  { %v2919_v59 = vadd.f32 %v2918_v45, %v7421_v41  ;;  %v2920_v57 = vpop.f32.mrb[70].mxu1  ;;  %v2960_v31 = vpop.f32.mrb[66].mxu0  ;;  %v5883_v45 = vld [vmem:[%s8492_s10 + $0xac] ss:$12 sps:$4 sm:$0xff]   ;;  %v5884_v36 = vld [vmem:[%s8492_s10 + $0xb0] ss:$12 sps:$4 sm:$0xff]  }
 0xfdf   :  { %v2964_v21 = vrot.slane %v2917_v43, 4  ;;  %v2921_v34 = vpop.f32.mrb[71].mxu1  ;;  %v5445_v22 = vpop.f32.mrb[67].mxu0  ;;  %v2984_v50 = vrot.slane %v2958_v16, 4  ;;  %v5881_v43 = vld [vmem:[%s8492_s10 + $0xa8] ss:$12 sps:$4 sm:$0xff]  }
 0xfe0   :  { %v2974_v63 = vrot.slane %v2919_v59, 4  ;;  %v7857_v59 = vld [vmem:[%s8493_s11 + $0x4] ss:$12 sps:$4 sm:$0xff]  }
 0xfe1   :  { %v2966_v23 = vadd.f32 %v2964_v21, %v7408_v15 }
 0xfe2   :  { %v2976_v1 = vadd.f32 %v2974_v63, %v7412_v58 }
 0xfe3   :  { %v4770_v3 = vmul.f32 -1.442695, %v2966_v23 }
 0xfe4   :  { %v4771_v24 = vmul.f32 -1.442695, %v2976_v1 }
 0xfe5   :  { %6065 = vpow2.f32 %v4770_v3 }
 0xfe6   :  { %6067 = vpow2.f32 %v4771_v24 }
 0xfef   :  { %v6066_v18 = vpop.eup %6065 }
 0xff0   :  { %v6068_v62 = vpop.eup %6067  ;;  %v2970_v14 = vadd.f32 1.0, %v6066_v18 }
 0xff1   :  { %v2980_v51 = vadd.f32 1.0, %v6068_v62 }
 0xff2   :  { %6069 = vrcp.f32 %v2970_v14 }
 0xff3   :  { %6071 = vrcp.f32 %v2980_v51 }
 0xffc   :  { %v6070_v61 = vpop.eup %6069 }
 0xffd   :  { %v6072_v26 = vpop.eup %6071  ;;  %v2986_v27 = vmul.f32 %v6070_v61, %v2984_v50 }
 0xffe   :  { %v2994_v32 = vmul.f32 %v6072_v26, %v2992_v10  ;;  %v2989_v33 = vsub.f32 1.0, %v6072_v26 }
 0xfff   :  { %v2987_v6 = vadd.f32 %v2986_v27, %v7410_v53 }
0x1001   :  { %6073 = vtanh.f32 %v2987_v6 }
0x100b   :  { %v6074_v52 = vpop.eup %6073 }
0x100c   :  { %v2990_v19 = vmul.f32 %v6074_v52, %v2989_v33 }
0x100e   :  { %v7768_v0 = vadd.f32 %v2994_v32, %v2990_v19 }
0x1010   :  { %2996 = vst [vmem:[#allocation3 + $0x8] sm:$0x30] %v7768_v0  ;;  %v2997_v2 = vpack.c.bf16 %v7768_v0, %v7768_v0  ;;  %v3111_v6 = vrot.slane %v7768_v0, 6  ;;  %v7875_v0 = vld [vmem:[%s8493_s11] ss:$12 sps:$4 sm:$0xff]  }
0x1012   :  { %v2999_v4 = vrot.slane %v2997_v2, 2 }
0x1014   :  { %3034 = vmatmul.mubr.bf16.vlgmr.msra.gmra.mrb[72].mxu1 %v2999_v4  ;;  %5463 = vmatmul.mubr.bf16.vlgmr.msra.gmra.mrb[68].mxu0 %v2999_v4 }
0x1015   :  { %3329 = vmatprep.mubr.bf16.mxu1 %v6234_v56  ;;  %5482 = vmatprep.mubr.msk.bf16.mxu0 %vm6233_vm0, %v6232_v38 }
0x1016   :  { %3298 = vmatpush1.bf16.msra.mxu1 %v5853_v13  ;;  %5467 = vmatpush3.bf16.msra.mxu0 %v5856_v7 }
0x1017   :  { %5468 = vmatprep.subr.bf16.mxu0 %v6232_v38  ;;  %3299 = vmatprep.subr.bf16.mxu1 %v5859_v17  ;;  %v7885_v17 = vld [vmem:[%s8493_s11 + $0x1c] ss:$12 sps:$4 sm:$0xff]  }
0x101a   :  { %3300 = vmatpush1.bf16.msra.mxu1 %v5857_v49  ;;  %5469 = vmatpush3.bf16.msra.mxu0 %v5860_v9  ;;  %v7891_v49 = vld [vmem:[%s8493_s11 + $0x18] ss:$12 sps:$4 sm:$0xff]   ;;  %v7897_v9 = vld [vmem:[%s8493_s11 + $0x20] ss:$12 sps:$4 sm:$0xff]  }
0x101b   :  { %5470 = vmatprep.subr.bf16.mxu0 %v6232_v38  ;;  %3301 = vmatprep.subr.bf16.mxu1 %v5863_v29  ;;  %v7903_v29 = vld [vmem:[%s8493_s11 + $0x34] ss:$12 sps:$4 sm:$0xff]  }
0x101e   :  { %3302 = vmatpush1.bf16.msra.mxu1 %v5861_v37  ;;  %5471 = vmatpush3.bf16.msra.mxu0 %v5864_v20  ;;  %v7913_v37 = vld [vmem:[%s8493_s11 + $0x30] ss:$12 sps:$4 sm:$0xff]   ;;  %v7919_v20 = vld [vmem:[%s8493_s11 + $0x38] ss:$12 sps:$4 sm:$0xff]  }
0x101f   :  { %5472 = vmatprep.subr.bf16.mxu0 %v6232_v38  ;;  %3303 = vmatprep.subr.bf16.mxu1 %v5867_v5  ;;  %v7925_v5 = vld [vmem:[%s8493_s11 + $0x4c] ss:$12 sps:$4 sm:$0xff]  }
0x1022   :  { %3304 = vmatpush1.bf16.msra.mxu1 %v5865_v48  ;;  %5473 = vmatpush3.bf16.msra.mxu0 %v5868_v25  ;;  %v7932_v48 = vld [vmem:[%s8493_s11 + $0x48] ss:$12 sps:$4 sm:$0xff]   ;;  %v7938_v25 = vld [vmem:[%s8493_s11 + $0x50] ss:$12 sps:$4 sm:$0xff]  }
0x1023   :  { %5474 = vmatprep.subr.bf16.mxu0 %v6232_v38  ;;  %3305 = vmatprep.subr.bf16.mxu1 %v5871_v11  ;;  %v7944_v11 = vld [vmem:[%s8493_s11 + $0x64] ss:$12 sps:$4 sm:$0xff]  }
0x1026   :  { %3306 = vmatpush1.bf16.msra.mxu1 %v5869_v55  ;;  %5475 = vmatpush3.bf16.msra.mxu0 %v5872_v30  ;;  %v7951_v55 = vld [vmem:[%s8493_s11 + $0x60] ss:$12 sps:$4 sm:$0xff]   ;;  %v7957_v30 = vld [vmem:[%s8493_s11 + $0x68] ss:$12 sps:$4 sm:$0xff]  }
0x1027   :  { %5476 = vmatprep.subr.bf16.mxu0 %v6232_v38  ;;  %3307 = vmatprep.subr.bf16.mxu1 %v5875_v44  ;;  %v7963_v44 = vld [vmem:[%s8493_s11 + $0x7c] ss:$12 sps:$4 sm:$0xff]  }
0x102a   :  { %3308 = vmatpush1.bf16.msra.mxu1 %v5873_v35  ;;  %5477 = vmatpush3.bf16.msra.mxu0 %v5876_v12  ;;  %v7970_v35 = vld [vmem:[%s8493_s11 + $0x78] ss:$12 sps:$4 sm:$0xff]   ;;  %v7976_v12 = vld [vmem:[%s8493_s11 + $0x80] ss:$12 sps:$4 sm:$0xff]  }
0x102b   :  { %5478 = vmatprep.subr.bf16.mxu0 %v6232_v38  ;;  %3309 = vmatprep.subr.bf16.mxu1 %v5879_v39  ;;  %v7982_v39 = vld [vmem:[%s8493_s11 + $0x94] ss:$12 sps:$4 sm:$0xff]  }
0x102e   :  { %3310 = vmatpush1.bf16.msra.mxu1 %v5877_v40  ;;  %5479 = vmatpush3.bf16.msra.mxu0 %v5880_v42  ;;  %v7989_v40 = vld [vmem:[%s8493_s11 + $0x90] ss:$12 sps:$4 sm:$0xff]   ;;  %v7995_v42 = vld [vmem:[%s8493_s11 + $0x98] ss:$12 sps:$4 sm:$0xff]  }
0x102f   :  { %3311 = vmatprep.subr.bf16.mxu1 %v5883_v45  ;;  %5480 = vmatprep.subr.bf16.mxu0 %v6232_v38  ;;  %v8008_v45 = vld [vmem:[%s8493_s11 + $0xa8] ss:$12 sps:$4 sm:$0xff]  }
0x1032   :  { %3312 = vmatpush1.bf16.msra.mxu1 %v5881_v43  ;;  %5481 = vmatpush3.bf16.msra.mxu0 %v5884_v36  ;;  %v8001_v43 = vld [vmem:[%s8493_s11 + $0xac] ss:$12 sps:$4 sm:$0xff]   ;;  %v8013_v36 = vld [vmem:[%s8484_s1 + $0x4] sm:$0x3] }
0x1033   :  { %3560 = vmatprep.subr.bf16.mxu1 %v7857_v59  ;;  %5486 = vmatprep.subr.bf16.mxu0 %v6232_v38 }
0x10e7   :  { %v3035_v57 = vpop.f32.mrb[72].mxu1  ;;  %v3076_v31 = vpop.f32.mrb[68].mxu0 }
0x10e8   :  { %v3036_v21 = vadd.f32 %v3035_v57, %v7418_v60  ;;  %v3037_v34 = vpop.f32.mrb[73].mxu1  ;;  %v5464_v22 = vpop.f32.mrb[69].mxu0  ;;  %v8019_v57 = vld [vmem:[%s8493_s11 + $0xb0] ss:$12 sps:$4 sm:$0xff]  }
0x10e9   :  { %v3038_v63 = vadd.f32 %v3037_v34, %v7421_v41  ;;  %v3039_v23 = vpop.f32.mrb[74].mxu1  ;;  %v3079_v1 = vpop.f32.mrb[70].mxu0  ;;  %v3077_v41 = vadd.f32 %v3076_v31, %v7432_v8  ;;  %v3117_v8 = vld [vmem:[#allocation3] sm:$0xff]  ;;  %v3415_v31 = vpack.c.bf16 %v8013_v36, %v8013_v36 }
0x10ea   :  { %v3083_v3 = vrot.slane %v3036_v21, 2  ;;  %v3040_v24 = vpop.f32.mrb[75].mxu1  ;;  %v5465_v18 = vpop.f32.mrb[71].mxu0  ;;  %v3152_v21 = vld [vmem:[%s8494_s12] sm:$0x7] }
0x10eb   :  { %v3093_v62 = vrot.slane %v3038_v63, 2  ;;  %v3103_v27 = vrot.slane %v3077_v41, 2  ;;  %v3157_v63 = vrot.slane %v3152_v21, %v6733_v47  ;;  %v3165_v23 = vrot.slane %v3152_v21, %v6723_v28 }
0x10ec   :  { %v3085_v14 = vadd.f32 %v3083_v3, %v7408_v15  ;;  %v3161_v24 = vrot.slane %v3152_v21, %v6742_v54 }
0x10ed   :  { %v3095_v51 = vadd.f32 %v3093_v62, %v7412_v58 }
0x10ee   :  { %v4772_v16 = vmul.f32 -1.442695, %v3085_v14 }
0x10ef   :  { %v4773_v50 = vmul.f32 -1.442695, %v3095_v51 }
0x10f0   :  { %6075 = vpow2.f32 %v4772_v16 }
0x10f1   :  { %6077 = vpow2.f32 %v4773_v50 }
0x10fa   :  { %v6076_v61 = vpop.eup %6075 }
0x10fb   :  { %v6078_v60 = vpop.eup %6077  ;;  %v3089_v10 = vadd.f32 1.0, %v6076_v61 }
0x10fc   :  { %v3099_v26 = vadd.f32 1.0, %v6078_v60  ;;  %v3413_v60 = vld [vmem:[%s8495_s13] sm:$0x7] }
0x10fd   :  { %6079 = vrcp.f32 %v3089_v10  ;;  %v8080_v10 = vrot.slane %v3413_v60, %v6733_v47  ;;  %v8094_v21 = vrot.slane %v3413_v60, %v6723_v28 }
0x10fe   :  { %6081 = vrcp.f32 %v3099_v26  ;;  %v8083_v26 = vrot.slane %v3413_v60, %v6742_v54 }
0x1107   :  { %v6080_v32 = vpop.eup %6079 }
0x1108   :  { %v6082_v33 = vpop.eup %6081  ;;  %v3105_v15 = vmul.f32 %v6080_v32, %v3103_v27 }
0x1109   :  { %v3113_v52 = vmul.f32 %v6082_v33, %v3111_v6  ;;  %v3108_v19 = vsub.f32 1.0, %v6082_v33 }
0x110a   :  { %v3106_v58 = vadd.f32 %v3105_v15, %v7410_v53  ;;  %v7880_v53 = vld [vmem:[%s8493_s11 + $0x8] ss:$12 sps:$4 sm:$0xff]  }
0x110c   :  { %6083 = vtanh.f32 %v3106_v58 }
0x1116   :  { %v6084_v2 = vpop.eup %6083 }
0x1117   :  { %v3109_v4 = vmul.f32 %v6084_v2, %v3108_v19 }
0x1119   :  { %v3114_v46 = vadd.f32 %v3113_v52, %v3109_v4 }
0x111b   :  { %3115 = vst [vmem:[#allocation3 + $0x8] sm:$0xc0] %v3114_v46  ;;  %3116 = vst [vmem:[%s8489_s17 - $0x4] sm:$0xc0] %v3114_v46 }
0x1122   :  { %v3118_v13 = vld [vmem:[#allocation3 + $0x8] sm:$0xff] }
0x1123   :  { %v3119_v7 = vpack.c.bf16 %v3118_v13, %v3117_v8 }
0x1125   :  { %3330 = vmatmul.mubr.bf16.vlgmr.msra.gmra.mrb[76].mxu1 %v3119_v7  ;;  %5483 = vmatmul.mubr.bf16.vlgmr.msra.gmra.mrb[72].mxu0 %v3119_v7 }
0x1126   :  { %3561 = vmatpush1.bf16.msra.mxu1 %v7875_v0  ;;  %5487 = vmatpush3.bf16.msra.mxu0 %v7880_v53 }
0x1127   :  { %3562 = vmatprep.subr.bf16.mxu1 %v7885_v17  ;;  %5488 = vmatprep.subr.bf16.mxu0 %v6232_v38 }
0x1128   :  { %3592 = vmatprep.mubr.bf16.mxu1 %v6234_v56  ;;  %5502 = vmatprep.mubr.msk.bf16.mxu0 %vm6233_vm0, %v6232_v38 }
0x112a   :  { %3563 = vmatpush1.bf16.msra.mxu1 %v7891_v49  ;;  %5489 = vmatpush3.bf16.msra.mxu0 %v7897_v9 }
0x112b   :  { %3564 = vmatprep.subr.bf16.mxu1 %v7903_v29  ;;  %5490 = vmatprep.subr.bf16.mxu0 %v6232_v38 }
0x112e   :  { %3565 = vmatpush1.bf16.msra.mxu1 %v7913_v37  ;;  %5491 = vmatpush3.bf16.msra.mxu0 %v7919_v20 }
0x112f   :  { %3566 = vmatprep.subr.bf16.mxu1 %v7925_v5  ;;  %5492 = vmatprep.subr.bf16.mxu0 %v6232_v38 }
0x1132   :  { %3567 = vmatpush1.bf16.msra.mxu1 %v7932_v48  ;;  %5493 = vmatpush3.bf16.msra.mxu0 %v7938_v25 }
0x1133   :  { %3568 = vmatprep.subr.bf16.mxu1 %v7944_v11  ;;  %5494 = vmatprep.subr.bf16.mxu0 %v6232_v38 }
0x1136   :  { %3569 = vmatpush1.bf16.msra.mxu1 %v7951_v55  ;;  %5495 = vmatpush3.bf16.msra.mxu0 %v7957_v30 }
0x1137   :  { %3570 = vmatprep.subr.bf16.mxu1 %v7963_v44  ;;  %5496 = vmatprep.subr.bf16.mxu0 %v6232_v38 }
0x113a   :  { %3571 = vmatpush1.bf16.msra.mxu1 %v7970_v35  ;;  %5497 = vmatpush3.bf16.msra.mxu0 %v7976_v12 }
0x113b   :  { %3572 = vmatprep.subr.bf16.mxu1 %v7982_v39  ;;  %5498 = vmatprep.subr.bf16.mxu0 %v6232_v38 }
0x113e   :  { %3573 = vmatpush1.bf16.msra.mxu1 %v7989_v40  ;;  %5499 = vmatpush3.bf16.msra.mxu0 %v7995_v42 }
0x113f   :  { %3574 = vmatprep.subr.bf16.mxu1 %v8001_v43  ;;  %5500 = vmatprep.subr.bf16.mxu0 %v6232_v38 }
0x1142   :  { %3575 = vmatpush1.bf16.msra.mxu1 %v8008_v45  ;;  %5501 = vmatpush3.bf16.msra.mxu0 %v8019_v57 }
0x1143   :  { %3664 = vmatprep.subr.bf16.mxu1 %v7857_v59  ;;  %5506 = vmatprep.subr.bf16.mxu0 %v6232_v38 }
0x1145   :  { %3593 = vmatmul.mubr.bf16.vlgmr.msra.gmra.mrb[80].mxu1 %v3415_v31  ;;  %5503 = vmatmul.mubr.bf16.vlgmr.msra.gmra.mrb[76].mxu0 %v3415_v31 }
0x1146   :  { %3665 = vmatpush1.bf16.msra.mxu1 %v7875_v0  ;;  %5507 = vmatpush3.bf16.msra.mxu0 %v7880_v53 }
0x1147   :  { %3666 = vmatprep.subr.bf16.mxu1 %v7885_v17  ;;  %5508 = vmatprep.subr.bf16.mxu0 %v6232_v38 }
0x1148   :  { %3696 = vmatprep.mubr.bf16.mxu1 %v6234_v56  ;;  %5522 = vmatprep.mubr.msk.bf16.mxu0 %vm6233_vm0, %v6232_v38 }
0x114a   :  { %3667 = vmatpush1.bf16.msra.mxu1 %v7891_v49  ;;  %5509 = vmatpush3.bf16.msra.mxu0 %v7897_v9 }
0x114b   :  { %3668 = vmatprep.subr.bf16.mxu1 %v7903_v29  ;;  %5510 = vmatprep.subr.bf16.mxu0 %v6232_v38 }
0x114e   :  { %3669 = vmatpush1.bf16.msra.mxu1 %v7913_v37  ;;  %5511 = vmatpush3.bf16.msra.mxu0 %v7919_v20 }
0x114f   :  { %3670 = vmatprep.subr.bf16.mxu1 %v7925_v5  ;;  %5512 = vmatprep.subr.bf16.mxu0 %v6232_v38 }
0x1152   :  { %3671 = vmatpush1.bf16.msra.mxu1 %v7932_v48  ;;  %5513 = vmatpush3.bf16.msra.mxu0 %v7938_v25 }
0x1153   :  { %3672 = vmatprep.subr.bf16.mxu1 %v7944_v11  ;;  %5514 = vmatprep.subr.bf16.mxu0 %v6232_v38 }
0x1156   :  { %3673 = vmatpush1.bf16.msra.mxu1 %v7951_v55  ;;  %5515 = vmatpush3.bf16.msra.mxu0 %v7957_v30 }
0x1157   :  { %3674 = vmatprep.subr.bf16.mxu1 %v7963_v44  ;;  %5516 = vmatprep.subr.bf16.mxu0 %v6232_v38 }
0x115a   :  { %3675 = vmatpush1.bf16.msra.mxu1 %v7970_v35  ;;  %5517 = vmatpush3.bf16.msra.mxu0 %v7976_v12 }
0x115b   :  { %3676 = vmatprep.subr.bf16.mxu1 %v7982_v39  ;;  %5518 = vmatprep.subr.bf16.mxu0 %v6232_v38 }
0x115e   :  { %3677 = vmatpush1.bf16.msra.mxu1 %v7989_v40  ;;  %5519 = vmatpush3.bf16.msra.mxu0 %v7995_v42 }
0x115f   :  { %3678 = vmatprep.subr.bf16.mxu1 %v8001_v43  ;;  %5520 = vmatprep.subr.bf16.mxu0 %v6232_v38 }
0x1162   :  { %3679 = vmatpush1.bf16.msra.mxu1 %v8008_v45  ;;  %5521 = vmatpush3.bf16.msra.mxu0 %v8019_v57 }
0x1163   :  { %3783 = vmatprep.subr.bf16.mxu1 %v7857_v59  ;;  %5526 = vmatprep.subr.bf16.mxu0 %v6232_v38 }
0x11f8   :  { %v3331_v34 = vpop.f32.mrb[76].mxu1  ;;  %v3374_v22 = vpop.f32.mrb[72].mxu0 }
0x11f9   :  { %v3333_v1 = vpop.f32.mrb[77].mxu1  ;;  %v5484_v3 = vpop.f32.mrb[73].mxu0  ;;  %v8085_v32 = vadd.f32 %v3331_v34, %v3157_v63 }
0x11fa   :  { %v3335_v18 = vpop.f32.mrb[78].mxu1  ;;  %v3377_v62 = vpop.f32.mrb[74].mxu0  ;;  %v8090_v46 = vadd.f32 %v3333_v1, %v3161_v24 }
0x11fb   :  { %v8070_v14 = vadd.f32 %v3335_v18, %v3157_v63  ;;  %v8072_v51 = vadd.f32 %v3377_v62, %v3165_v23  ;;  %v3337_v16 = vpop.f32.mrb[79].mxu1  ;;  %v5485_v50 = vpop.f32.mrb[75].mxu0  ;;  %v8097_v62 = vadd.f32 %v3374_v22, %v3165_v23 }
0x11fc   :  { %v8074_v61 = vadd.f32 %v3337_v16, %v3161_v24 }
0x1218   :  { %v3594_v41 = vpop.f32.mrb[80].mxu1  ;;  %v3635_v27 = vpop.f32.mrb[76].mxu0 }
0x1219   :  { %v3595_v6 = vadd.f32 %v3594_v41, %v8080_v10  ;;  %v3596_v33 = vpop.f32.mrb[81].mxu1  ;;  %v5504_v15 = vpop.f32.mrb[77].mxu0  ;;  %v3636_v3 = vadd.f32 %v3635_v27, %v8094_v21 }
0x121a   :  { %v3597_v52 = vadd.f32 %v3596_v33, %v8083_v26  ;;  %v3598_v58 = vpop.f32.mrb[82].mxu1  ;;  %v3638_v19 = vpop.f32.mrb[78].mxu0 }
0x121b   :  { %v3641_v2 = vadd.f32 %v3595_v6, %v8085_v32  ;;  %v3599_v4 = vpop.f32.mrb[83].mxu1  ;;  %v5505_v47 = vpop.f32.mrb[79].mxu0 }
0x121c   :  { %v3648_v8 = vadd.f32 %v3597_v52, %v8090_v46 }
0x121d   :  { %v4822_v54 = vmul.f32 -1.442695, %v3641_v2 }
0x121e   :  { %v4823_v13 = vmul.f32 -1.442695, %v3648_v8 }
0x121f   :  { %6085 = vpow2.f32 %v4822_v54 }
0x1220   :  { %6087 = vpow2.f32 %v4823_v13 }
0x1229   :  { %v6086_v7 = vpop.eup %6085 }
0x122a   :  { %v3645_v31 = vadd.f32 1.0, %v6086_v7  ;;  %v6088_v34 = vpop.eup %6087 }
0x122b   :  { %v3652_v63 = vadd.f32 1.0, %v6088_v34 }
0x122c   :  { %6089 = vrcp.f32 %v3645_v31 }
0x122d   :  { %6091 = vrcp.f32 %v3652_v63 }
0x1236   :  { %v6090_v18 = vpop.eup %6089 }
0x1237   :  { %v3655_v1 = vmul.f32 %v6090_v18, %v3636_v3  ;;  %v6092_v16 = vpop.eup %6091 }
0x1238   :  { %v3658_v50 = vsub.f32 1.0, %v6092_v16  ;;  %v3660_v33 = vmul.f32 %v6092_v16, %v8013_v36 }
0x1239   :  { %v3656_v24 = vadd.f32 %v3655_v1, %v8097_v62 }
0x123b   :  { %6093 = vtanh.f32 %v3656_v24 }
0x1245   :  { %v6094_v41 = vpop.eup %6093 }
0x1246   :  { %v3659_v6 = vmul.f32 %v6094_v41, %v3658_v50 }
0x1248   :  { %v8101_v28 = vadd.f32 %v3660_v33, %v3659_v6 }
0x124a   :  { %3662 = vst [vmem:[#allocation2] sm:$0x3] %v8101_v28  ;;  %v3663_v60 = vpack.c.bf16 %v8101_v28, %v8101_v28  ;;  %v3774_v50 = vrot.slane %v8101_v28, 6 }
0x124c   :  { %3697 = vmatmul.mubr.bf16.vlgmr.msra.gmra.mrb[84].mxu1 %v3663_v60  ;;  %5523 = vmatmul.mubr.bf16.vlgmr.msra.gmra.mrb[80].mxu0 %v3663_v60 }
0x124d   :  { %3784 = vmatpush1.bf16.msra.mxu1 %v7875_v0  ;;  %5527 = vmatpush3.bf16.msra.mxu0 %v7880_v53 }
0x124e   :  { %3785 = vmatprep.subr.bf16.mxu1 %v7885_v17  ;;  %5528 = vmatprep.subr.bf16.mxu0 %v6232_v38 }
0x124f   :  { %3815 = vmatprep.mubr.bf16.mxu1 %v6234_v56  ;;  %5542 = vmatprep.mubr.msk.bf16.mxu0 %vm6233_vm0, %v6232_v38 }
0x1251   :  { %3786 = vmatpush1.bf16.msra.mxu1 %v7891_v49  ;;  %5529 = vmatpush3.bf16.msra.mxu0 %v7897_v9 }
0x1252   :  { %3787 = vmatprep.subr.bf16.mxu1 %v7903_v29  ;;  %5530 = vmatprep.subr.bf16.mxu0 %v6232_v38 }
0x1255   :  { %3788 = vmatpush1.bf16.msra.mxu1 %v7913_v37  ;;  %5531 = vmatpush3.bf16.msra.mxu0 %v7919_v20 }
0x1256   :  { %3789 = vmatprep.subr.bf16.mxu1 %v7925_v5  ;;  %5532 = vmatprep.subr.bf16.mxu0 %v6232_v38 }
0x1259   :  { %3790 = vmatpush1.bf16.msra.mxu1 %v7932_v48  ;;  %5533 = vmatpush3.bf16.msra.mxu0 %v7938_v25 }
0x125a   :  { %3791 = vmatprep.subr.bf16.mxu1 %v7944_v11  ;;  %5534 = vmatprep.subr.bf16.mxu0 %v6232_v38 }
0x125d   :  { %3792 = vmatpush1.bf16.msra.mxu1 %v7951_v55  ;;  %5535 = vmatpush3.bf16.msra.mxu0 %v7957_v30 }
0x125e   :  { %3793 = vmatprep.subr.bf16.mxu1 %v7963_v44  ;;  %5536 = vmatprep.subr.bf16.mxu0 %v6232_v38 }
0x1261   :  { %3794 = vmatpush1.bf16.msra.mxu1 %v7970_v35  ;;  %5537 = vmatpush3.bf16.msra.mxu0 %v7976_v12 }
0x1262   :  { %3795 = vmatprep.subr.bf16.mxu1 %v7982_v39  ;;  %5538 = vmatprep.subr.bf16.mxu0 %v6232_v38 }
0x1265   :  { %3796 = vmatpush1.bf16.msra.mxu1 %v7989_v40  ;;  %5539 = vmatpush3.bf16.msra.mxu0 %v7995_v42 }
0x1266   :  { %3797 = vmatprep.subr.bf16.mxu1 %v8001_v43  ;;  %5540 = vmatprep.subr.bf16.mxu0 %v6232_v38 }
0x1269   :  { %3798 = vmatpush1.bf16.msra.mxu1 %v8008_v45  ;;  %5541 = vmatpush3.bf16.msra.mxu0 %v8019_v57 }
0x126a   :  { %3902 = vmatprep.subr.bf16.mxu1 %v7857_v59  ;;  %5546 = vmatprep.subr.bf16.mxu0 %v6232_v38 }
0x131f   :  { %v3698_v36 = vpop.f32.mrb[84].mxu1  ;;  %v3739_v22 = vpop.f32.mrb[80].mxu0 }
0x1320   :  { %v3699_v23 = vadd.f32 %v3698_v36, %v8080_v10  ;;  %v3700_v27 = vpop.f32.mrb[85].mxu1  ;;  %v5524_v15 = vpop.f32.mrb[81].mxu0  ;;  %v3740_v1 = vadd.f32 %v3739_v22, %v8094_v21 }
0x1321   :  { %v3701_v52 = vadd.f32 %v3700_v27, %v8083_v26  ;;  %v3702_v58 = vpop.f32.mrb[86].mxu1  ;;  %v3742_v19 = vpop.f32.mrb[82].mxu0 }
0x1322   :  { %v3746_v2 = vrot.slane %v3699_v23, 6  ;;  %v3703_v4 = vpop.f32.mrb[87].mxu1  ;;  %v5525_v47 = vpop.f32.mrb[83].mxu0  ;;  %v3766_v24 = vrot.slane %v3740_v1, 6 }
0x1323   :  { %v3756_v54 = vrot.slane %v3701_v52, 6 }
0x1324   :  { %v3748_v8 = vadd.f32 %v3746_v2, %v8085_v32 }
0x1325   :  { %v3758_v13 = vadd.f32 %v3756_v54, %v8090_v46 }
0x1326   :  { %v4824_v7 = vmul.f32 -1.442695, %v3748_v8 }
0x1327   :  { %v4825_v31 = vmul.f32 -1.442695, %v3758_v13 }
0x1328   :  { %6095 = vpow2.f32 %v4824_v7 }
0x1329   :  { %6097 = vpow2.f32 %v4825_v31 }
0x1332   :  { %v6096_v34 = vpop.eup %6095 }
0x1333   :  { %v6098_v63 = vpop.eup %6097  ;;  %v3752_v3 = vadd.f32 1.0, %v6096_v34 }
0x1334   :  { %v3762_v18 = vadd.f32 1.0, %v6098_v63 }
0x1335   :  { %6099 = vrcp.f32 %v3752_v3 }
0x1336   :  { %6101 = vrcp.f32 %v3762_v18 }
0x133f   :  { %v6100_v16 = vpop.eup %6099 }
0x1340   :  { %v6102_v41 = vpop.eup %6101  ;;  %v3768_v6 = vmul.f32 %v6100_v16, %v3766_v24 }
0x1341   :  { %v3776_v33 = vmul.f32 %v6102_v41, %v3774_v50  ;;  %v3771_v36 = vsub.f32 1.0, %v6102_v41 }
0x1342   :  { %v3769_v60 = vadd.f32 %v3768_v6, %v8097_v62 }
0x1344   :  { %6103 = vtanh.f32 %v3769_v60 }
0x134e   :  { %v6104_v23 = vpop.eup %6103 }
0x134f   :  { %v3772_v27 = vmul.f32 %v6104_v23, %v3771_v36 }
0x1351   :  { %v8148_v15 = vadd.f32 %v3776_v33, %v3772_v27 }
0x1353   :  { %3778 = vst [vmem:[#allocation2] sm:$0xc] %v8148_v15  ;;  %v3779_v22 = vpack.c.bf16 %v8148_v15, %v8148_v15  ;;  %v3893_v36 = vrot.slane %v8148_v15, 6 }
0x1355   :  { %v3781_v52 = vrot.slane %v3779_v22, 1 }
0x1357   :  { %3816 = vmatmul.mubr.bf16.vlgmr.msra.gmra.mrb[88].mxu1 %v3781_v52  ;;  %5543 = vmatmul.mubr.bf16.vlgmr.msra.gmra.mrb[84].mxu0 %v3781_v52 }
0x1358   :  { %3903 = vmatpush1.bf16.msra.mxu1 %v7875_v0  ;;  %5547 = vmatpush3.bf16.msra.mxu0 %v7880_v53 }
0x1359   :  { %3904 = vmatprep.subr.bf16.mxu1 %v7885_v17  ;;  %5548 = vmatprep.subr.bf16.mxu0 %v6232_v38 }
0x135a   :  { %3934 = vmatprep.mubr.bf16.mxu1 %v6234_v56  ;;  %5562 = vmatprep.mubr.msk.bf16.mxu0 %vm6233_vm0, %v6232_v38 }
0x135c   :  { %3905 = vmatpush1.bf16.msra.mxu1 %v7891_v49  ;;  %5549 = vmatpush3.bf16.msra.mxu0 %v7897_v9 }
0x135d   :  { %3906 = vmatprep.subr.bf16.mxu1 %v7903_v29  ;;  %5550 = vmatprep.subr.bf16.mxu0 %v6232_v38 }
0x1360   :  { %3907 = vmatpush1.bf16.msra.mxu1 %v7913_v37  ;;  %5551 = vmatpush3.bf16.msra.mxu0 %v7919_v20 }
0x1361   :  { %3908 = vmatprep.subr.bf16.mxu1 %v7925_v5  ;;  %5552 = vmatprep.subr.bf16.mxu0 %v6232_v38 }
0x1364   :  { %3909 = vmatpush1.bf16.msra.mxu1 %v7932_v48  ;;  %5553 = vmatpush3.bf16.msra.mxu0 %v7938_v25 }
0x1365   :  { %3910 = vmatprep.subr.bf16.mxu1 %v7944_v11  ;;  %5554 = vmatprep.subr.bf16.mxu0 %v6232_v38 }
0x1368   :  { %3911 = vmatpush1.bf16.msra.mxu1 %v7951_v55  ;;  %5555 = vmatpush3.bf16.msra.mxu0 %v7957_v30 }
0x1369   :  { %3912 = vmatprep.subr.bf16.mxu1 %v7963_v44  ;;  %5556 = vmatprep.subr.bf16.mxu0 %v6232_v38 }
0x136c   :  { %3913 = vmatpush1.bf16.msra.mxu1 %v7970_v35  ;;  %5557 = vmatpush3.bf16.msra.mxu0 %v7976_v12 }
0x136d   :  { %3914 = vmatprep.subr.bf16.mxu1 %v7982_v39  ;;  %5558 = vmatprep.subr.bf16.mxu0 %v6232_v38 }
0x1370   :  { %3915 = vmatpush1.bf16.msra.mxu1 %v7989_v40  ;;  %5559 = vmatpush3.bf16.msra.mxu0 %v7995_v42 }
0x1371   :  { %3916 = vmatprep.subr.bf16.mxu1 %v8001_v43  ;;  %5560 = vmatprep.subr.bf16.mxu0 %v6232_v38 }
0x1374   :  { %3917 = vmatpush1.bf16.msra.mxu1 %v8008_v45  ;;  %5561 = vmatpush3.bf16.msra.mxu0 %v8019_v57 }
0x1375   :  { %4021 = vmatprep.subr.bf16.mxu1 %v7857_v59  ;;  %5566 = vmatprep.subr.bf16.mxu0 %v6232_v38 }
0x142a   :  { %v3817_v28 = vpop.f32.mrb[88].mxu1  ;;  %v3858_v58 = vpop.f32.mrb[84].mxu0 }
0x142b   :  { %v3818_v19 = vadd.f32 %v3817_v28, %v8080_v10  ;;  %v3819_v2 = vpop.f32.mrb[89].mxu1  ;;  %v5544_v4 = vpop.f32.mrb[85].mxu0  ;;  %v3859_v6 = vadd.f32 %v3858_v58, %v8094_v21 }
0x142c   :  { %v3820_v47 = vadd.f32 %v3819_v2, %v8083_v26  ;;  %v3821_v54 = vpop.f32.mrb[90].mxu1  ;;  %v3861_v8 = vpop.f32.mrb[86].mxu0 }
0x142d   :  { %v3865_v13 = vrot.slane %v3818_v19, 4  ;;  %v3822_v7 = vpop.f32.mrb[91].mxu1  ;;  %v5545_v31 = vpop.f32.mrb[87].mxu0  ;;  %v3885_v33 = vrot.slane %v3859_v6, 4 }
0x142e   :  { %v3875_v34 = vrot.slane %v3820_v47, 4 }
0x142f   :  { %v3867_v63 = vadd.f32 %v3865_v13, %v8085_v32 }
0x1430   :  { %v3877_v3 = vadd.f32 %v3875_v34, %v8090_v46 }
0x1431   :  { %v4826_v18 = vmul.f32 -1.442695, %v3867_v63 }
0x1432   :  { %v4827_v1 = vmul.f32 -1.442695, %v3877_v3 }
0x1433   :  { %6105 = vpow2.f32 %v4826_v18 }
0x1434   :  { %6107 = vpow2.f32 %v4827_v1 }
0x143d   :  { %v6106_v24 = vpop.eup %6105 }
0x143e   :  { %v6108_v16 = vpop.eup %6107  ;;  %v3871_v50 = vadd.f32 1.0, %v6106_v24 }
0x143f   :  { %v3881_v41 = vadd.f32 1.0, %v6108_v16 }
0x1440   :  { %6109 = vrcp.f32 %v3871_v50 }
0x1441   :  { %6111 = vrcp.f32 %v3881_v41 }
0x144a   :  { %v6110_v60 = vpop.eup %6109 }
0x144b   :  { %v6112_v23 = vpop.eup %6111  ;;  %v3887_v27 = vmul.f32 %v6110_v60, %v3885_v33 }
0x144c   :  { %v3895_v22 = vmul.f32 %v6112_v23, %v3893_v36  ;;  %v3890_v28 = vsub.f32 1.0, %v6112_v23 }
0x144d   :  { %v3888_v52 = vadd.f32 %v3887_v27, %v8097_v62 }
0x144f   :  { %6113 = vtanh.f32 %v3888_v52 }
0x1459   :  { %v6114_v19 = vpop.eup %6113 }
0x145a   :  { %v3891_v2 = vmul.f32 %v6114_v19, %v3890_v28 }
0x145c   :  { %v8195_v4 = vadd.f32 %v3895_v22, %v3891_v2 }
0x145e   :  { %3897 = vst [vmem:[#allocation2] sm:$0x30] %v8195_v4  ;;  %v3898_v58 = vpack.c.bf16 %v8195_v4, %v8195_v4  ;;  %v4012_v28 = vrot.slane %v8195_v4, 6 }
0x1460   :  { %v3900_v47 = vrot.slane %v3898_v58, 2 }
0x1462   :  { %3935 = vmatmul.mubr.bf16.vlgmr.msra.gmra.mrb[92].mxu1 %v3900_v47  ;;  %5563 = vmatmul.mubr.bf16.vlgmr.msra.gmra.mrb[88].mxu0 %v3900_v47 }
0x1463   :  { %4022 = vmatpush1.bf16.msra.mxu1 %v7875_v0  ;;  %5567 = vmatpush3.bf16.msra.mxu0 %v7880_v53 }
0x1464   :  { %4023 = vmatprep.subr.bf16.mxu1 %v7885_v17  ;;  %5568 = vmatprep.subr.bf16.mxu0 %v6232_v38 }
0x1465   :  { %4053 = vmatprep.mubr.bf16.mxu1 %v6234_v56  ;;  %5582 = vmatprep.mubr.msk.bf16.mxu0 %vm6233_vm0, %v6232_v38 }
0x1467   :  { %4024 = vmatpush1.bf16.msra.mxu1 %v7891_v49  ;;  %5569 = vmatpush3.bf16.msra.mxu0 %v7897_v9 }
0x1468   :  { %4025 = vmatprep.subr.bf16.mxu1 %v7903_v29  ;;  %5570 = vmatprep.subr.bf16.mxu0 %v6232_v38 }
0x146b   :  { %4026 = vmatpush1.bf16.msra.mxu1 %v7913_v37  ;;  %5571 = vmatpush3.bf16.msra.mxu0 %v7919_v20 }
0x146c   :  { %4027 = vmatprep.subr.bf16.mxu1 %v7925_v5  ;;  %5572 = vmatprep.subr.bf16.mxu0 %v6232_v38 }
0x146f   :  { %4028 = vmatpush1.bf16.msra.mxu1 %v7932_v48  ;;  %5573 = vmatpush3.bf16.msra.mxu0 %v7938_v25 }
0x1470   :  { %4029 = vmatprep.subr.bf16.mxu1 %v7944_v11  ;;  %5574 = vmatprep.subr.bf16.mxu0 %v6232_v38 }
0x1473   :  { %4030 = vmatpush1.bf16.msra.mxu1 %v7951_v55  ;;  %5575 = vmatpush3.bf16.msra.mxu0 %v7957_v30 }
0x1474   :  { %4031 = vmatprep.subr.bf16.mxu1 %v7963_v44  ;;  %5576 = vmatprep.subr.bf16.mxu0 %v6232_v38 }
0x1477   :  { %4032 = vmatpush1.bf16.msra.mxu1 %v7970_v35  ;;  %5577 = vmatpush3.bf16.msra.mxu0 %v7976_v12 }
0x1478   :  { %4033 = vmatprep.subr.bf16.mxu1 %v7982_v39  ;;  %5578 = vmatprep.subr.bf16.mxu0 %v6232_v38 }
0x147b   :  { %4034 = vmatpush1.bf16.msra.mxu1 %v7989_v40  ;;  %5579 = vmatpush3.bf16.msra.mxu0 %v7995_v42 }
0x147c   :  { %4035 = vmatprep.subr.bf16.mxu1 %v8001_v43  ;;  %5580 = vmatprep.subr.bf16.mxu0 %v6232_v38 }
0x147f   :  { %4036 = vmatpush1.bf16.msra.mxu1 %v8008_v45  ;;  %5581 = vmatpush3.bf16.msra.mxu0 %v8019_v57 }
0x1480   :  { %4128 = vmatprep.subr.bf16.mxu1 %v7857_v59  ;;  %5586 = vmatprep.subr.bf16.mxu0 %v6232_v38 }
0x1535   :  { %v3936_v15 = vpop.f32.mrb[92].mxu1  ;;  %v3977_v54 = vpop.f32.mrb[88].mxu0 }
0x1536   :  { %v3937_v8 = vadd.f32 %v3936_v15, %v8080_v10  ;;  %v3938_v13 = vpop.f32.mrb[93].mxu1  ;;  %v5564_v7 = vpop.f32.mrb[89].mxu0  ;;  %v3978_v27 = vadd.f32 %v3977_v54, %v8094_v21 }
0x1537   :  { %v3939_v31 = vadd.f32 %v3938_v13, %v8083_v26  ;;  %v3940_v34 = vpop.f32.mrb[94].mxu1  ;;  %v3980_v63 = vpop.f32.mrb[90].mxu0 }
0x1538   :  { %v3984_v3 = vrot.slane %v3937_v8, 2  ;;  %v3941_v18 = vpop.f32.mrb[95].mxu1  ;;  %v5565_v1 = vpop.f32.mrb[91].mxu0  ;;  %v4004_v22 = vrot.slane %v3978_v27, 2 }
0x1539   :  { %v3994_v24 = vrot.slane %v3939_v31, 2 }
0x153a   :  { %v3986_v16 = vadd.f32 %v3984_v3, %v8085_v32 }
0x153b   :  { %v3996_v50 = vadd.f32 %v3994_v24, %v8090_v46 }
0x153c   :  { %v4828_v41 = vmul.f32 -1.442695, %v3986_v16 }
0x153d   :  { %v4829_v6 = vmul.f32 -1.442695, %v3996_v50 }
0x153e   :  { %6115 = vpow2.f32 %v4828_v41 }
0x153f   :  { %6117 = vpow2.f32 %v4829_v6 }
0x1548   :  { %v6116_v33 = vpop.eup %6115 }
0x1549   :  { %v6118_v60 = vpop.eup %6117  ;;  %v3990_v36 = vadd.f32 1.0, %v6116_v33 }
0x154a   :  { %v4000_v23 = vadd.f32 1.0, %v6118_v60 }
0x154b   :  { %6119 = vrcp.f32 %v3990_v36 }
0x154c   :  { %6121 = vrcp.f32 %v4000_v23 }
0x1555   :  { %v6120_v52 = vpop.eup %6119 }
0x1556   :  { %v6122_v19 = vpop.eup %6121  ;;  %v4006_v32 = vmul.f32 %v6120_v52, %v4004_v22 }
0x1557   :  { %v4014_v2 = vmul.f32 %v6122_v19, %v4012_v28  ;;  %v4009_v58 = vsub.f32 1.0, %v6122_v19 }
0x1558   :  { %v4007_v46 = vadd.f32 %v4006_v32, %v8097_v62 }
0x155a   :  { %6123 = vtanh.f32 %v4007_v46 }
0x1564   :  { %v6124_v47 = vpop.eup %6123 }
0x1565   :  { %v4010_v15 = vmul.f32 %v6124_v47, %v4009_v58 }
0x1567   :  { %v8242_v8 = vadd.f32 %v4014_v2, %v4010_v15 }
0x1569   :  { %4016 = vst [vmem:[#allocation2] sm:$0xc0] %v8242_v8  ;;  %v4017_v54 = vpack.c.bf16 %v8242_v8, %v8242_v8  ;;  %v4122_v22 = vrot.slane %v8242_v8, 6 }
0x156b   :  { %v4019_v13 = vrot.slane %v4017_v54, 3 }
0x156d   :  { %4054 = vmatmul.mubr.bf16.vlgmr.msra.gmra.mrb[96].mxu1 %v4019_v13  ;;  %5583 = vmatmul.mubr.bf16.vlgmr.msra.gmra.mrb[92].mxu0 %v4019_v13 }
0x156e   :  { %4129 = vmatpush1.bf16.msra.mxu1 %v7875_v0  ;;  %5587 = vmatpush3.bf16.msra.mxu0 %v7880_v53 }
0x156f   :  { %4130 = vmatprep.subr.bf16.mxu1 %v7885_v17  ;;  %5588 = vmatprep.subr.bf16.mxu0 %v6232_v38 }
0x1570   :  { %4160 = vmatprep.mubr.bf16.mxu1 %v6234_v56  ;;  %5602 = vmatprep.mubr.msk.bf16.mxu0 %vm6233_vm0, %v6232_v38 }
0x1572   :  { %4131 = vmatpush1.bf16.msra.mxu1 %v7891_v49  ;;  %5589 = vmatpush3.bf16.msra.mxu0 %v7897_v9 }
0x1573   :  { %4132 = vmatprep.subr.bf16.mxu1 %v7903_v29  ;;  %5590 = vmatprep.subr.bf16.mxu0 %v6232_v38 }
0x1576   :  { %4133 = vmatpush1.bf16.msra.mxu1 %v7913_v37  ;;  %5591 = vmatpush3.bf16.msra.mxu0 %v7919_v20 }
0x1577   :  { %4134 = vmatprep.subr.bf16.mxu1 %v7925_v5  ;;  %5592 = vmatprep.subr.bf16.mxu0 %v6232_v38 }
0x157a   :  { %4135 = vmatpush1.bf16.msra.mxu1 %v7932_v48  ;;  %5593 = vmatpush3.bf16.msra.mxu0 %v7938_v25 }
0x157b   :  { %4136 = vmatprep.subr.bf16.mxu1 %v7944_v11  ;;  %5594 = vmatprep.subr.bf16.mxu0 %v6232_v38 }
0x157e   :  { %4137 = vmatpush1.bf16.msra.mxu1 %v7951_v55  ;;  %5595 = vmatpush3.bf16.msra.mxu0 %v7957_v30 }
0x157f   :  { %4138 = vmatprep.subr.bf16.mxu1 %v7963_v44  ;;  %5596 = vmatprep.subr.bf16.mxu0 %v6232_v38 }
0x1582   :  { %4139 = vmatpush1.bf16.msra.mxu1 %v7970_v35  ;;  %5597 = vmatpush3.bf16.msra.mxu0 %v7976_v12 }
0x1583   :  { %4140 = vmatprep.subr.bf16.mxu1 %v7982_v39  ;;  %5598 = vmatprep.subr.bf16.mxu0 %v6232_v38 }
0x1586   :  { %4141 = vmatpush1.bf16.msra.mxu1 %v7989_v40  ;;  %5599 = vmatpush3.bf16.msra.mxu0 %v7995_v42 }
0x1587   :  { %4142 = vmatprep.subr.bf16.mxu1 %v8001_v43  ;;  %5600 = vmatprep.subr.bf16.mxu0 %v6232_v38 }
0x158a   :  { %4143 = vmatpush1.bf16.msra.mxu1 %v8008_v45  ;;  %5601 = vmatpush3.bf16.msra.mxu0 %v8019_v57 }
0x158b   :  { %4247 = vmatprep.subr.bf16.mxu1 %v7857_v59  ;;  %5606 = vmatprep.subr.bf16.mxu0 %v6232_v38 }
0x1640   :  { %v4055_v62 = vpop.f32.mrb[96].mxu1  ;;  %v4096_v4 = vpop.f32.mrb[92].mxu0 }
0x1641   :  { %v4056_v7 = vadd.f32 %v4055_v62, %v8080_v10  ;;  %v4057_v31 = vpop.f32.mrb[97].mxu1  ;;  %v5584_v34 = vpop.f32.mrb[93].mxu0  ;;  %v4097_v23 = vadd.f32 %v4096_v4, %v8094_v21 }
0x1642   :  { %v4058_v63 = vadd.f32 %v4057_v31, %v8083_v26  ;;  %v4059_v3 = vpop.f32.mrb[98].mxu1  ;;  %v4099_v18 = vpop.f32.mrb[94].mxu0 }
0x1643   :  { %v4102_v1 = vadd.f32 %v4056_v7, %v8070_v14  ;;  %v4060_v24 = vpop.f32.mrb[99].mxu1  ;;  %v5585_v16 = vpop.f32.mrb[95].mxu0 }
0x1644   :  { %v4109_v50 = vadd.f32 %v4058_v63, %v8074_v61  ;;  %v6209_v24 = vld [vmem:[%s8493_s11] ss:$12 sps:$4 sm:$0xff]   ;;  %v6210_v16 = vld [vmem:[%s8493_s11 + $0x8] ss:$12 sps:$4 sm:$0xff]  }
0x1645   :  { %v4830_v41 = vmul.f32 -1.442695, %v4102_v1 }
0x1646   :  { %v4831_v59 = vmul.f32 -1.442695, %v4109_v50  ;;  %v6211_v50 = vld [vmem:[%s8493_s11 + $0x1c] ss:$12 sps:$4 sm:$0xff]  }
0x1647   :  { %6125 = vpow2.f32 %v4830_v41  ;;  %v6212_v41 = vld [vmem:[%s8493_s11 + $0x18] ss:$12 sps:$4 sm:$0xff]  }
0x1648   :  { %6127 = vpow2.f32 %v4831_v59  ;;  %v6213_v59 = vld [vmem:[%s8493_s11 + $0x20] ss:$12 sps:$4 sm:$0xff]  }
0x1651   :  { %v6126_v6 = vpop.eup %6125 }
0x1652   :  { %v6128_v33 = vpop.eup %6127  ;;  %v4106_v60 = vadd.f32 1.0, %v6126_v6  ;;  %v6214_v6 = vld [vmem:[%s8493_s11 + $0x34] ss:$12 sps:$4 sm:$0xff]  }
0x1653   :  { %v4113_v36 = vadd.f32 1.0, %v6128_v33  ;;  %v6216_v33 = vld [vmem:[%s8493_s11 + $0x38] ss:$12 sps:$4 sm:$0xff]  }
0x1654   :  { %6129 = vrcp.f32 %v4106_v60  ;;  %v6217_v60 = vld [vmem:[%s8493_s11 + $0x4c] ss:$12 sps:$4 sm:$0xff]  }
0x1655   :  { %6131 = vrcp.f32 %v4113_v36  ;;  %v6218_v36 = vld [vmem:[%s8493_s11 + $0x48] ss:$12 sps:$4 sm:$0xff]  }
0x165e   :  { %v6130_v27 = vpop.eup %6129 }
0x165f   :  { %v6132_v52 = vpop.eup %6131  ;;  %v4116_v28 = vmul.f32 %v6130_v27, %v4097_v23  ;;  %v6219_v23 = vld [vmem:[%s8493_s11 + $0x50] ss:$12 sps:$4 sm:$0xff]  }
0x1660   :  { %v4124_v19 = vmul.f32 %v6132_v52, %v4122_v22  ;;  %v4119_v2 = vsub.f32 1.0, %v6132_v52  ;;  %v6220_v27 = vld [vmem:[%s8493_s11 + $0x64] ss:$12 sps:$4 sm:$0xff]   ;;  %v6221_v22 = vld [vmem:[%s8493_s11 + $0x60] ss:$12 sps:$4 sm:$0xff]  }
0x1661   :  { %v4117_v32 = vadd.f32 %v4116_v28, %v8072_v51  ;;  %v6222_v52 = vld [vmem:[%s8493_s11 + $0x68] ss:$12 sps:$4 sm:$0xff]  }
0x1662   :  { %v6223_v28 = vld [vmem:[%s8493_s11 + $0x7c] ss:$12 sps:$4 sm:$0xff]  }
0x1663   :  { %6133 = vtanh.f32 %v4117_v32  ;;  %v6225_v32 = vld [vmem:[%s8493_s11 + $0x80] ss:$12 sps:$4 sm:$0xff]  }
0x166d   :  { %v6134_v46 = vpop.eup %6133 }
0x166e   :  { %v4120_v58 = vmul.f32 %v6134_v46, %v4119_v2  ;;  %v6226_v2 = vld [vmem:[%s8493_s11 + $0x94] ss:$12 sps:$4 sm:$0xff]   ;;  %v6227_v46 = vld [vmem:[%s8493_s11 + $0x90] ss:$12 sps:$4 sm:$0xff]  }
0x1670   :  { %v8289_v47 = vadd.f32 %v4124_v19, %v4120_v58  ;;  %v6224_v19 = vld [vmem:[%s8493_s11 + $0x78] ss:$12 sps:$4 sm:$0xff]  }
0x1671   :  { %v6228_v58 = vld [vmem:[%s8493_s11 + $0x98] ss:$12 sps:$4 sm:$0xff]  }
0x1672   :  { %4126 = vst [vmem:[#allocation2 + $0x8] sm:$0x3] %v8289_v47  ;;  %v4127_v15 = vpack.c.bf16 %v8289_v47, %v8289_v47  ;;  %v4238_v54 = vrot.slane %v8289_v47, 6  ;;  %v6229_v47 = vld [vmem:[%s8493_s11 + $0xac] ss:$12 sps:$4 sm:$0xff]  }
0x1674   :  { %4161 = vmatmul.mubr.bf16.vlgmr.msra.gmra.mrb[100].mxu1 %v4127_v15  ;;  %5603 = vmatmul.mubr.bf16.vlgmr.msra.gmra.mrb[96].mxu0 %v4127_v15  ;;  %v6230_v15 = vld [vmem:[%s8493_s11 + $0xa8] ss:$12 sps:$4 sm:$0xff]  }
0x1675   :  { %4248 = vmatpush1.bf16.msra.mxu1 %v7875_v0  ;;  %5607 = vmatpush3.bf16.msra.mxu0 %v7880_v53  ;;  %v6208_v0 = vld [vmem:[%s8493_s11 + $0x4] ss:$12 sps:$4 sm:$0xff]  }
0x1676   :  { %4249 = vmatprep.subr.bf16.mxu1 %v7885_v17  ;;  %5608 = vmatprep.subr.bf16.mxu0 %v6232_v38 }
0x1677   :  { %4279 = vmatprep.mubr.bf16.mxu1 %v6234_v56  ;;  %5622 = vmatprep.mubr.msk.bf16.mxu0 %vm6233_vm0, %v6232_v38 }
0x1679   :  { %4250 = vmatpush1.bf16.msra.mxu1 %v7891_v49  ;;  %5609 = vmatpush3.bf16.msra.mxu0 %v7897_v9 }
0x167a   :  { %4251 = vmatprep.subr.bf16.mxu1 %v7903_v29  ;;  %5610 = vmatprep.subr.bf16.mxu0 %v6232_v38 }
0x167d   :  { %4252 = vmatpush1.bf16.msra.mxu1 %v7913_v37  ;;  %5611 = vmatpush3.bf16.msra.mxu0 %v7919_v20 }
0x167e   :  { %4253 = vmatprep.subr.bf16.mxu1 %v7925_v5  ;;  %5612 = vmatprep.subr.bf16.mxu0 %v6232_v38 }
0x1681   :  { %4254 = vmatpush1.bf16.msra.mxu1 %v7932_v48  ;;  %5613 = vmatpush3.bf16.msra.mxu0 %v7938_v25 }
0x1682   :  { %4255 = vmatprep.subr.bf16.mxu1 %v7944_v11  ;;  %5614 = vmatprep.subr.bf16.mxu0 %v6232_v38 }
0x1685   :  { %4256 = vmatpush1.bf16.msra.mxu1 %v7951_v55  ;;  %5615 = vmatpush3.bf16.msra.mxu0 %v7957_v30 }
0x1686   :  { %4257 = vmatprep.subr.bf16.mxu1 %v7963_v44  ;;  %5616 = vmatprep.subr.bf16.mxu0 %v6232_v38 }
0x1689   :  { %4258 = vmatpush1.bf16.msra.mxu1 %v7970_v35  ;;  %5617 = vmatpush3.bf16.msra.mxu0 %v7976_v12 }
0x168a   :  { %4259 = vmatprep.subr.bf16.mxu1 %v7982_v39  ;;  %5618 = vmatprep.subr.bf16.mxu0 %v6232_v38 }
0x168d   :  { %4260 = vmatpush1.bf16.msra.mxu1 %v7989_v40  ;;  %5619 = vmatpush3.bf16.msra.mxu0 %v7995_v42 }
0x168e   :  { %4261 = vmatprep.subr.bf16.mxu1 %v8001_v43  ;;  %5620 = vmatprep.subr.bf16.mxu0 %v6232_v38 }
0x1691   :  { %4262 = vmatpush1.bf16.msra.mxu1 %v8008_v45  ;;  %5621 = vmatpush3.bf16.msra.mxu0 %v8019_v57 }
0x1692   :  { %4366 = vmatprep.subr.bf16.mxu1 %v6208_v0  ;;  %5626 = vmatprep.subr.bf16.mxu0 %v6232_v38  ;;  %v6231_v0 = vld [vmem:[%s8493_s11 + $0xb0] ss:$12 sps:$4 sm:$0xff]  }
0x1747   :  { %v4162_v53 = vpop.f32.mrb[100].mxu1  ;;  %v4203_v17 = vpop.f32.mrb[96].mxu0 }
0x1748   :  { %v4163_v49 = vadd.f32 %v4162_v53, %v8080_v10  ;;  %v4164_v9 = vpop.f32.mrb[101].mxu1  ;;  %v5604_v29 = vpop.f32.mrb[97].mxu0  ;;  %v4204_v45 = vadd.f32 %v4203_v17, %v8094_v21 }
0x1749   :  { %v4165_v37 = vadd.f32 %v4164_v9, %v8083_v26  ;;  %v4166_v20 = vpop.f32.mrb[102].mxu1  ;;  %v4206_v5 = vpop.f32.mrb[98].mxu0 }
0x174a   :  { %v4210_v48 = vrot.slane %v4163_v49, 6  ;;  %v4167_v25 = vpop.f32.mrb[103].mxu1  ;;  %v5605_v11 = vpop.f32.mrb[99].mxu0  ;;  %v4230_v57 = vrot.slane %v4204_v45, 6 }
0x174b   :  { %v4220_v55 = vrot.slane %v4165_v37, 6 }
0x174c   :  { %v4212_v30 = vadd.f32 %v4210_v48, %v8070_v14 }
0x174d   :  { %v4222_v44 = vadd.f32 %v4220_v55, %v8074_v61 }
0x174e   :  { %v4832_v35 = vmul.f32 -1.442695, %v4212_v30 }
0x174f   :  { %v4833_v12 = vmul.f32 -1.442695, %v4222_v44 }
0x1750   :  { %6135 = vpow2.f32 %v4832_v35 }
0x1751   :  { %6137 = vpow2.f32 %v4833_v12 }
0x175a   :  { %v6136_v39 = vpop.eup %6135 }
0x175b   :  { %v6138_v40 = vpop.eup %6137  ;;  %v4216_v42 = vadd.f32 1.0, %v6136_v39 }
0x175c   :  { %v4226_v43 = vadd.f32 1.0, %v6138_v40 }
0x175d   :  { %6139 = vrcp.f32 %v4216_v42 }
0x175e   :  { %6141 = vrcp.f32 %v4226_v43 }
0x1767   :  { %v6140_v8 = vpop.eup %6139 }
0x1768   :  { %v6142_v13 = vpop.eup %6141  ;;  %v4232_v62 = vmul.f32 %v6140_v8, %v4230_v57 }
0x1769   :  { %v4240_v4 = vmul.f32 %v6142_v13, %v4238_v54  ;;  %v4235_v31 = vsub.f32 1.0, %v6142_v13 }
0x176a   :  { %v4233_v7 = vadd.f32 %v4232_v62, %v8072_v51 }
0x176c   :  { %6143 = vtanh.f32 %v4233_v7 }
0x1776   :  { %v6144_v34 = vpop.eup %6143 }
0x1777   :  { %v4236_v63 = vmul.f32 %v6144_v34, %v4235_v31 }
0x1779   :  { %v8338_v3 = vadd.f32 %v4240_v4, %v4236_v63 }
0x177b   :  { %4242 = vst [vmem:[#allocation2 + $0x8] sm:$0xc] %v8338_v3  ;;  %v4243_v18 = vpack.c.bf16 %v8338_v3, %v8338_v3  ;;  %v4357_v54 = vrot.slane %v8338_v3, 6  ;;  %v5917_v3 = vld [vmem:[%s8496_s14] sm:$0xff]  }
0x177d   :  { %v4245_v1 = vrot.slane %v4243_v18, 1 }
0x177f   :  { %4280 = vmatmul.mubr.bf16.vlgmr.msra.gmra.mrb[104].mxu1 %v4245_v1  ;;  %5623 = vmatmul.mubr.bf16.vlgmr.msra.gmra.mrb[100].mxu0 %v4245_v1 }
0x1780   :  { %4367 = vmatpush1.bf16.msra.mxu1 %v6209_v24  ;;  %5627 = vmatpush3.bf16.msra.mxu0 %v6210_v16  ;;  %v5918_v16 = vld [vmem:[%s8496_s14 + $0x8] sm:$0xff]  }
0x1781   :  { %4368 = vmatprep.subr.bf16.mxu1 %v6211_v50  ;;  %5628 = vmatprep.subr.bf16.mxu0 %v6232_v38  ;;  %v5919_v50 = vld [vmem:[%s8496_s14 + $0x10] sm:$0xff]  }
0x1782   :  { %4398 = vmatprep.mubr.bf16.mxu1 %v6234_v56  ;;  %5642 = vmatprep.mubr.msk.bf16.mxu0 %vm6233_vm0, %v6232_v38  ;;  %v6215_v56 = vld [vmem:[%s8493_s11 + $0x30] ss:$12 sps:$4 sm:$0xff]  }
0x1784   :  { %4369 = vmatpush1.bf16.msra.mxu1 %v6212_v41  ;;  %5629 = vmatpush3.bf16.msra.mxu0 %v6213_v59  ;;  %v5920_v41 = vld [vmem:[%s8496_s14 + $0x18] sm:$0xff]   ;;  %v5921_v59 = vld [vmem:[%s8496_s14 + $0x20] sm:$0xff]  }
0x1785   :  { %4370 = vmatprep.subr.bf16.mxu1 %v6214_v6  ;;  %5630 = vmatprep.subr.bf16.mxu0 %v6232_v38  ;;  %v5922_v6 = vld [vmem:[%s8496_s14 + $0x28] sm:$0xff]  }
0x1788   :  { %4371 = vmatpush1.bf16.msra.mxu1 %v6215_v56  ;;  %5631 = vmatpush3.bf16.msra.mxu0 %v6216_v33  ;;  %v5923_v56 = vld [vmem:[%s8496_s14 + $0x30] sm:$0xff]   ;;  %v5924_v33 = vld [vmem:[%s8496_s14 + $0x38] sm:$0xff]  }
0x1789   :  { %4372 = vmatprep.subr.bf16.mxu1 %v6217_v60  ;;  %5632 = vmatprep.subr.bf16.mxu0 %v6232_v38 }
0x178c   :  { %4373 = vmatpush1.bf16.msra.mxu1 %v6218_v36  ;;  %5633 = vmatpush3.bf16.msra.mxu0 %v6219_v23 }
0x178d   :  { %4374 = vmatprep.subr.bf16.mxu1 %v6220_v27  ;;  %5634 = vmatprep.subr.bf16.mxu0 %v6232_v38 }
0x1790   :  { %4375 = vmatpush1.bf16.msra.mxu1 %v6221_v22  ;;  %5635 = vmatpush3.bf16.msra.mxu0 %v6222_v52 }
0x1791   :  { %4376 = vmatprep.subr.bf16.mxu1 %v6223_v28  ;;  %5636 = vmatprep.subr.bf16.mxu0 %v6232_v38 }
0x1794   :  { %4377 = vmatpush1.bf16.msra.mxu1 %v6224_v19  ;;  %5637 = vmatpush3.bf16.msra.mxu0 %v6225_v32 }
0x1795   :  { %4378 = vmatprep.subr.bf16.mxu1 %v6226_v2  ;;  %5638 = vmatprep.subr.bf16.mxu0 %v6232_v38 }
0x1798   :  { %4379 = vmatpush1.bf16.msra.mxu1 %v6227_v46  ;;  %5639 = vmatpush3.bf16.msra.mxu0 %v6228_v58 }
0x1799   :  { %4380 = vmatprep.subr.bf16.mxu1 %v6229_v47  ;;  %5640 = vmatprep.subr.bf16.mxu0 %v6232_v38 }
0x179c   :  { %4381 = vmatpush1.bf16.msra.mxu1 %v6230_v15  ;;  %5641 = vmatpush3.bf16.msra.mxu0 %v6231_v0 }
0x179d   :  { %5646 = vmatprep.subr.bf16.mxu1 %v6232_v38 }
0x1852   :  { %v4281_v53 = vpop.f32.mrb[104].mxu1  ;;  %v4322_v17 = vpop.f32.mrb[100].mxu0 }
0x1853   :  { %v4282_v49 = vadd.f32 %v4281_v53, %v8080_v10  ;;  %v4283_v9 = vpop.f32.mrb[105].mxu1  ;;  %v5624_v29 = vpop.f32.mrb[101].mxu0  ;;  %v4323_v45 = vadd.f32 %v4322_v17, %v8094_v21 }
0x1854   :  { %v4284_v37 = vadd.f32 %v4283_v9, %v8083_v26  ;;  %v4285_v20 = vpop.f32.mrb[106].mxu1  ;;  %v4325_v5 = vpop.f32.mrb[102].mxu0 }
0x1855   :  { %v4329_v48 = vrot.slane %v4282_v49, 4  ;;  %v4286_v25 = vpop.f32.mrb[107].mxu1  ;;  %v5625_v11 = vpop.f32.mrb[103].mxu0  ;;  %v4349_v57 = vrot.slane %v4323_v45, 4 }
0x1856   :  { %v4339_v55 = vrot.slane %v4284_v37, 4 }
0x1857   :  { %v4331_v30 = vadd.f32 %v4329_v48, %v8070_v14 }
0x1858   :  { %v4341_v44 = vadd.f32 %v4339_v55, %v8074_v61 }
0x1859   :  { %v4834_v35 = vmul.f32 -1.442695, %v4331_v30  ;;  %v4482_v30 = vld [vmem:[#allocation2] sm:$0xff] }
0x185a   :  { %v4835_v12 = vmul.f32 -1.442695, %v4341_v44 }
0x185b   :  { %6145 = vpow2.f32 %v4834_v35  ;;  %v4838_v35 = vld [vmem:[%s8497_s15] ss:$0 sm:$0xff] }
0x185c   :  { %6147 = vpow2.f32 %v4835_v12 }
0x1865   :  { %v6146_v39 = vpop.eup %6145 }
0x1866   :  { %v6148_v40 = vpop.eup %6147  ;;  %v4335_v42 = vadd.f32 1.0, %v6146_v39 }
0x1867   :  { %v4345_v43 = vadd.f32 1.0, %v6148_v40 }
0x1868   :  { %6149 = vrcp.f32 %v4335_v42 }
0x1869   :  { %6151 = vrcp.f32 %v4345_v43 }
0x1872   :  { %v6150_v8 = vpop.eup %6149 }
0x1873   :  { %v6152_v13 = vpop.eup %6151  ;;  %v4351_v62 = vmul.f32 %v6150_v8, %v4349_v57 }
0x1874   :  { %v4359_v4 = vmul.f32 %v6152_v13, %v4357_v54  ;;  %v4354_v31 = vsub.f32 1.0, %v6152_v13 }
0x1875   :  { %v4352_v7 = vadd.f32 %v4351_v62, %v8072_v51 }
0x1877   :  { %6153 = vtanh.f32 %v4352_v7 }
0x1881   :  { %v6154_v34 = vpop.eup %6153 }
0x1882   :  { %v4355_v63 = vmul.f32 %v6154_v34, %v4354_v31 }
0x1884   :  { %v4360_v18 = vadd.f32 %v4359_v4, %v4355_v63 }
0x1886   :  { %4361 = vst [vmem:[#allocation2 + $0x8] sm:$0x30] %v4360_v18  ;;  %v4362_v1 = vpack.c.bf16 %v4360_v18, %v4360_v18  ;;  %v4476_v37 = vrot.slane %v4360_v18, 6 }
0x1888   :  { %v4364_v24 = vrot.slane %v4362_v1, 2 }
0x188a   :  { %4399 = vmatmul.mubr.bf16.vlgmr.msra.gmra.mrb[108].mxu1 %v4364_v24  ;;  %5643 = vmatmul.mubr.bf16.vlgmr.msra.gmra.mrb[104].mxu0 %v4364_v24 }
0x188b   :  { %5662 = vmatprep.mubr.msk.bf16.mxu1 %vm6233_vm0, %v6232_v38  ;;  %5647 = vmatpush3.bf16.msra.mxu1 %v5917_v3 }
0x188c   :  { %5648 = vmatprep.subr.bf16.mxu1 %v6232_v38 }
0x188f   :  { %5649 = vmatpush3.bf16.msra.mxu1 %v5918_v16 }
0x1890   :  { %5650 = vmatprep.subr.bf16.mxu1 %v6232_v38 }
0x1893   :  { %5651 = vmatpush3.bf16.msra.mxu1 %v5919_v50 }
0x1894   :  { %5652 = vmatprep.subr.bf16.mxu1 %v6232_v38 }
0x1897   :  { %5653 = vmatpush3.bf16.msra.mxu1 %v5920_v41 }
0x1898   :  { %5654 = vmatprep.subr.bf16.mxu1 %v6232_v38 }
0x189b   :  { %5655 = vmatpush3.bf16.msra.mxu1 %v5921_v59 }
0x189c   :  { %5656 = vmatprep.subr.bf16.mxu1 %v6232_v38 }
0x189f   :  { %5657 = vmatpush3.bf16.msra.mxu1 %v5922_v6 }
0x18a0   :  { %5658 = vmatprep.subr.bf16.mxu1 %v6232_v38 }
0x18a3   :  { %5659 = vmatpush3.bf16.msra.mxu1 %v5923_v56 }
0x18a4   :  { %5660 = vmatprep.subr.bf16.mxu1 %v6232_v38 }
0x18a7   :  { %5661 = vmatpush3.bf16.msra.mxu1 %v5924_v33 }
0x195d   :  { %v4400_v60 = vpop.f32.mrb[108].mxu1  ;;  %v4441_v36 = vpop.f32.mrb[104].mxu0 }
0x195e   :  { %v4401_v23 = vadd.f32 %v4400_v60, %v8080_v10  ;;  %v4402_v27 = vpop.f32.mrb[109].mxu1  ;;  %v5644_v22 = vpop.f32.mrb[105].mxu0 }
0x195f   :  { %v4403_v52 = vadd.f32 %v4402_v27, %v8083_v26  ;;  %v4404_v28 = vpop.f32.mrb[110].mxu1  ;;  %v4444_v19 = vpop.f32.mrb[106].mxu0  ;;  %v4442_v26 = vadd.f32 %v4441_v36, %v8094_v21 }
0x1960   :  { %v4448_v32 = vrot.slane %v4401_v23, 2  ;;  %v4405_v2 = vpop.f32.mrb[111].mxu1  ;;  %v5645_v46 = vpop.f32.mrb[107].mxu0 }
0x1961   :  { %v4458_v58 = vrot.slane %v4403_v52, 2  ;;  %v4468_v9 = vrot.slane %v4442_v26, 2 }
0x1962   :  { %v4450_v47 = vadd.f32 %v4448_v32, %v8070_v14 }
0x1963   :  { %v4460_v15 = vadd.f32 %v4458_v58, %v8074_v61 }
0x1964   :  { %v4836_v38 = vmul.f32 -1.442695, %v4450_v47 }
0x1965   :  { %v4837_v0 = vmul.f32 -1.442695, %v4460_v15 }
0x1966   :  { %6155 = vpow2.f32 %v4836_v38 }
0x1967   :  { %6157 = vpow2.f32 %v4837_v0 }
0x1970   :  { %v6156_v53 = vpop.eup %6155 }
0x1971   :  { %v6158_v10 = vpop.eup %6157  ;;  %v4454_v17 = vadd.f32 1.0, %v6156_v53 }
0x1972   :  { %v4464_v49 = vadd.f32 1.0, %v6158_v10 }
0x1973   :  { %6159 = vrcp.f32 %v4454_v17 }
0x1974   :  { %6161 = vrcp.f32 %v4464_v49 }
0x197d   :  { %v6160_v29 = vpop.eup %6159 }
0x197e   :  { %v6162_v20 = vpop.eup %6161  ;;  %v4470_v5 = vmul.f32 %v6160_v29, %v4468_v9 }
0x197f   :  { %v4478_v14 = vmul.f32 %v6162_v20, %v4476_v37  ;;  %v4473_v48 = vsub.f32 1.0, %v6162_v20 }
0x1980   :  { %v4471_v61 = vadd.f32 %v4470_v5, %v8072_v51 }
0x1982   :  { %6163 = vtanh.f32 %v4471_v61 }
0x198c   :  { %v6164_v25 = vpop.eup %6163 }
0x198d   :  { %v4474_v11 = vmul.f32 %v6164_v25, %v4473_v48 }
0x198f   :  { %v4479_v55 = vadd.f32 %v4478_v14, %v4474_v11 }
0x1991   :  { %4480 = vst [vmem:[#allocation2 + $0x8] sm:$0xc0] %v4479_v55  ;;  %4481 = vst [vmem:[%s8489_s17 - $0x2] sm:$0xc0] %v4479_v55 }
0x1998   :  { %v4483_v21 = vld [vmem:[#allocation2 + $0x8] sm:$0xff] }
0x1999   :  { %v4484_v44 = vpack.c.bf16 %v4483_v21, %v4482_v30 }
0x199b   :  { %5663 = vmatmul.mubr.bf16.vlgmr.msra.gmra.mrb[112].mxu1 %v4484_v44 }
0x1a6e   :  { %v4590_v12 = vpop.f32.mrb[112].mxu1 }
0x1a6f   :  { %v4591_v51 = vadd.f32 %v4838_v35, %v4590_v12  ;;  %v5664_v39 = vpop.f32.mrb[113].mxu1 }
0x1a70   :  { %v4593_v40 = vpop.f32.mrb[114].mxu1 }
0x1a71   :  { %4597 = vst [vmem:[%s8498_s16] sm:$0xff] %v4591_v51  ;;  %v4594_v42 = vadd.f32 %v4838_v35, %v4593_v40  ;;  %v5665_v43 = vpop.f32.mrb[115].mxu1 }
0x1a73   :  { %4598 = vst [vmem:[%s8498_s16 + $0x8] sm:$0xff] %v4594_v42 }

</bundles_post_ra>
